<compile_context>
chip_gen: v7x
topology: tpu7x:2x2x1
jax: 0.10.0
libtpu: 0.0.40
codegen_flags: <defaults>
</compile_context>

<pallas_src>
import functools
import math

import numpy as np

import jax
import jax.numpy as jnp
from jax.experimental import pallas as pl
from jax.experimental.pallas import tpu as pltpu

_NEG_SLOPE = 0.01  # nn.LeakyReLU default negative_slope
_VMEM = functools.partial(pl.BlockSpec, memory_space=pltpu.MemorySpace.VMEM)


def _lrelu(x):
    return jnp.where(x > 0, x, _NEG_SLOPE * x)


# ----------------------------- Pallas kernels -----------------------------

def _linear_lrelu_kernel(x_ref, w_ref, b_ref, o_ref):
    """LeakyReLU(x @ w + b) — Linear with BatchNorm(eval) folded into w/b."""
    y = jnp.dot(x_ref[...], w_ref[...], preferred_element_type=jnp.float32)
    o_ref[...] = _lrelu(y + b_ref[...])


def linear_lrelu(x, w, b):
    return pl.pallas_call(
        _linear_lrelu_kernel,
        out_shape=jax.ShapeDtypeStruct((x.shape[0], w.shape[1]), jnp.float32),
        in_specs=[_VMEM()] * 3,
        out_specs=_VMEM(),
    )(x, w, b)


def _gat_block_kernel(x_ref, w_all_ref, e_ref, m_ref, sqw_ref, sqb_ref, o_ref,
                      *, n_heads, out_f, residual):
    """One whole GraphAttention block, fully fused.

    x_ref     : (N, in_f)              layer input
    w_all_ref : (in_f, n_heads*out_f)  stacked per-head W
    e_ref     : (n_heads, N, N)        pre-activation attention logits
    m_ref     : (n_heads, N, N)        adjacency masks (last head = identity)
    sqw_ref   : (n_heads*out_f, out_f) squeeze Linear weight
    sqb_ref   : (1, out_f)             squeeze Linear bias
    """
    x = x_ref[...]
    # Batched head projection: one MXU matmul for all heads.
    h_all = jnp.dot(x, w_all_ref[...], preferred_element_type=jnp.float32)

    acc = None
    for hh in range(n_heads):
        e = _lrelu(e_ref[hh])                                   # LeakyReLU(e)
        att = jnp.where(m_ref[hh] > 0, e, -9e15)                # adjacency mask
        att = att - jnp.max(att, axis=-1, keepdims=True)        # softmax(dim=-1)
        p = jnp.exp(att)
        p = p / jnp.sum(p, axis=-1, keepdims=True)
        h_head = h_all[:, hh * out_f:(hh + 1) * out_f]          # (N, out_f)
        h_prime = jnp.dot(p, h_head, preferred_element_type=jnp.float32)
        # concat-over-heads + squeeze Linear == sum of per-head block matmuls
        part = jnp.dot(h_prime, sqw_ref[hh * out_f:(hh + 1) * out_f, :],
                       preferred_element_type=jnp.float32)
        acc = part if acc is None else acc + part

    y = _lrelu(acc + sqb_ref[...])
    if residual:                                                # in_f == out_f
        y = y + x
    o_ref[...] = y


def _tail_kernel(x_ref, w1, b1, w2, b2, wf, bf, wl, bl, wa, ba, wc, bc,
                 of_ref, ol_ref, oc_ref):
    """emb1 + emb2 + formal/final heads + node-attention pooling + cls head."""
    y = _lrelu(jnp.dot(x_ref[...], w1[...],
                       preferred_element_type=jnp.float32) + b1[...])   # (N, 64)
    y = _lrelu(jnp.dot(y, w2[...],
                       preferred_element_type=jnp.float32) + b2[...])   # (N, 32)

    of_ref[...] = jnp.dot(y, wf[...], preferred_element_type=jnp.float32) + bf[...]
    ol_ref[...] = jnp.dot(y, wl[...], preferred_element_type=jnp.float32) + bl[...]

    s = jnp.dot(y, wa[...], preferred_element_type=jnp.float32) + ba[...]  # (N, 1)
    s = s - jnp.max(s, axis=0, keepdims=True)                  # softmax over nodes
    p = jnp.exp(s)
    p = p / jnp.sum(p, axis=0, keepdims=True)
    pooled = jnp.sum(p * y, axis=0, keepdims=True)             # (1, 32)
    oc_ref[...] = jnp.dot(pooled, wc[...],
                          preferred_element_type=jnp.float32) + bc[...]


# --------------------------- parameter creation ---------------------------

def xavier_uniform(key, shape):
    fan_in, fan_out = shape
    a = math.sqrt(6.0 / (fan_in + fan_out))
    return jax.random.uniform(key, shape, jnp.float32, -a, a)


def linear_params(key, in_f, out_f):
    kw, kb = jax.random.split(key)
    bound = 1.0 / math.sqrt(in_f)
    return {
        "w": jax.random.uniform(kw, (in_f, out_f), jnp.float32, -bound, bound),
        "b": jax.random.uniform(kb, (1, out_f), jnp.float32, -bound, bound),
    }


def node_embed_params(key, in_f, out_f):
    # Linear + Dropout(eval) + BatchNorm1d(eval, fresh running stats) + LeakyReLU,
    # with the BatchNorm affine folded into the Linear weights at init time.
    p = linear_params(key, in_f, out_f)
    eps = 1e-5
    gamma = jnp.ones((1, out_f), jnp.float32)
    beta = jnp.zeros((1, out_f), jnp.float32)
    running_mean = jnp.zeros((1, out_f), jnp.float32)
    running_var = jnp.ones((1, out_f), jnp.float32)
    scale = gamma / jnp.sqrt(running_var + eps)
    return {"w": p["w"] * scale, "b": (p["b"] - running_mean) * scale + beta}


def gat_params(key, no_A, in_f, out_f):
    f8 = out_f // 8
    n_heads = no_A + 1
    keys = jax.random.split(key, 3 * n_heads + 1)
    W = [xavier_uniform(keys[i], (in_f, out_f)) for i in range(n_heads)]
    emb = [xavier_uniform(keys[n_heads + i], (out_f, f8)) for i in range(n_heads)]
    a = [xavier_uniform(keys[2 * n_heads + i], (2 * f8, 1)) for i in range(n_heads)]
    sq = linear_params(keys[-1], out_f * n_heads, out_f)
    # Packed / folded representation consumed by the fused kernel:
    #   w_all : all head projections stacked along the output dim
    #   ua/wa : W @ emb @ a_left / a_right  (rank-2 decomposition of e_pre)
    w_all = jnp.concatenate(W, axis=1)                              # (in_f, n_heads*out_f)
    ua = jnp.concatenate([W[h] @ (emb[h] @ a[h][:f8]) for h in range(n_heads)], axis=1)
    wa = jnp.concatenate([W[h] @ (emb[h] @ a[h][f8:]) for h in range(n_heads)], axis=1)
    return {"w_all": w_all, "ua": ua, "wa": wa, "sq_w": sq["w"], "sq_b": sq["b"]}


def init_params(key, input_feature, no_A, class_formal_key, num_classification):
    keys = jax.random.split(key, 12)
    return {
        "emb0": node_embed_params(keys[0], input_feature, 128),
        "dense": {
            "layers": [gat_params(keys[1 + r], no_A, 128 * (r + 1), 128) for r in range(3)],
            "squeeze_block": gat_params(keys[4], no_A, 128 * 4, 128),
        },
        "gat": gat_params(keys[5], no_A, 128, 128),
        "emb1": node_embed_params(keys[6], 128, 64),
        "emb2": node_embed_params(keys[7], 64, 32),
        "formal": linear_params(keys[8], 32, class_formal_key),
        "final": linear_params(keys[9], 32, 2 * class_formal_key - 1),
        "node_att": linear_params(keys[10], 32, 1),
        "cls": linear_params(keys[11], 32, num_classification),
    }


# ------------------------------ forward pass ------------------------------

def _pair_gather_indices(N):
    # Reproduces exactly the PyTorch pair construction
    #   a_input = cat([h_emb.repeat(1,1,N).view(1,N*N,-1), h_emb.repeat(1,N,1)],
    #                 dim=1).view(1, N, N, -1)
    # Row (p,q) of a_input is [C[2k] || C[2k+1]] with k = p*N+q and
    #   C[r] = h_emb[r // N] for r < N*N (the x1 half), h_emb[r % N] otherwise.
    r_left = 2 * np.arange(N * N)
    r_right = r_left + 1
    src = lambda r: np.where(r < N * N, r // N, r % N)
    il = src(r_left).reshape(N, N).astype(np.int32)
    ir = src(r_right).reshape(N, N).astype(np.int32)
    return jnp.asarray(il), jnp.asarray(ir)


def gat_block(p, x, masks, il, ir):
    """One GraphAttention block; x: (N, in_f), masks: (n_heads, N, N)."""
    n_heads = masks.shape[0]
    out_f = p["sq_w"].shape[1]
    # --- XLA prologue (O(N) work, no pallas launch): attention logits ---
    # e[h, p, q] = (x @ ua)[il[p, q], h] + (x @ wa)[ir[p, q], h]
    umat = x @ p["ua"]                                   # (N, n_heads)
    wmat = x @ p["wa"]                                   # (N, n_heads)
    e_pre = jnp.moveaxis(umat[il] + wmat[ir], 2, 0)      # (n_heads, N, N)

    kern = functools.partial(_gat_block_kernel, n_heads=n_heads, out_f=out_f,
                             residual=(x.shape[1] == out_f))
    return pl.pallas_call(
        kern,
        out_shape=jax.ShapeDtypeStruct((x.shape[0], out_f), jnp.float32),
        in_specs=[_VMEM()] * 6,
        out_specs=_VMEM(),
    )(x, p["w_all"], e_pre, masks, p["sq_w"], p["sq_b"])


def tail_forward(p, x):
    N = x.shape[0]
    return pl.pallas_call(
        _tail_kernel,
        out_shape=(
            jax.ShapeDtypeStruct((N, p["formal"]["w"].shape[1]), jnp.float32),
            jax.ShapeDtypeStruct((N, p["final"]["w"].shape[1]), jnp.float32),
            jax.ShapeDtypeStruct((1, p["cls"]["w"].shape[1]), jnp.float32),
        ),
        in_specs=[_VMEM()] * 13,
        out_specs=(_VMEM(), _VMEM(), _VMEM()),
    )(x, p["emb1"]["w"], p["emb1"]["b"], p["emb2"]["w"], p["emb2"]["b"],
      p["formal"]["w"], p["formal"]["b"], p["final"]["w"], p["final"]["b"],
      p["node_att"]["w"], p["node_att"]["b"], p["cls"]["w"], p["cls"]["b"])


def backbone_forward(params, input_image, V, A):
    del input_image  # unused by the PyTorch forward as well
    b, N, _ = V.shape
    assert b == 1, "PyTorch GAT layer implicitly assumes batch size 1 (view(1, ...))"
    x = V[0]                                                     # (N, input_feature)

    # Adjacency masks for all heads (identity appended for the self head),
    # shared by every GAT block — built once.
    masks = jnp.concatenate(
        [jnp.transpose(A[0], (1, 0, 2)), jnp.eye(N, dtype=jnp.float32)[None]], axis=0)
    il, ir = _pair_gather_indices(N)

    # Input node embedding (Linear + BN(eval) folded + LeakyReLU).
    x = linear_lrelu(x, params["emb0"]["w"], params["emb0"]["b"])      # (N, 128)

    # Dense GCN block: 3 layers with feature concatenation + squeeze block.
    for layer_p in params["dense"]["layers"]:
        upd = gat_block(layer_p, x, masks, il, ir)
        x = jnp.concatenate([x, upd], axis=-1)
    x = gat_block(params["dense"]["squeeze_block"], x, masks, il, ir)  # (N, 128)

    # Final standalone GAT layer (with residual, in_f == out_f).
    x = gat_block(params["gat"], x, masks, il, ir)                     # (N, 128)

    # Fused tail: emb1 + emb2 + formal/final heads + attention pooling + cls.
    out_formal, out_final, out_cls = tail_forward(params, x)
    return out_formal[None], out_final[None], out_cls


# ---------------------------------- main ----------------------------------

if __name__ == "__main__":
    key = jax.random.PRNGKey(0)
    k_param, k_v, k_a, k_img = jax.random.split(key, 4)

    B, N = 1, 8                     # batch must be 1 (implied by the torch code)
    input_feature = 16
    no_A = 2
    class_formal_key = 7
    num_classification = 3

    params = init_params(k_param, input_feature, no_A, class_formal_key, num_classification)

    V = jax.random.normal(k_v, (B, N, input_feature), jnp.float32)
    A = (jax.random.uniform(k_a, (B, N, no_A, N)) > 0.5).astype(jnp.float32)
    input_image = jax.random.normal(k_img, (B, 3, 16, 16), jnp.float32)  # unused

    fwd = jax.jit(backbone_forward)
    out_formal, out_final, out_cls = fwd(params, input_image, V, A)
    jax.block_until_ready((out_formal, out_final, out_cls))

    assert out_formal.shape == (B, N, class_formal_key)
    assert out_final.shape == (B, N, 2 * class_formal_key - 1)
    assert out_cls.shape == (B, num_classification)
    print("KERNEL_OK")
</pallas_src>

<mosaic_0001>
module attributes {stable_mosaic.version = 11 : i64} {
  func.func @_linear_lrelu_kernel(%arg0: memref<8x16xf32, #tpu.memory_space<vmem>>, %arg1: memref<16x128xf32, #tpu.memory_space<vmem>>, %arg2: memref<1x128xf32, #tpu.memory_space<vmem>>, %arg3: memref<8x128xf32, #tpu.memory_space<vmem>>) attributes {dimension_semantics = [], scalar_prefetch = 0 : i64, scratch_operands = 0 : i64, tpu.core_type = #tpu.core_type<tc>} {
    %c0 = arith.constant 0 : index
    %c0_0 = arith.constant 0 : index
    %0 = vector.load %arg0[%c0, %c0_0] : memref<8x16xf32, #tpu.memory_space<vmem>>, vector<8x16xf32>
    %c0_1 = arith.constant 0 : index
    %c0_2 = arith.constant 0 : index
    %1 = vector.load %arg1[%c0_1, %c0_2] : memref<16x128xf32, #tpu.memory_space<vmem>>, vector<16x128xf32>
    %cst = arith.constant dense<0.000000e+00> : vector<8x128xf32>
    %2 = tpu.matmul %0, %1, %cst {dimension_numbers = #tpu.dot_dimension_numbers<[1], [0], [0], [1], [0, 0, 1, 1], [], []>} : vector<8x16xf32>, vector<16x128xf32>, vector<8x128xf32> -> vector<8x128xf32>
    %c0_3 = arith.constant 0 : index
    %c0_4 = arith.constant 0 : index
    %3 = vector.load %arg2[%c0_3, %c0_4] : memref<1x128xf32, #tpu.memory_space<vmem>>, vector<1x128xf32>
    %4 = vector.broadcast %3 : vector<1x128xf32> to vector<8x128xf32>
    %5 = arith.addf %2, %4 : vector<8x128xf32>
    %cst_5 = arith.constant 0.000000e+00 : f32
    %6 = vector.broadcast %cst_5 : f32 to vector<8x128xf32>
    %7 = arith.cmpf ogt, %5, %6 : vector<8x128xf32>
    %cst_6 = arith.constant 0.00999999977 : f32
    %8 = vector.broadcast %cst_6 : f32 to vector<8x128xf32>
    %9 = arith.mulf %8, %5 : vector<8x128xf32>
    %10 = arith.select %7, %5, %9 : vector<8x128xi1>, vector<8x128xf32>
    %c0_7 = arith.constant 0 : index
    %c0_8 = arith.constant 0 : index
    %11 = vector.load %arg3[%c0_7, %c0_8] : memref<8x128xf32, #tpu.memory_space<vmem>>, vector<8x128xf32>
    tpu.vector_store %arg3[%c0_7, %c0_8], %10 {strides = array<i32>} : memref<8x128xf32, #tpu.memory_space<vmem>>, vector<8x128xf32>,
    return
  }
}

module attributes {stable_mosaic.version = 11 : i64} {
  func.func @_gat_block_kernel(%arg0: memref<8x256xf32, #tpu.memory_space<vmem>>, %arg1: memref<256x384xf32, #tpu.memory_space<vmem>>, %arg2: memref<3x8x8xf32, #tpu.memory_space<vmem>>, %arg3: memref<3x8x8xf32, #tpu.memory_space<vmem>>, %arg4: memref<384x128xf32, #tpu.memory_space<vmem>>, %arg5: memref<1x128xf32, #tpu.memory_space<vmem>>, %arg6: memref<8x128xf32, #tpu.memory_space<vmem>>) attributes {dimension_semantics = [], scalar_prefetch = 0 : i64, scratch_operands = 0 : i64, tpu.core_type = #tpu.core_type<tc>} {
    %c0 = arith.constant 0 : index
    %c0_0 = arith.constant 0 : index
    %0 = vector.load %arg0[%c0, %c0_0] : memref<8x256xf32, #tpu.memory_space<vmem>>, vector<8x256xf32>
    %c0_1 = arith.constant 0 : index
    %c0_2 = arith.constant 0 : index
    %1 = vector.load %arg1[%c0_1, %c0_2] : memref<256x384xf32, #tpu.memory_space<vmem>>, vector<256x384xf32>
    %cst = arith.constant dense<0.000000e+00> : vector<8x384xf32>
    %2 = tpu.matmul %0, %1, %cst {dimension_numbers = #tpu.dot_dimension_numbers<[1], [0], [0], [1], [0, 0, 1, 1], [], []>} : vector<8x256xf32>, vector<256x384xf32>, vector<8x384xf32> -> vector<8x384xf32>
    %c0_3 = arith.constant 0 : index
    %c0_4 = arith.constant 0 : index
    %c0_5 = arith.constant 0 : index
    %3 = vector.load %arg2[%c0_3, %c0_4, %c0_5] : memref<3x8x8xf32, #tpu.memory_space<vmem>>, vector<1x8x8xf32>
    %4 = vector.shape_cast %3 : vector<1x8x8xf32> to vector<8x8xf32>
    %cst_6 = arith.constant 0.000000e+00 : f32
    %5 = vector.broadcast %cst_6 : f32 to vector<8x8xf32>
    %6 = arith.cmpf ogt, %4, %5 : vector<8x8xf32>
    %cst_7 = arith.constant 0.00999999977 : f32
    %7 = vector.broadcast %cst_7 : f32 to vector<8x8xf32>
    %8 = arith.mulf %7, %4 : vector<8x8xf32>
    %9 = arith.select %6, %4, %8 : vector<8x8xi1>, vector<8x8xf32>
    %c0_8 = arith.constant 0 : index
    %c0_9 = arith.constant 0 : index
    %c0_10 = arith.constant 0 : index
    %10 = vector.load %arg3[%c0_8, %c0_9, %c0_10] : memref<3x8x8xf32, #tpu.memory_space<vmem>>, vector<1x8x8xf32>
    %11 = vector.shape_cast %10 : vector<1x8x8xf32> to vector<8x8xf32>
    %cst_11 = arith.constant 0.000000e+00 : f32
    %12 = vector.broadcast %cst_11 : f32 to vector<8x8xf32>
    %13 = arith.cmpf ogt, %11, %12 : vector<8x8xf32>
    %cst_12 = arith.constant -9.000000e+15 : f32
    %14 = vector.broadcast %cst_12 : f32 to vector<8x8xf32>
    %15 = arith.select %13, %9, %14 : vector<8x8xi1>, vector<8x8xf32>
    %cst_13 = arith.constant dense<0xFF800000> : vector<8xf32>
    %16 = vector.multi_reduction <maximumf>, %15, %cst_13 [1] : vector<8x8xf32> to vector<8xf32>
    %17 = vector.shape_cast %16 : vector<8xf32> to vector<8x1xf32>
    %18 = vector.broadcast %17 : vector<8x1xf32> to vector<8x8xf32>
    %19 = arith.subf %15, %18 : vector<8x8xf32>
    %20 = math.exp %19 : vector<8x8xf32>
    %cst_14 = arith.constant dense<0.000000e+00> : vector<8xf32>
    %21 = vector.multi_reduction <add>, %20, %cst_14 [1] : vector<8x8xf32> to vector<8xf32>
    %22 = vector.shape_cast %21 : vector<8xf32> to vector<8x1xf32>
    %23 = vector.broadcast %22 : vector<8x1xf32> to vector<8x8xf32>
    %24 = arith.divf %20, %23 : vector<8x8xf32>
    %25 = vector.extract_strided_slice %2 {offsets = [0, 0], sizes = [8, 128], strides = [1, 1]} : vector<8x384xf32> to vector<8x128xf32>
    %cst_15 = arith.constant dense<0.000000e+00> : vector<8x128xf32>
    %26 = tpu.matmul %24, %25, %cst_15 {dimension_numbers = #tpu.dot_dimension_numbers<[1], [0], [0], [1], [0, 0, 1, 1], [], []>} : vector<8x8xf32>, vector<8x128xf32>, vector<8x128xf32> -> vector<8x128xf32>
    %c0_16 = arith.constant 0 : index
    %c0_17 = arith.constant 0 : index
    %27 = vector.load %arg4[%c0_16, %c0_17] : memref<384x128xf32, #tpu.memory_space<vmem>>, vector<128x128xf32>
    %cst_18 = arith.constant dense<0.000000e+00> : vector<8x128xf32>
    %28 = tpu.matmul %26, %27, %cst_18 {dimension_numbers = #tpu.dot_dimension_numbers<[1], [0], [0], [1], [0, 0, 1, 1], [], []>} : vector<8x128xf32>, vector<128x128xf32>, vector<8x128xf32> -> vector<8x128xf32>
    %c1 = arith.constant 1 : index
    %c0_19 = arith.constant 0 : index
    %c0_20 = arith.constant 0 : index
    %29 = vector.load %arg2[%c1, %c0_19, %c0_20] : memref<3x8x8xf32, #tpu.memory_space<vmem>>, vector<1x8x8xf32>
    %30 = vector.shape_cast %29 : vector<1x8x8xf32> to vector<8x8xf32>
    %cst_21 = arith.constant 0.000000e+00 : f32
    %31 = vector.broadcast %cst_21 : f32 to vector<8x8xf32>
    %32 = arith.cmpf ogt, %30, %31 : vector<8x8xf32>
    %cst_22 = arith.constant 0.00999999977 : f32
    %33 = vector.broadcast %cst_22 : f32 to vector<8x8xf32>
    %34 = arith.mulf %33, %30 : vector<8x8xf32>
    %35 = arith.select %32, %30, %34 : vector<8x8xi1>, vector<8x8xf32>
    %c1_23 = arith.constant 1 : index
    %c0_24 = arith.constant 0 : index
    %c0_25 = arith.constant 0 : index
    %36 = vector.load %arg3[%c1_23, %c0_24, %c0_25] : memref<3x8x8xf32, #tpu.memory_space<vmem>>, vector<1x8x8xf32>
    %37 = vector.shape_cast %36 : vector<1x8x8xf32> to vector<8x8xf32>
    %cst_26 = arith.constant 0.000000e+00 : f32
    %38 = vector.broadcast %cst_26 : f32 to vector<8x8xf32>
    %39 = arith.cmpf ogt, %37, %38 : vector<8x8xf32>
    %cst_27 = arith.constant -9.000000e+15 : f32
    %40 = vector.broadcast %cst_27 : f32 to vector<8x8xf32>
    %41 = arith.select %39, %35, %40 : vector<8x8xi1>, vector<8x8xf32>
    %cst_28 = arith.constant dense<0xFF800000> : vector<8xf32>
    %42 = vector.multi_reduction <maximumf>, %41, %cst_28 [1] : vector<8x8xf32> to vector<8xf32>
    %43 = vector.shape_cast %42 : vector<8xf32> to vector<8x1xf32>
    %44 = vector.broadcast %43 : vector<8x1xf32> to vector<8x8xf32>
    %45 = arith.subf %41, %44 : vector<8x8xf32>
    %46 = math.exp %45 : vector<8x8xf32>
    %cst_29 = arith.constant dense<0.000000e+00> : vector<8xf32>
    %47 = vector.multi_reduction <add>, %46, %cst_29 [1] : vector<8x8xf32> to vector<8xf32>
    %48 = vector.shape_cast %47 : vector<8xf32> to vector<8x1xf32>
    %49 = vector.broadcast %48 : vector<8x1xf32> to vector<8x8xf32>
    %50 = arith.divf %46, %49 : vector<8x8xf32>
    %51 = vector.extract_strided_slice %2 {offsets = [0, 128], sizes = [8, 128], strides = [1, 1]} : vector<8x384xf32> to vector<8x128xf32>
    %cst_30 = arith.constant dense<0.000000e+00> : vector<8x128xf32>
    %52 = tpu.matmul %50, %51, %cst_30 {dimension_numbers = #tpu.dot_dimension_numbers<[1], [0], [0], [1], [0, 0, 1, 1], [], []>} : vector<8x8xf32>, vector<8x128xf32>, vector<8x128xf32> -> vector<8x128xf32>
    %c128 = arith.constant 128 : index
    %c0_31 = arith.constant 0 : index
    %53 = vector.load %arg4[%c128, %c0_31] : memref<384x128xf32, #tpu.memory_space<vmem>>, vector<128x128xf32>
    %cst_32 = arith.constant dense<0.000000e+00> : vector<8x128xf32>
    %54 = tpu.matmul %52, %53, %cst_32 {dimension_numbers = #tpu.dot_dimension_numbers<[1], [0], [0], [1], [0, 0, 1, 1], [], []>} : vector<8x128xf32>, vector<128x128xf32>, vector<8x128xf32> -> vector<8x128xf32>
    %55 = arith.addf %28, %54 : vector<8x128xf32>
    %c2 = arith.constant 2 : index
    %c0_33 = arith.constant 0 : index
    %c0_34 = arith.constant 0 : index
    %56 = vector.load %arg2[%c2, %c0_33, %c0_34] : memref<3x8x8xf32, #tpu.memory_space<vmem>>, vector<1x8x8xf32>
    %57 = vector.shape_cast %56 : vector<1x8x8xf32> to vector<8x8xf32>
    %cst_35 = arith.constant 0.000000e+00 : f32
    %58 = vector.broadcast %cst_35 : f32 to vector<8x8xf32>
    %59 = arith.cmpf ogt, %57, %58 : vector<8x8xf32>
    %cst_36 = arith.constant 0.00999999977 : f32
    %60 = vector.broadcast %cst_36 : f32 to vector<8x8xf32>
    %61 = arith.mulf %60, %57 : vector<8x8xf32>
    %62 = arith.select %59, %57, %61 : vector<8x8xi1>, vector<8x8xf32>
    %c2_37 = arith.constant 2 : index
    %c0_38 = arith.constant 0 : index
    %c0_39 = arith.constant 0 : index
    %63 = vector.load %arg3[%c2_37, %c0_38, %c0_39] : memref<3x8x8xf32, #tpu.memory_space<vmem>>, vector<1x8x8xf32>
    %64 = vector.shape_cast %63 : vector<1x8x8xf32> to vector<8x8xf32>
    %cst_40 = arith.constant 0.000000e+00 : f32
    %65 = vector.broadcast %cst_40 : f32 to vector<8x8xf32>
    %66 = arith.cmpf ogt, %64, %65 : vector<8x8xf32>
    %cst_41 = arith.constant -9.000000e+15 : f32
    %67 = vector.broadcast %cst_41 : f32 to vector<8x8xf32>
    %68 = arith.select %66, %62, %67 : vector<8x8xi1>, vector<8x8xf32>
    %cst_42 = arith.constant dense<0xFF800000> : vector<8xf32>
    %69 = vector.multi_reduction <maximumf>, %68, %cst_42 [1] : vector<8x8xf32> to vector<8xf32>
    %70 = vector.shape_cast %69 : vector<8xf32> to vector<8x1xf32>
    %71 = vector.broadcast %70 : vector<8x1xf32> to vector<8x8xf32>
    %72 = arith.subf %68, %71 : vector<8x8xf32>
    %73 = math.exp %72 : vector<8x8xf32>
    %cst_43 = arith.constant dense<0.000000e+00> : vector<8xf32>
    %74 = vector.multi_reduction <add>, %73, %cst_43 [1] : vector<8x8xf32> to vector<8xf32>
    %75 = vector.shape_cast %74 : vector<8xf32> to vector<8x1xf32>
    %76 = vector.broadcast %75 : vector<8x1xf32> to vector<8x8xf32>
    %77 = arith.divf %73, %76 : vector<8x8xf32>
    %78 = vector.extract_strided_slice %2 {offsets = [0, 256], sizes = [8, 128], strides = [1, 1]} : vector<8x384xf32> to vector<8x128xf32>
    %cst_44 = arith.constant dense<0.000000e+00> : vector<8x128xf32>
    %79 = tpu.matmul %77, %78, %cst_44 {dimension_numbers = #tpu.dot_dimension_numbers<[1], [0], [0], [1], [0, 0, 1, 1], [], []>} : vector<8x8xf32>, vector<8x128xf32>, vector<8x128xf32> -> vector<8x128xf32>
    %c256 = arith.constant 256 : index
    %c0_45 = arith.constant 0 : index
    %80 = vector.load %arg4[%c256, %c0_45] : memref<384x128xf32, #tpu.memory_space<vmem>>, vector<128x128xf32>
    %cst_46 = arith.constant dense<0.000000e+00> : vector<8x128xf32>
    %81 = tpu.matmul %79, %80, %cst_46 {dimension_numbers = #tpu.dot_dimension_numbers<[1], [0], [0], [1], [0, 0, 1, 1], [], []>} : vector<8x128xf32>, vector<128x128xf32>, vector<8x128xf32> -> vector<8x128xf32>
    %82 = arith.addf %55, %81 : vector<8x128xf32>
    %c0_47 = arith.constant 0 : index
    %c0_48 = arith.constant 0 : index
    %83 = vector.load %arg5[%c0_47, %c0_48] : memref<1x128xf32, #tpu.memory_space<vmem>>, vector<1x128xf32>
    %84 = vector.broadcast %83 : vector<1x128xf32> to vector<8x128xf32>
    %85 = arith.addf %82, %84 : vector<8x128xf32>
    %cst_49 = arith.constant 0.000000e+00 : f32
    %86 = vector.broadcast %cst_49 : f32 to vector<8x128xf32>
    %87 = arith.cmpf ogt, %85, %86 : vector<8x128xf32>
    %cst_50 = arith.constant 0.00999999977 : f32
    %88 = vector.broadcast %cst_50 : f32 to vector<8x128xf32>
    %89 = arith.mulf %88, %85 : vector<8x128xf32>
    %90 = arith.select %87, %85, %89 : vector<8x128xi1>, vector<8x128xf32>
    %c0_51 = arith.constant 0 : index
    %c0_52 = arith.constant 0 : index
    %91 = vector.load %arg6[%c0_51, %c0_52] : memref<8x128xf32, #tpu.memory_space<vmem>>, vector<8x128xf32>
    tpu.vector_store %arg6[%c0_51, %c0_52], %90 {strides = array<i32>} : memref<8x128xf32, #tpu.memory_space<vmem>>, vector<8x128xf32>,
    return
  }
}

module attributes {stable_mosaic.version = 11 : i64} {
  func.func @_gat_block_kernel(%arg0: memref<8x128xf32, #tpu.memory_space<vmem>>, %arg1: memref<128x384xf32, #tpu.memory_space<vmem>>, %arg2: memref<3x8x8xf32, #tpu.memory_space<vmem>>, %arg3: memref<3x8x8xf32, #tpu.memory_space<vmem>>, %arg4: memref<384x128xf32, #tpu.memory_space<vmem>>, %arg5: memref<1x128xf32, #tpu.memory_space<vmem>>, %arg6: memref<8x128xf32, #tpu.memory_space<vmem>>) attributes {dimension_semantics = [], scalar_prefetch = 0 : i64, scratch_operands = 0 : i64, tpu.core_type = #tpu.core_type<tc>} {
    %c0 = arith.constant 0 : index
    %c0_0 = arith.constant 0 : index
    %0 = vector.load %arg0[%c0, %c0_0] : memref<8x128xf32, #tpu.memory_space<vmem>>, vector<8x128xf32>
    %c0_1 = arith.constant 0 : index
    %c0_2 = arith.constant 0 : index
    %1 = vector.load %arg1[%c0_1, %c0_2] : memref<128x384xf32, #tpu.memory_space<vmem>>, vector<128x384xf32>
    %cst = arith.constant dense<0.000000e+00> : vector<8x384xf32>
    %2 = tpu.matmul %0, %1, %cst {dimension_numbers = #tpu.dot_dimension_numbers<[1], [0], [0], [1], [0, 0, 1, 1], [], []>} : vector<8x128xf32>, vector<128x384xf32>, vector<8x384xf32> -> vector<8x384xf32>
    %c0_3 = arith.constant 0 : index
    %c0_4 = arith.constant 0 : index
    %c0_5 = arith.constant 0 : index
    %3 = vector.load %arg2[%c0_3, %c0_4, %c0_5] : memref<3x8x8xf32, #tpu.memory_space<vmem>>, vector<1x8x8xf32>
    %4 = vector.shape_cast %3 : vector<1x8x8xf32> to vector<8x8xf32>
    %cst_6 = arith.constant 0.000000e+00 : f32
    %5 = vector.broadcast %cst_6 : f32 to vector<8x8xf32>
    %6 = arith.cmpf ogt, %4, %5 : vector<8x8xf32>
    %cst_7 = arith.constant 0.00999999977 : f32
    %7 = vector.broadcast %cst_7 : f32 to vector<8x8xf32>
    %8 = arith.mulf %7, %4 : vector<8x8xf32>
    %9 = arith.select %6, %4, %8 : vector<8x8xi1>, vector<8x8xf32>
    %c0_8 = arith.constant 0 : index
    %c0_9 = arith.constant 0 : index
    %c0_10 = arith.constant 0 : index
    %10 = vector.load %arg3[%c0_8, %c0_9, %c0_10] : memref<3x8x8xf32, #tpu.memory_space<vmem>>, vector<1x8x8xf32>
    %11 = vector.shape_cast %10 : vector<1x8x8xf32> to vector<8x8xf32>
    %cst_11 = arith.constant 0.000000e+00 : f32
    %12 = vector.broadcast %cst_11 : f32 to vector<8x8xf32>
    %13 = arith.cmpf ogt, %11, %12 : vector<8x8xf32>
    %cst_12 = arith.constant -9.000000e+15 : f32
    %14 = vector.broadcast %cst_12 : f32 to vector<8x8xf32>
    %15 = arith.select %13, %9, %14 : vector<8x8xi1>, vector<8x8xf32>
    %cst_13 = arith.constant dense<0xFF800000> : vector<8xf32>
    %16 = vector.multi_reduction <maximumf>, %15, %cst_13 [1] : vector<8x8xf32> to vector<8xf32>
    %17 = vector.shape_cast %16 : vector<8xf32> to vector<8x1xf32>
    %18 = vector.broadcast %17 : vector<8x1xf32> to vector<8x8xf32>
    %19 = arith.subf %15, %18 : vector<8x8xf32>
    %20 = math.exp %19 : vector<8x8xf32>
    %cst_14 = arith.constant dense<0.000000e+00> : vector<8xf32>
    %21 = vector.multi_reduction <add>, %20, %cst_14 [1] : vector<8x8xf32> to vector<8xf32>
    %22 = vector.shape_cast %21 : vector<8xf32> to vector<8x1xf32>
    %23 = vector.broadcast %22 : vector<8x1xf32> to vector<8x8xf32>
    %24 = arith.divf %20, %23 : vector<8x8xf32>
    %25 = vector.extract_strided_slice %2 {offsets = [0, 0], sizes = [8, 128], strides = [1, 1]} : vector<8x384xf32> to vector<8x128xf32>
    %cst_15 = arith.constant dense<0.000000e+00> : vector<8x128xf32>
    %26 = tpu.matmul %24, %25, %cst_15 {dimension_numbers = #tpu.dot_dimension_numbers<[1], [0], [0], [1], [0, 0, 1, 1], [], []>} : vector<8x8xf32>, vector<8x128xf32>, vector<8x128xf32> -> vector<8x128xf32>
    %c0_16 = arith.constant 0 : index
    %c0_17 = arith.constant 0 : index
    %27 = vector.load %arg4[%c0_16, %c0_17] : memref<384x128xf32, #tpu.memory_space<vmem>>, vector<128x128xf32>
    %cst_18 = arith.constant dense<0.000000e+00> : vector<8x128xf32>
    %28 = tpu.matmul %26, %27, %cst_18 {dimension_numbers = #tpu.dot_dimension_numbers<[1], [0], [0], [1], [0, 0, 1, 1], [], []>} : vector<8x128xf32>, vector<128x128xf32>, vector<8x128xf32> -> vector<8x128xf32>
    %c1 = arith.constant 1 : index
    %c0_19 = arith.constant 0 : index
    %c0_20 = arith.constant 0 : index
    %29 = vector.load %arg2[%c1, %c0_19, %c0_20] : memref<3x8x8xf32, #tpu.memory_space<vmem>>, vector<1x8x8xf32>
    %30 = vector.shape_cast %29 : vector<1x8x8xf32> to vector<8x8xf32>
    %cst_21 = arith.constant 0.000000e+00 : f32
    %31 = vector.broadcast %cst_21 : f32 to vector<8x8xf32>
    %32 = arith.cmpf ogt, %30, %31 : vector<8x8xf32>
    %cst_22 = arith.constant 0.00999999977 : f32
    %33 = vector.broadcast %cst_22 : f32 to vector<8x8xf32>
    %34 = arith.mulf %33, %30 : vector<8x8xf32>
    %35 = arith.select %32, %30, %34 : vector<8x8xi1>, vector<8x8xf32>
    %c1_23 = arith.constant 1 : index
    %c0_24 = arith.constant 0 : index
    %c0_25 = arith.constant 0 : index
    %36 = vector.load %arg3[%c1_23, %c0_24, %c0_25] : memref<3x8x8xf32, #tpu.memory_space<vmem>>, vector<1x8x8xf32>
    %37 = vector.shape_cast %36 : vector<1x8x8xf32> to vector<8x8xf32>
    %cst_26 = arith.constant 0.000000e+00 : f32
    %38 = vector.broadcast %cst_26 : f32 to vector<8x8xf32>
    %39 = arith.cmpf ogt, %37, %38 : vector<8x8xf32>
    %cst_27 = arith.constant -9.000000e+15 : f32
    %40 = vector.broadcast %cst_27 : f32 to vector<8x8xf32>
    %41 = arith.select %39, %35, %40 : vector<8x8xi1>, vector<8x8xf32>
    %cst_28 = arith.constant dense<0xFF800000> : vector<8xf32>
    %42 = vector.multi_reduction <maximumf>, %41, %cst_28 [1] : vector<8x8xf32> to vector<8xf32>
    %43 = vector.shape_cast %42 : vector<8xf32> to vector<8x1xf32>
    %44 = vector.broadcast %43 : vector<8x1xf32> to vector<8x8xf32>
    %45 = arith.subf %41, %44 : vector<8x8xf32>
    %46 = math.exp %45 : vector<8x8xf32>
    %cst_29 = arith.constant dense<0.000000e+00> : vector<8xf32>
    %47 = vector.multi_reduction <add>, %46, %cst_29 [1] : vector<8x8xf32> to vector<8xf32>
    %48 = vector.shape_cast %47 : vector<8xf32> to vector<8x1xf32>
    %49 = vector.broadcast %48 : vector<8x1xf32> to vector<8x8xf32>
    %50 = arith.divf %46, %49 : vector<8x8xf32>
    %51 = vector.extract_strided_slice %2 {offsets = [0, 128], sizes = [8, 128], strides = [1, 1]} : vector<8x384xf32> to vector<8x128xf32>
    %cst_30 = arith.constant dense<0.000000e+00> : vector<8x128xf32>
    %52 = tpu.matmul %50, %51, %cst_30 {dimension_numbers = #tpu.dot_dimension_numbers<[1], [0], [0], [1], [0, 0, 1, 1], [], []>} : vector<8x8xf32>, vector<8x128xf32>, vector<8x128xf32> -> vector<8x128xf32>
    %c128 = arith.constant 128 : index
    %c0_31 = arith.constant 0 : index
    %53 = vector.load %arg4[%c128, %c0_31] : memref<384x128xf32, #tpu.memory_space<vmem>>, vector<128x128xf32>
    %cst_32 = arith.constant dense<0.000000e+00> : vector<8x128xf32>
    %54 = tpu.matmul %52, %53, %cst_32 {dimension_numbers = #tpu.dot_dimension_numbers<[1], [0], [0], [1], [0, 0, 1, 1], [], []>} : vector<8x128xf32>, vector<128x128xf32>, vector<8x128xf32> -> vector<8x128xf32>
    %55 = arith.addf %28, %54 : vector<8x128xf32>
    %c2 = arith.constant 2 : index
    %c0_33 = arith.constant 0 : index
    %c0_34 = arith.constant 0 : index
    %56 = vector.load %arg2[%c2, %c0_33, %c0_34] : memref<3x8x8xf32, #tpu.memory_space<vmem>>, vector<1x8x8xf32>
    %57 = vector.shape_cast %56 : vector<1x8x8xf32> to vector<8x8xf32>
    %cst_35 = arith.constant 0.000000e+00 : f32
    %58 = vector.broadcast %cst_35 : f32 to vector<8x8xf32>
    %59 = arith.cmpf ogt, %57, %58 : vector<8x8xf32>
    %cst_36 = arith.constant 0.00999999977 : f32
    %60 = vector.broadcast %cst_36 : f32 to vector<8x8xf32>
    %61 = arith.mulf %60, %57 : vector<8x8xf32>
    %62 = arith.select %59, %57, %61 : vector<8x8xi1>, vector<8x8xf32>
    %c2_37 = arith.constant 2 : index
    %c0_38 = arith.constant 0 : index
    %c0_39 = arith.constant 0 : index
    %63 = vector.load %arg3[%c2_37, %c0_38, %c0_39] : memref<3x8x8xf32, #tpu.memory_space<vmem>>, vector<1x8x8xf32>
    %64 = vector.shape_cast %63 : vector<1x8x8xf32> to vector<8x8xf32>
    %cst_40 = arith.constant 0.000000e+00 : f32
    %65 = vector.broadcast %cst_40 : f32 to vector<8x8xf32>
    %66 = arith.cmpf ogt, %64, %65 : vector<8x8xf32>
    %cst_41 = arith.constant -9.000000e+15 : f32
    %67 = vector.broadcast %cst_41 : f32 to vector<8x8xf32>
    %68 = arith.select %66, %62, %67 : vector<8x8xi1>, vector<8x8xf32>
    %cst_42 = arith.constant dense<0xFF800000> : vector<8xf32>
    %69 = vector.multi_reduction <maximumf>, %68, %cst_42 [1] : vector<8x8xf32> to vector<8xf32>
    %70 = vector.shape_cast %69 : vector<8xf32> to vector<8x1xf32>
    %71 = vector.broadcast %70 : vector<8x1xf32> to vector<8x8xf32>
    %72 = arith.subf %68, %71 : vector<8x8xf32>
    %73 = math.exp %72 : vector<8x8xf32>
    %cst_43 = arith.constant dense<0.000000e+00> : vector<8xf32>
    %74 = vector.multi_reduction <add>, %73, %cst_43 [1] : vector<8x8xf32> to vector<8xf32>
    %75 = vector.shape_cast %74 : vector<8xf32> to vector<8x1xf32>
    %76 = vector.broadcast %75 : vector<8x1xf32> to vector<8x8xf32>
    %77 = arith.divf %73, %76 : vector<8x8xf32>
    %78 = vector.extract_strided_slice %2 {offsets = [0, 256], sizes = [8, 128], strides = [1, 1]} : vector<8x384xf32> to vector<8x128xf32>
    %cst_44 = arith.constant dense<0.000000e+00> : vector<8x128xf32>
    %79 = tpu.matmul %77, %78, %cst_44 {dimension_numbers = #tpu.dot_dimension_numbers<[1], [0], [0], [1], [0, 0, 1, 1], [], []>} : vector<8x8xf32>, vector<8x128xf32>, vector<8x128xf32> -> vector<8x128xf32>
    %c256 = arith.constant 256 : index
    %c0_45 = arith.constant 0 : index
    %80 = vector.load %arg4[%c256, %c0_45] : memref<384x128xf32, #tpu.memory_space<vmem>>, vector<128x128xf32>
    %cst_46 = arith.constant dense<0.000000e+00> : vector<8x128xf32>
    %81 = tpu.matmul %79, %80, %cst_46 {dimension_numbers = #tpu.dot_dimension_numbers<[1], [0], [0], [1], [0, 0, 1, 1], [], []>} : vector<8x128xf32>, vector<128x128xf32>, vector<8x128xf32> -> vector<8x128xf32>
    %82 = arith.addf %55, %81 : vector<8x128xf32>
    %c0_47 = arith.constant 0 : index
    %c0_48 = arith.constant 0 : index
    %83 = vector.load %arg5[%c0_47, %c0_48] : memref<1x128xf32, #tpu.memory_space<vmem>>, vector<1x128xf32>
    %84 = vector.broadcast %83 : vector<1x128xf32> to vector<8x128xf32>
    %85 = arith.addf %82, %84 : vector<8x128xf32>
    %cst_49 = arith.constant 0.000000e+00 : f32
    %86 = vector.broadcast %cst_49 : f32 to vector<8x128xf32>
    %87 = arith.cmpf ogt, %85, %86 : vector<8x128xf32>
    %cst_50 = arith.constant 0.00999999977 : f32
    %88 = vector.broadcast %cst_50 : f32 to vector<8x128xf32>
    %89 = arith.mulf %88, %85 : vector<8x128xf32>
    %90 = arith.select %87, %85, %89 : vector<8x128xi1>, vector<8x128xf32>
    %91 = arith.addf %90, %0 : vector<8x128xf32>
    %c0_51 = arith.constant 0 : index
    %c0_52 = arith.constant 0 : index
    %92 = vector.load %arg6[%c0_51, %c0_52] : memref<8x128xf32, #tpu.memory_space<vmem>>, vector<8x128xf32>
    tpu.vector_store %arg6[%c0_51, %c0_52], %91 {strides = array<i32>} : memref<8x128xf32, #tpu.memory_space<vmem>>, vector<8x128xf32>,
    return
  }
}

module attributes {stable_mosaic.version = 11 : i64} {
  func.func @_gat_block_kernel(%arg0: memref<8x384xf32, #tpu.memory_space<vmem>>, %arg1: memref<384x384xf32, #tpu.memory_space<vmem>>, %arg2: memref<3x8x8xf32, #tpu.memory_space<vmem>>, %arg3: memref<3x8x8xf32, #tpu.memory_space<vmem>>, %arg4: memref<384x128xf32, #tpu.memory_space<vmem>>, %arg5: memref<1x128xf32, #tpu.memory_space<vmem>>, %arg6: memref<8x128xf32, #tpu.memory_space<vmem>>) attributes {dimension_semantics = [], scalar_prefetch = 0 : i64, scratch_operands = 0 : i64, tpu.core_type = #tpu.core_type<tc>} {
    %c0 = arith.constant 0 : index
    %c0_0 = arith.constant 0 : index
    %0 = vector.load %arg0[%c0, %c0_0] : memref<8x384xf32, #tpu.memory_space<vmem>>, vector<8x384xf32>
    %c0_1 = arith.constant 0 : index
    %c0_2 = arith.constant 0 : index
    %1 = vector.load %arg1[%c0_1, %c0_2] : memref<384x384xf32, #tpu.memory_space<vmem>>, vector<384x384xf32>
    %cst = arith.constant dense<0.000000e+00> : vector<8x384xf32>
    %2 = tpu.matmul %0, %1, %cst {dimension_numbers = #tpu.dot_dimension_numbers<[1], [0], [0], [1], [0, 0, 1, 1], [], []>} : vector<8x384xf32>, vector<384x384xf32>, vector<8x384xf32> -> vector<8x384xf32>
    %c0_3 = arith.constant 0 : index
    %c0_4 = arith.constant 0 : index
    %c0_5 = arith.constant 0 : index
    %3 = vector.load %arg2[%c0_3, %c0_4, %c0_5] : memref<3x8x8xf32, #tpu.memory_space<vmem>>, vector<1x8x8xf32>
    %4 = vector.shape_cast %3 : vector<1x8x8xf32> to vector<8x8xf32>
    %cst_6 = arith.constant 0.000000e+00 : f32
    %5 = vector.broadcast %cst_6 : f32 to vector<8x8xf32>
    %6 = arith.cmpf ogt, %4, %5 : vector<8x8xf32>
    %cst_7 = arith.constant 0.00999999977 : f32
    %7 = vector.broadcast %cst_7 : f32 to vector<8x8xf32>
    %8 = arith.mulf %7, %4 : vector<8x8xf32>
    %9 = arith.select %6, %4, %8 : vector<8x8xi1>, vector<8x8xf32>
    %c0_8 = arith.constant 0 : index
    %c0_9 = arith.constant 0 : index
    %c0_10 = arith.constant 0 : index
    %10 = vector.load %arg3[%c0_8, %c0_9, %c0_10] : memref<3x8x8xf32, #tpu.memory_space<vmem>>, vector<1x8x8xf32>
    %11 = vector.shape_cast %10 : vector<1x8x8xf32> to vector<8x8xf32>
    %cst_11 = arith.constant 0.000000e+00 : f32
    %12 = vector.broadcast %cst_11 : f32 to vector<8x8xf32>
    %13 = arith.cmpf ogt, %11, %12 : vector<8x8xf32>
    %cst_12 = arith.constant -9.000000e+15 : f32
    %14 = vector.broadcast %cst_12 : f32 to vector<8x8xf32>
    %15 = arith.select %13, %9, %14 : vector<8x8xi1>, vector<8x8xf32>
    %cst_13 = arith.constant dense<0xFF800000> : vector<8xf32>
    %16 = vector.multi_reduction <maximumf>, %15, %cst_13 [1] : vector<8x8xf32> to vector<8xf32>
    %17 = vector.shape_cast %16 : vector<8xf32> to vector<8x1xf32>
    %18 = vector.broadcast %17 : vector<8x1xf32> to vector<8x8xf32>
    %19 = arith.subf %15, %18 : vector<8x8xf32>
    %20 = math.exp %19 : vector<8x8xf32>
    %cst_14 = arith.constant dense<0.000000e+00> : vector<8xf32>
    %21 = vector.multi_reduction <add>, %20, %cst_14 [1] : vector<8x8xf32> to vector<8xf32>
    %22 = vector.shape_cast %21 : vector<8xf32> to vector<8x1xf32>
    %23 = vector.broadcast %22 : vector<8x1xf32> to vector<8x8xf32>
    %24 = arith.divf %20, %23 : vector<8x8xf32>
    %25 = vector.extract_strided_slice %2 {offsets = [0, 0], sizes = [8, 128], strides = [1, 1]} : vector<8x384xf32> to vector<8x128xf32>
    %cst_15 = arith.constant dense<0.000000e+00> : vector<8x128xf32>
    %26 = tpu.matmul %24, %25, %cst_15 {dimension_numbers = #tpu.dot_dimension_numbers<[1], [0], [0], [1], [0, 0, 1, 1], [], []>} : vector<8x8xf32>, vector<8x128xf32>, vector<8x128xf32> -> vector<8x128xf32>
    %c0_16 = arith.constant 0 : index
    %c0_17 = arith.constant 0 : index
    %27 = vector.load %arg4[%c0_16, %c0_17] : memref<384x128xf32, #tpu.memory_space<vmem>>, vector<128x128xf32>
    %cst_18 = arith.constant dense<0.000000e+00> : vector<8x128xf32>
    %28 = tpu.matmul %26, %27, %cst_18 {dimension_numbers = #tpu.dot_dimension_numbers<[1], [0], [0], [1], [0, 0, 1, 1], [], []>} : vector<8x128xf32>, vector<128x128xf32>, vector<8x128xf32> -> vector<8x128xf32>
    %c1 = arith.constant 1 : index
    %c0_19 = arith.constant 0 : index
    %c0_20 = arith.constant 0 : index
    %29 = vector.load %arg2[%c1, %c0_19, %c0_20] : memref<3x8x8xf32, #tpu.memory_space<vmem>>, vector<1x8x8xf32>
    %30 = vector.shape_cast %29 : vector<1x8x8xf32> to vector<8x8xf32>
    %cst_21 = arith.constant 0.000000e+00 : f32
    %31 = vector.broadcast %cst_21 : f32 to vector<8x8xf32>
    %32 = arith.cmpf ogt, %30, %31 : vector<8x8xf32>
    %cst_22 = arith.constant 0.00999999977 : f32
    %33 = vector.broadcast %cst_22 : f32 to vector<8x8xf32>
    %34 = arith.mulf %33, %30 : vector<8x8xf32>
    %35 = arith.select %32, %30, %34 : vector<8x8xi1>, vector<8x8xf32>
    %c1_23 = arith.constant 1 : index
    %c0_24 = arith.constant 0 : index
    %c0_25 = arith.constant 0 : index
    %36 = vector.load %arg3[%c1_23, %c0_24, %c0_25] : memref<3x8x8xf32, #tpu.memory_space<vmem>>, vector<1x8x8xf32>
    %37 = vector.shape_cast %36 : vector<1x8x8xf32> to vector<8x8xf32>
    %cst_26 = arith.constant 0.000000e+00 : f32
    %38 = vector.broadcast %cst_26 : f32 to vector<8x8xf32>
    %39 = arith.cmpf ogt, %37, %38 : vector<8x8xf32>
    %cst_27 = arith.constant -9.000000e+15 : f32
    %40 = vector.broadcast %cst_27 : f32 to vector<8x8xf32>
    %41 = arith.select %39, %35, %40 : vector<8x8xi1>, vector<8x8xf32>
    %cst_28 = arith.constant dense<0xFF800000> : vector<8xf32>
    %42 = vector.multi_reduction <maximumf>, %41, %cst_28 [1] : vector<8x8xf32> to vector<8xf32>
    %43 = vector.shape_cast %42 : vector<8xf32> to vector<8x1xf32>
    %44 = vector.broadcast %43 : vector<8x1xf32> to vector<8x8xf32>
    %45 = arith.subf %41, %44 : vector<8x8xf32>
    %46 = math.exp %45 : vector<8x8xf32>
    %cst_29 = arith.constant dense<0.000000e+00> : vector<8xf32>
    %47 = vector.multi_reduction <add>, %46, %cst_29 [1] : vector<8x8xf32> to vector<8xf32>
    %48 = vector.shape_cast %47 : vector<8xf32> to vector<8x1xf32>
    %49 = vector.broadcast %48 : vector<8x1xf32> to vector<8x8xf32>
    %50 = arith.divf %46, %49 : vector<8x8xf32>
    %51 = vector.extract_strided_slice %2 {offsets = [0, 128], sizes = [8, 128], strides = [1, 1]} : vector<8x384xf32> to vector<8x128xf32>
    %cst_30 = arith.constant dense<0.000000e+00> : vector<8x128xf32>
    %52 = tpu.matmul %50, %51, %cst_30 {dimension_numbers = #tpu.dot_dimension_numbers<[1], [0], [0], [1], [0, 0, 1, 1], [], []>} : vector<8x8xf32>, vector<8x128xf32>, vector<8x128xf32> -> vector<8x128xf32>
    %c128 = arith.constant 128 : index
    %c0_31 = arith.constant 0 : index
    %53 = vector.load %arg4[%c128, %c0_31] : memref<384x128xf32, #tpu.memory_space<vmem>>, vector<128x128xf32>
    %cst_32 = arith.constant dense<0.000000e+00> : vector<8x128xf32>
    %54 = tpu.matmul %52, %53, %cst_32 {dimension_numbers = #tpu.dot_dimension_numbers<[1], [0], [0], [1], [0, 0, 1, 1], [], []>} : vector<8x128xf32>, vector<128x128xf32>, vector<8x128xf32> -> vector<8x128xf32>
    %55 = arith.addf %28, %54 : vector<8x128xf32>
    %c2 = arith.constant 2 : index
    %c0_33 = arith.constant 0 : index
    %c0_34 = arith.constant 0 : index
    %56 = vector.load %arg2[%c2, %c0_33, %c0_34] : memref<3x8x8xf32, #tpu.memory_space<vmem>>, vector<1x8x8xf32>
    %57 = vector.shape_cast %56 : vector<1x8x8xf32> to vector<8x8xf32>
    %cst_35 = arith.constant 0.000000e+00 : f32
    %58 = vector.broadcast %cst_35 : f32 to vector<8x8xf32>
    %59 = arith.cmpf ogt, %57, %58 : vector<8x8xf32>
    %cst_36 = arith.constant 0.00999999977 : f32
    %60 = vector.broadcast %cst_36 : f32 to vector<8x8xf32>
    %61 = arith.mulf %60, %57 : vector<8x8xf32>
    %62 = arith.select %59, %57, %61 : vector<8x8xi1>, vector<8x8xf32>
    %c2_37 = arith.constant 2 : index
    %c0_38 = arith.constant 0 : index
    %c0_39 = arith.constant 0 : index
    %63 = vector.load %arg3[%c2_37, %c0_38, %c0_39] : memref<3x8x8xf32, #tpu.memory_space<vmem>>, vector<1x8x8xf32>
    %64 = vector.shape_cast %63 : vector<1x8x8xf32> to vector<8x8xf32>
    %cst_40 = arith.constant 0.000000e+00 : f32
    %65 = vector.broadcast %cst_40 : f32 to vector<8x8xf32>
    %66 = arith.cmpf ogt, %64, %65 : vector<8x8xf32>
    %cst_41 = arith.constant -9.000000e+15 : f32
    %67 = vector.broadcast %cst_41 : f32 to vector<8x8xf32>
    %68 = arith.select %66, %62, %67 : vector<8x8xi1>, vector<8x8xf32>
    %cst_42 = arith.constant dense<0xFF800000> : vector<8xf32>
    %69 = vector.multi_reduction <maximumf>, %68, %cst_42 [1] : vector<8x8xf32> to vector<8xf32>
    %70 = vector.shape_cast %69 : vector<8xf32> to vector<8x1xf32>
    %71 = vector.broadcast %70 : vector<8x1xf32> to vector<8x8xf32>
    %72 = arith.subf %68, %71 : vector<8x8xf32>
    %73 = math.exp %72 : vector<8x8xf32>
    %cst_43 = arith.constant dense<0.000000e+00> : vector<8xf32>
    %74 = vector.multi_reduction <add>, %73, %cst_43 [1] : vector<8x8xf32> to vector<8xf32>
    %75 = vector.shape_cast %74 : vector<8xf32> to vector<8x1xf32>
    %76 = vector.broadcast %75 : vector<8x1xf32> to vector<8x8xf32>
    %77 = arith.divf %73, %76 : vector<8x8xf32>
    %78 = vector.extract_strided_slice %2 {offsets = [0, 256], sizes = [8, 128], strides = [1, 1]} : vector<8x384xf32> to vector<8x128xf32>
    %cst_44 = arith.constant dense<0.000000e+00> : vector<8x128xf32>
    %79 = tpu.matmul %77, %78, %cst_44 {dimension_numbers = #tpu.dot_dimension_numbers<[1], [0], [0], [1], [0, 0, 1, 1], [], []>} : vector<8x8xf32>, vector<8x128xf32>, vector<8x128xf32> -> vector<8x128xf32>
    %c256 = arith.constant 256 : index
    %c0_45 = arith.constant 0 : index
    %80 = vector.load %arg4[%c256, %c0_45] : memref<384x128xf32, #tpu.memory_space<vmem>>, vector<128x128xf32>
    %cst_46 = arith.constant dense<0.000000e+00> : vector<8x128xf32>
    %81 = tpu.matmul %79, %80, %cst_46 {dimension_numbers = #tpu.dot_dimension_numbers<[1], [0], [0], [1], [0, 0, 1, 1], [], []>} : vector<8x128xf32>, vector<128x128xf32>, vector<8x128xf32> -> vector<8x128xf32>
    %82 = arith.addf %55, %81 : vector<8x128xf32>
    %c0_47 = arith.constant 0 : index
    %c0_48 = arith.constant 0 : index
    %83 = vector.load %arg5[%c0_47, %c0_48] : memref<1x128xf32, #tpu.memory_space<vmem>>, vector<1x128xf32>
    %84 = vector.broadcast %83 : vector<1x128xf32> to vector<8x128xf32>
    %85 = arith.addf %82, %84 : vector<8x128xf32>
    %cst_49 = arith.constant 0.000000e+00 : f32
    %86 = vector.broadcast %cst_49 : f32 to vector<8x128xf32>
    %87 = arith.cmpf ogt, %85, %86 : vector<8x128xf32>
    %cst_50 = arith.constant 0.00999999977 : f32
    %88 = vector.broadcast %cst_50 : f32 to vector<8x128xf32>
    %89 = arith.mulf %88, %85 : vector<8x128xf32>
    %90 = arith.select %87, %85, %89 : vector<8x128xi1>, vector<8x128xf32>
    %c0_51 = arith.constant 0 : index
    %c0_52 = arith.constant 0 : index
    %91 = vector.load %arg6[%c0_51, %c0_52] : memref<8x128xf32, #tpu.memory_space<vmem>>, vector<8x128xf32>
    tpu.vector_store %arg6[%c0_51, %c0_52], %90 {strides = array<i32>} : memref<8x128xf32, #tpu.memory_space<vmem>>, vector<8x128xf32>,
    return
  }
}

module attributes {stable_mosaic.version = 11 : i64} {
  func.func @_gat_block_kernel(%arg0: memref<8x512xf32, #tpu.memory_space<vmem>>, %arg1: memref<512x384xf32, #tpu.memory_space<vmem>>, %arg2: memref<3x8x8xf32, #tpu.memory_space<vmem>>, %arg3: memref<3x8x8xf32, #tpu.memory_space<vmem>>, %arg4: memref<384x128xf32, #tpu.memory_space<vmem>>, %arg5: memref<1x128xf32, #tpu.memory_space<vmem>>, %arg6: memref<8x128xf32, #tpu.memory_space<vmem>>) attributes {dimension_semantics = [], scalar_prefetch = 0 : i64, scratch_operands = 0 : i64, tpu.core_type = #tpu.core_type<tc>} {
    %c0 = arith.constant 0 : index
    %c0_0 = arith.constant 0 : index
    %0 = vector.load %arg0[%c0, %c0_0] : memref<8x512xf32, #tpu.memory_space<vmem>>, vector<8x512xf32>
    %c0_1 = arith.constant 0 : index
    %c0_2 = arith.constant 0 : index
    %1 = vector.load %arg1[%c0_1, %c0_2] : memref<512x384xf32, #tpu.memory_space<vmem>>, vector<512x384xf32>
    %cst = arith.constant dense<0.000000e+00> : vector<8x384xf32>
    %2 = tpu.matmul %0, %1, %cst {dimension_numbers = #tpu.dot_dimension_numbers<[1], [0], [0], [1], [0, 0, 1, 1], [], []>} : vector<8x512xf32>, vector<512x384xf32>, vector<8x384xf32> -> vector<8x384xf32>
    %c0_3 = arith.constant 0 : index
    %c0_4 = arith.constant 0 : index
    %c0_5 = arith.constant 0 : index
    %3 = vector.load %arg2[%c0_3, %c0_4, %c0_5] : memref<3x8x8xf32, #tpu.memory_space<vmem>>, vector<1x8x8xf32>
    %4 = vector.shape_cast %3 : vector<1x8x8xf32> to vector<8x8xf32>
    %cst_6 = arith.constant 0.000000e+00 : f32
    %5 = vector.broadcast %cst_6 : f32 to vector<8x8xf32>
    %6 = arith.cmpf ogt, %4, %5 : vector<8x8xf32>
    %cst_7 = arith.constant 0.00999999977 : f32
    %7 = vector.broadcast %cst_7 : f32 to vector<8x8xf32>
    %8 = arith.mulf %7, %4 : vector<8x8xf32>
    %9 = arith.select %6, %4, %8 : vector<8x8xi1>, vector<8x8xf32>
    %c0_8 = arith.constant 0 : index
    %c0_9 = arith.constant 0 : index
    %c0_10 = arith.constant 0 : index
    %10 = vector.load %arg3[%c0_8, %c0_9, %c0_10] : memref<3x8x8xf32, #tpu.memory_space<vmem>>, vector<1x8x8xf32>
    %11 = vector.shape_cast %10 : vector<1x8x8xf32> to vector<8x8xf32>
    %cst_11 = arith.constant 0.000000e+00 : f32
    %12 = vector.broadcast %cst_11 : f32 to vector<8x8xf32>
    %13 = arith.cmpf ogt, %11, %12 : vector<8x8xf32>
    %cst_12 = arith.constant -9.000000e+15 : f32
    %14 = vector.broadcast %cst_12 : f32 to vector<8x8xf32>
    %15 = arith.select %13, %9, %14 : vector<8x8xi1>, vector<8x8xf32>
    %cst_13 = arith.constant dense<0xFF800000> : vector<8xf32>
    %16 = vector.multi_reduction <maximumf>, %15, %cst_13 [1] : vector<8x8xf32> to vector<8xf32>
    %17 = vector.shape_cast %16 : vector<8xf32> to vector<8x1xf32>
    %18 = vector.broadcast %17 : vector<8x1xf32> to vector<8x8xf32>
    %19 = arith.subf %15, %18 : vector<8x8xf32>
    %20 = math.exp %19 : vector<8x8xf32>
    %cst_14 = arith.constant dense<0.000000e+00> : vector<8xf32>
    %21 = vector.multi_reduction <add>, %20, %cst_14 [1] : vector<8x8xf32> to vector<8xf32>
    %22 = vector.shape_cast %21 : vector<8xf32> to vector<8x1xf32>
    %23 = vector.broadcast %22 : vector<8x1xf32> to vector<8x8xf32>
    %24 = arith.divf %20, %23 : vector<8x8xf32>
    %25 = vector.extract_strided_slice %2 {offsets = [0, 0], sizes = [8, 128], strides = [1, 1]} : vector<8x384xf32> to vector<8x128xf32>
    %cst_15 = arith.constant dense<0.000000e+00> : vector<8x128xf32>
    %26 = tpu.matmul %24, %25, %cst_15 {dimension_numbers = #tpu.dot_dimension_numbers<[1], [0], [0], [1], [0, 0, 1, 1], [], []>} : vector<8x8xf32>, vector<8x128xf32>, vector<8x128xf32> -> vector<8x128xf32>
    %c0_16 = arith.constant 0 : index
    %c0_17 = arith.constant 0 : index
    %27 = vector.load %arg4[%c0_16, %c0_17] : memref<384x128xf32, #tpu.memory_space<vmem>>, vector<128x128xf32>
    %cst_18 = arith.constant dense<0.000000e+00> : vector<8x128xf32>
    %28 = tpu.matmul %26, %27, %cst_18 {dimension_numbers = #tpu.dot_dimension_numbers<[1], [0], [0], [1], [0, 0, 1, 1], [], []>} : vector<8x128xf32>, vector<128x128xf32>, vector<8x128xf32> -> vector<8x128xf32>
    %c1 = arith.constant 1 : index
    %c0_19 = arith.constant 0 : index
    %c0_20 = arith.constant 0 : index
    %29 = vector.load %arg2[%c1, %c0_19, %c0_20] : memref<3x8x8xf32, #tpu.memory_space<vmem>>, vector<1x8x8xf32>
    %30 = vector.shape_cast %29 : vector<1x8x8xf32> to vector<8x8xf32>
    %cst_21 = arith.constant 0.000000e+00 : f32
    %31 = vector.broadcast %cst_21 : f32 to vector<8x8xf32>
    %32 = arith.cmpf ogt, %30, %31 : vector<8x8xf32>
    %cst_22 = arith.constant 0.00999999977 : f32
    %33 = vector.broadcast %cst_22 : f32 to vector<8x8xf32>
    %34 = arith.mulf %33, %30 : vector<8x8xf32>
    %35 = arith.select %32, %30, %34 : vector<8x8xi1>, vector<8x8xf32>
    %c1_23 = arith.constant 1 : index
    %c0_24 = arith.constant 0 : index
    %c0_25 = arith.constant 0 : index
    %36 = vector.load %arg3[%c1_23, %c0_24, %c0_25] : memref<3x8x8xf32, #tpu.memory_space<vmem>>, vector<1x8x8xf32>
    %37 = vector.shape_cast %36 : vector<1x8x8xf32> to vector<8x8xf32>
    %cst_26 = arith.constant 0.000000e+00 : f32
    %38 = vector.broadcast %cst_26 : f32 to vector<8x8xf32>
    %39 = arith.cmpf ogt, %37, %38 : vector<8x8xf32>
    %cst_27 = arith.constant -9.000000e+15 : f32
    %40 = vector.broadcast %cst_27 : f32 to vector<8x8xf32>
    %41 = arith.select %39, %35, %40 : vector<8x8xi1>, vector<8x8xf32>
    %cst_28 = arith.constant dense<0xFF800000> : vector<8xf32>
    %42 = vector.multi_reduction <maximumf>, %41, %cst_28 [1] : vector<8x8xf32> to vector<8xf32>
    %43 = vector.shape_cast %42 : vector<8xf32> to vector<8x1xf32>
    %44 = vector.broadcast %43 : vector<8x1xf32> to vector<8x8xf32>
    %45 = arith.subf %41, %44 : vector<8x8xf32>
    %46 = math.exp %45 : vector<8x8xf32>
    %cst_29 = arith.constant dense<0.000000e+00> : vector<8xf32>
    %47 = vector.multi_reduction <add>, %46, %cst_29 [1] : vector<8x8xf32> to vector<8xf32>
    %48 = vector.shape_cast %47 : vector<8xf32> to vector<8x1xf32>
    %49 = vector.broadcast %48 : vector<8x1xf32> to vector<8x8xf32>
    %50 = arith.divf %46, %49 : vector<8x8xf32>
    %51 = vector.extract_strided_slice %2 {offsets = [0, 128], sizes = [8, 128], strides = [1, 1]} : vector<8x384xf32> to vector<8x128xf32>
    %cst_30 = arith.constant dense<0.000000e+00> : vector<8x128xf32>
    %52 = tpu.matmul %50, %51, %cst_30 {dimension_numbers = #tpu.dot_dimension_numbers<[1], [0], [0], [1], [0, 0, 1, 1], [], []>} : vector<8x8xf32>, vector<8x128xf32>, vector<8x128xf32> -> vector<8x128xf32>
    %c128 = arith.constant 128 : index
    %c0_31 = arith.constant 0 : index
    %53 = vector.load %arg4[%c128, %c0_31] : memref<384x128xf32, #tpu.memory_space<vmem>>, vector<128x128xf32>
    %cst_32 = arith.constant dense<0.000000e+00> : vector<8x128xf32>
    %54 = tpu.matmul %52, %53, %cst_32 {dimension_numbers = #tpu.dot_dimension_numbers<[1], [0], [0], [1], [0, 0, 1, 1], [], []>} : vector<8x128xf32>, vector<128x128xf32>, vector<8x128xf32> -> vector<8x128xf32>
    %55 = arith.addf %28, %54 : vector<8x128xf32>
    %c2 = arith.constant 2 : index
    %c0_33 = arith.constant 0 : index
    %c0_34 = arith.constant 0 : index
    %56 = vector.load %arg2[%c2, %c0_33, %c0_34] : memref<3x8x8xf32, #tpu.memory_space<vmem>>, vector<1x8x8xf32>
    %57 = vector.shape_cast %56 : vector<1x8x8xf32> to vector<8x8xf32>
    %cst_35 = arith.constant 0.000000e+00 : f32
    %58 = vector.broadcast %cst_35 : f32 to vector<8x8xf32>
    %59 = arith.cmpf ogt, %57, %58 : vector<8x8xf32>
    %cst_36 = arith.constant 0.00999999977 : f32
    %60 = vector.broadcast %cst_36 : f32 to vector<8x8xf32>
    %61 = arith.mulf %60, %57 : vector<8x8xf32>
    %62 = arith.select %59, %57, %61 : vector<8x8xi1>, vector<8x8xf32>
    %c2_37 = arith.constant 2 : index
    %c0_38 = arith.constant 0 : index
    %c0_39 = arith.constant 0 : index
    %63 = vector.load %arg3[%c2_37, %c0_38, %c0_39] : memref<3x8x8xf32, #tpu.memory_space<vmem>>, vector<1x8x8xf32>
    %64 = vector.shape_cast %63 : vector<1x8x8xf32> to vector<8x8xf32>
    %cst_40 = arith.constant 0.000000e+00 : f32
    %65 = vector.broadcast %cst_40 : f32 to vector<8x8xf32>
    %66 = arith.cmpf ogt, %64, %65 : vector<8x8xf32>
    %cst_41 = arith.constant -9.000000e+15 : f32
    %67 = vector.broadcast %cst_41 : f32 to vector<8x8xf32>
    %68 = arith.select %66, %62, %67 : vector<8x8xi1>, vector<8x8xf32>
    %cst_42 = arith.constant dense<0xFF800000> : vector<8xf32>
    %69 = vector.multi_reduction <maximumf>, %68, %cst_42 [1] : vector<8x8xf32> to vector<8xf32>
    %70 = vector.shape_cast %69 : vector<8xf32> to vector<8x1xf32>
    %71 = vector.broadcast %70 : vector<8x1xf32> to vector<8x8xf32>
    %72 = arith.subf %68, %71 : vector<8x8xf32>
    %73 = math.exp %72 : vector<8x8xf32>
    %cst_43 = arith.constant dense<0.000000e+00> : vector<8xf32>
    %74 = vector.multi_reduction <add>, %73, %cst_43 [1] : vector<8x8xf32> to vector<8xf32>
    %75 = vector.shape_cast %74 : vector<8xf32> to vector<8x1xf32>
    %76 = vector.broadcast %75 : vector<8x1xf32> to vector<8x8xf32>
    %77 = arith.divf %73, %76 : vector<8x8xf32>
    %78 = vector.extract_strided_slice %2 {offsets = [0, 256], sizes = [8, 128], strides = [1, 1]} : vector<8x384xf32> to vector<8x128xf32>
    %cst_44 = arith.constant dense<0.000000e+00> : vector<8x128xf32>
    %79 = tpu.matmul %77, %78, %cst_44 {dimension_numbers = #tpu.dot_dimension_numbers<[1], [0], [0], [1], [0, 0, 1, 1], [], []>} : vector<8x8xf32>, vector<8x128xf32>, vector<8x128xf32> -> vector<8x128xf32>
    %c256 = arith.constant 256 : index
    %c0_45 = arith.constant 0 : index
    %80 = vector.load %arg4[%c256, %c0_45] : memref<384x128xf32, #tpu.memory_space<vmem>>, vector<128x128xf32>
    %cst_46 = arith.constant dense<0.000000e+00> : vector<8x128xf32>
    %81 = tpu.matmul %79, %80, %cst_46 {dimension_numbers = #tpu.dot_dimension_numbers<[1], [0], [0], [1], [0, 0, 1, 1], [], []>} : vector<8x128xf32>, vector<128x128xf32>, vector<8x128xf32> -> vector<8x128xf32>
    %82 = arith.addf %55, %81 : vector<8x128xf32>
    %c0_47 = arith.constant 0 : index
    %c0_48 = arith.constant 0 : index
    %83 = vector.load %arg5[%c0_47, %c0_48] : memref<1x128xf32, #tpu.memory_space<vmem>>, vector<1x128xf32>
    %84 = vector.broadcast %83 : vector<1x128xf32> to vector<8x128xf32>
    %85 = arith.addf %82, %84 : vector<8x128xf32>
    %cst_49 = arith.constant 0.000000e+00 : f32
    %86 = vector.broadcast %cst_49 : f32 to vector<8x128xf32>
    %87 = arith.cmpf ogt, %85, %86 : vector<8x128xf32>
    %cst_50 = arith.constant 0.00999999977 : f32
    %88 = vector.broadcast %cst_50 : f32 to vector<8x128xf32>
    %89 = arith.mulf %88, %85 : vector<8x128xf32>
    %90 = arith.select %87, %85, %89 : vector<8x128xi1>, vector<8x128xf32>
    %c0_51 = arith.constant 0 : index
    %c0_52 = arith.constant 0 : index
    %91 = vector.load %arg6[%c0_51, %c0_52] : memref<8x128xf32, #tpu.memory_space<vmem>>, vector<8x128xf32>
    tpu.vector_store %arg6[%c0_51, %c0_52], %90 {strides = array<i32>} : memref<8x128xf32, #tpu.memory_space<vmem>>, vector<8x128xf32>,
    return
  }
}

module attributes {stable_mosaic.version = 11 : i64} {
  func.func @_tail_kernel(%arg0: memref<8x128xf32, #tpu.memory_space<vmem>>, %arg1: memref<128x64xf32, #tpu.memory_space<vmem>>, %arg2: memref<1x64xf32, #tpu.memory_space<vmem>>, %arg3: memref<64x32xf32, #tpu.memory_space<vmem>>, %arg4: memref<1x32xf32, #tpu.memory_space<vmem>>, %arg5: memref<32x7xf32, #tpu.memory_space<vmem>>, %arg6: memref<1x7xf32, #tpu.memory_space<vmem>>, %arg7: memref<32x13xf32, #tpu.memory_space<vmem>>, %arg8: memref<1x13xf32, #tpu.memory_space<vmem>>, %arg9: memref<32x1xf32, #tpu.memory_space<vmem>>, %arg10: memref<1x1xf32, #tpu.memory_space<vmem>>, %arg11: memref<32x3xf32, #tpu.memory_space<vmem>>, %arg12: memref<1x3xf32, #tpu.memory_space<vmem>>, %arg13: memref<8x7xf32, #tpu.memory_space<vmem>>, %arg14: memref<8x13xf32, #tpu.memory_space<vmem>>, %arg15: memref<1x3xf32, #tpu.memory_space<vmem>>) attributes {dimension_semantics = [], scalar_prefetch = 0 : i64, scratch_operands = 0 : i64, tpu.core_type = #tpu.core_type<tc>} {
    %c0 = arith.constant 0 : index
    %c0_0 = arith.constant 0 : index
    %0 = vector.load %arg0[%c0, %c0_0] : memref<8x128xf32, #tpu.memory_space<vmem>>, vector<8x128xf32>
    %c0_1 = arith.constant 0 : index
    %c0_2 = arith.constant 0 : index
    %1 = vector.load %arg1[%c0_1, %c0_2] : memref<128x64xf32, #tpu.memory_space<vmem>>, vector<128x64xf32>
    %cst = arith.constant dense<0.000000e+00> : vector<8x64xf32>
    %2 = tpu.matmul %0, %1, %cst {dimension_numbers = #tpu.dot_dimension_numbers<[1], [0], [0], [1], [0, 0, 1, 1], [], []>} : vector<8x128xf32>, vector<128x64xf32>, vector<8x64xf32> -> vector<8x64xf32>
    %c0_3 = arith.constant 0 : index
    %c0_4 = arith.constant 0 : index
    %3 = vector.load %arg2[%c0_3, %c0_4] : memref<1x64xf32, #tpu.memory_space<vmem>>, vector<1x64xf32>
    %4 = vector.broadcast %3 : vector<1x64xf32> to vector<8x64xf32>
    %5 = arith.addf %2, %4 : vector<8x64xf32>
    %cst_5 = arith.constant 0.000000e+00 : f32
    %6 = vector.broadcast %cst_5 : f32 to vector<8x64xf32>
    %7 = arith.cmpf ogt, %5, %6 : vector<8x64xf32>
    %cst_6 = arith.constant 0.00999999977 : f32
    %8 = vector.broadcast %cst_6 : f32 to vector<8x64xf32>
    %9 = arith.mulf %8, %5 : vector<8x64xf32>
    %10 = arith.select %7, %5, %9 : vector<8x64xi1>, vector<8x64xf32>
    %c0_7 = arith.constant 0 : index
    %c0_8 = arith.constant 0 : index
    %11 = vector.load %arg3[%c0_7, %c0_8] : memref<64x32xf32, #tpu.memory_space<vmem>>, vector<64x32xf32>
    %cst_9 = arith.constant dense<0.000000e+00> : vector<8x32xf32>
    %12 = tpu.matmul %10, %11, %cst_9 {dimension_numbers = #tpu.dot_dimension_numbers<[1], [0], [0], [1], [0, 0, 1, 1], [], []>} : vector<8x64xf32>, vector<64x32xf32>, vector<8x32xf32> -> vector<8x32xf32>
    %c0_10 = arith.constant 0 : index
    %c0_11 = arith.constant 0 : index
    %13 = vector.load %arg4[%c0_10, %c0_11] : memref<1x32xf32, #tpu.memory_space<vmem>>, vector<1x32xf32>
    %14 = vector.broadcast %13 : vector<1x32xf32> to vector<8x32xf32>
    %15 = arith.addf %12, %14 : vector<8x32xf32>
    %cst_12 = arith.constant 0.000000e+00 : f32
    %16 = vector.broadcast %cst_12 : f32 to vector<8x32xf32>
    %17 = arith.cmpf ogt, %15, %16 : vector<8x32xf32>
    %cst_13 = arith.constant 0.00999999977 : f32
    %18 = vector.broadcast %cst_13 : f32 to vector<8x32xf32>
    %19 = arith.mulf %18, %15 : vector<8x32xf32>
    %20 = arith.select %17, %15, %19 : vector<8x32xi1>, vector<8x32xf32>
    %c0_14 = arith.constant 0 : index
    %c0_15 = arith.constant 0 : index
    %21 = vector.load %arg5[%c0_14, %c0_15] : memref<32x7xf32, #tpu.memory_space<vmem>>, vector<32x7xf32>
    %cst_16 = arith.constant dense<0.000000e+00> : vector<8x7xf32>
    %22 = tpu.matmul %20, %21, %cst_16 {dimension_numbers = #tpu.dot_dimension_numbers<[1], [0], [0], [1], [0, 0, 1, 1], [], []>} : vector<8x32xf32>, vector<32x7xf32>, vector<8x7xf32> -> vector<8x7xf32>
    %c0_17 = arith.constant 0 : index
    %c0_18 = arith.constant 0 : index
    %23 = vector.load %arg6[%c0_17, %c0_18] : memref<1x7xf32, #tpu.memory_space<vmem>>, vector<1x7xf32>
    %24 = vector.broadcast %23 : vector<1x7xf32> to vector<8x7xf32>
    %25 = arith.addf %22, %24 : vector<8x7xf32>
    %c0_19 = arith.constant 0 : index
    %c0_20 = arith.constant 0 : index
    %26 = vector.load %arg13[%c0_19, %c0_20] : memref<8x7xf32, #tpu.memory_space<vmem>>, vector<8x7xf32>
    tpu.vector_store %arg13[%c0_19, %c0_20], %25 {strides = array<i32>} : memref<8x7xf32, #tpu.memory_space<vmem>>, vector<8x7xf32>,
    %c0_21 = arith.constant 0 : index
    %c0_22 = arith.constant 0 : index
    %27 = vector.load %arg7[%c0_21, %c0_22] : memref<32x13xf32, #tpu.memory_space<vmem>>, vector<32x13xf32>
    %cst_23 = arith.constant dense<0.000000e+00> : vector<8x13xf32>
    %28 = tpu.matmul %20, %27, %cst_23 {dimension_numbers = #tpu.dot_dimension_numbers<[1], [0], [0], [1], [0, 0, 1, 1], [], []>} : vector<8x32xf32>, vector<32x13xf32>, vector<8x13xf32> -> vector<8x13xf32>
    %c0_24 = arith.constant 0 : index
    %c0_25 = arith.constant 0 : index
    %29 = vector.load %arg8[%c0_24, %c0_25] : memref<1x13xf32, #tpu.memory_space<vmem>>, vector<1x13xf32>
    %30 = vector.broadcast %29 : vector<1x13xf32> to vector<8x13xf32>
    %31 = arith.addf %28, %30 : vector<8x13xf32>
    %c0_26 = arith.constant 0 : index
    %c0_27 = arith.constant 0 : index
    %32 = vector.load %arg14[%c0_26, %c0_27] : memref<8x13xf32, #tpu.memory_space<vmem>>, vector<8x13xf32>
    tpu.vector_store %arg14[%c0_26, %c0_27], %31 {strides = array<i32>} : memref<8x13xf32, #tpu.memory_space<vmem>>, vector<8x13xf32>,
    %c0_28 = arith.constant 0 : index
    %c0_29 = arith.constant 0 : index
    %33 = vector.load %arg9[%c0_28, %c0_29] : memref<32x1xf32, #tpu.memory_space<vmem>>, vector<32x1xf32>
    %cst_30 = arith.constant dense<0.000000e+00> : vector<8x1xf32>
    %34 = tpu.matmul %20, %33, %cst_30 {dimension_numbers = #tpu.dot_dimension_numbers<[1], [0], [0], [1], [0, 0, 1, 1], [], []>} : vector<8x32xf32>, vector<32x1xf32>, vector<8x1xf32> -> vector<8x1xf32>
    %c0_31 = arith.constant 0 : index
    %c0_32 = arith.constant 0 : index
    %35 = vector.load %arg10[%c0_31, %c0_32] : memref<1x1xf32, #tpu.memory_space<vmem>>, vector<1x1xf32>
    %36 = vector.broadcast %35 : vector<1x1xf32> to vector<8x1xf32>
    %37 = arith.addf %34, %36 : vector<8x1xf32>
    %cst_33 = arith.constant dense<0xFF800000> : vector<1xf32>
    %38 = vector.multi_reduction <maximumf>, %37, %cst_33 [0] : vector<8x1xf32> to vector<1xf32>
    %39 = vector.shape_cast %38 : vector<1xf32> to vector<1x1xf32>
    %40 = vector.broadcast %39 : vector<1x1xf32> to vector<8x1xf32>
    %41 = arith.subf %37, %40 : vector<8x1xf32>
    %42 = math.exp %41 : vector<8x1xf32>
    %cst_34 = arith.constant dense<0.000000e+00> : vector<1xf32>
    %43 = vector.multi_reduction <add>, %42, %cst_34 [0] : vector<8x1xf32> to vector<1xf32>
    %44 = vector.shape_cast %43 : vector<1xf32> to vector<1x1xf32>
    %45 = vector.broadcast %44 : vector<1x1xf32> to vector<8x1xf32>
    %46 = arith.divf %42, %45 : vector<8x1xf32>
    %47 = vector.broadcast %46 : vector<8x1xf32> to vector<8x32xf32>
    %48 = arith.mulf %47, %20 : vector<8x32xf32>
    %cst_35 = arith.constant dense<0.000000e+00> : vector<32xf32>
    %49 = vector.multi_reduction <add>, %48, %cst_35 [0] : vector<8x32xf32> to vector<32xf32>
    %50 = vector.shape_cast %49 : vector<32xf32> to vector<1x32xf32>
    %c0_36 = arith.constant 0 : index
    %c0_37 = arith.constant 0 : index
    %51 = vector.load %arg11[%c0_36, %c0_37] : memref<32x3xf32, #tpu.memory_space<vmem>>, vector<32x3xf32>
    %cst_38 = arith.constant dense<0.000000e+00> : vector<1x3xf32>
    %52 = tpu.matmul %50, %51, %cst_38 {dimension_numbers = #tpu.dot_dimension_numbers<[1], [0], [0], [1], [0, 0, 1, 1], [], []>} : vector<1x32xf32>, vector<32x3xf32>, vector<1x3xf32> -> vector<1x3xf32>
    %c0_39 = arith.constant 0 : index
    %c0_40 = arith.constant 0 : index
    %53 = vector.load %arg12[%c0_39, %c0_40] : memref<1x3xf32, #tpu.memory_space<vmem>>, vector<1x3xf32>
    %54 = arith.addf %52, %53 : vector<1x3xf32>
    %c0_41 = arith.constant 0 : index
    %c0_42 = arith.constant 0 : index
    %55 = vector.load %arg15[%c0_41, %c0_42] : memref<1x3xf32, #tpu.memory_space<vmem>>, vector<1x3xf32>
    tpu.vector_store %arg15[%c0_41, %c0_42], %54 {strides = array<i32>} : memref<1x3xf32, #tpu.memory_space<vmem>>, vector<1x3xf32>,
    return
  }
}

</mosaic_0001>

<bundles_post_ra>
// kernel: backbone_forward.7
= control target key start
LH: loop header
LB: loop body
LE: loop exit
PB: predicated region body
PF: predicated region fallthrough
CT: control target
= control target key end

     0   :  { %v124_v0 = vmov 0.0|0.0   ;;  %vm125_vm0 = vmmov 0   ;;  %v126_v3 = vmov 0.0   ;;  %vm24_vm1 = vcmask 130048   ;;  %s162_s1 = inlined_call_operand.vmem [shape: f32[16,128], index: 1, kind: input, shape index: {}]   ;;  %s163_s0 = inlined_call_operand.vmem [shape: f32[8,16], index: 0, kind: input, shape index: {}]   ;;  %s164_s2 = inlined_call_operand.vmem [shape: f32[1,128], index: 2, kind: input, shape index: {}]   ;;  %s165_s3 = inlined_call_operand.vmem [shape: f32[8,128], index: 3, kind: output, shape index: {}]  }
   0x1   :  { %118 = vmatprep.subr.bf16.mxu0 %v124_v0  ;;  %v15_v1 = vld [vmem:[%s162_s1] sm:$0xff]  ;;  %v16_v2 = vld [vmem:[%s162_s1 + $0x8] sm:$0xff]  ;;  %115 = vmatprep.mubr.msk.f32.mxu0 %vm125_vm0, %v126_v3 }
   0x2   :  { %v119_v4 = vpack.c.bf16 %v16_v2, %v15_v1  ;;  %v14_v5 = vld [vmem:[%s163_s0] sm:$0xff] }
   0x3   :  { %v106_v6 = vld [vmem:[%s164_s2] ss:$0 sm:$0xff] }
   0x4   :  { %120 = vmatpush3.bf16.msra.mxu0 %v119_v4 }
   0x7   :  { %116 = vmatmul.mubr.msk.f32.vlgmr.msra.gmra.mrb[0].mxu0 %vm24_vm1, %v14_v5 }
  0xda   :  { %v94_v7 = vpop.f32.mrb[0].mxu0 }
  0xdb   :  { %v95_v8 = vadd.f32 %v106_v6, %v94_v7  ;;  %v117_v9 = vpop.f32.mrb[1].mxu0 }
  0xdd   :  { %vm98_vm2 = vcmp.gt.f32.partialorder %v95_v8, 0.0  ;;  %v99_v10 = vmul.f32 0.01, %v95_v8 }
  0xdf   :  { %v100_v11 = vsel %vm98_vm2, %v95_v8, %v99_v10 }
  0xe0   :  { %101 = vst [vmem:[%s165_s3] sm:$0xff] %v100_v11 }

// kernel: backbone_forward.9
= control target key start
LH: loop header
LB: loop body
LE: loop exit
PB: predicated region body
PF: predicated region fallthrough
CT: control target
= control target key end

     0   :  { %vm269_vm0 = vcmask 64512   ;;  %vm1219_vm7 = vmmov 0   ;;  %s1783_s2 = inlined_call_operand.vmem [shape: f32[3,8,8], index: 2, kind: input, shape index: {}]   ;;  %s1784_s3 = inlined_call_operand.vmem [shape: f32[3,8,8], index: 3, kind: input, shape index: {}]   ;;  %s1785_s1 = inlined_call_operand.vmem [shape: f32[256,384], index: 1, kind: input, shape index: {}]   ;;  %s1786_s0 = inlined_call_operand.vmem [shape: f32[8,256], index: 0, kind: input, shape index: {}]   ;;  %s1787_s4 = inlined_call_operand.vmem [shape: f32[384,128], index: 4, kind: input, shape index: {}]   ;;  %s1788_s5 = inlined_call_operand.vmem [shape: f32[1,128], index: 5, kind: input, shape index: {}]   ;;  %s1789_s6 = inlined_call_operand.vmem [shape: f32[8,128], index: 6, kind: output, shape index: {}]  }
   0x1   :  { %v816_v0 = vld [vmem:[%s1783_s2 + $0x8] sm:$0xff]  ;;  %v262_v2 = vld [vmem:[%s1783_s2] sm:$0xff]  ;;  %v28_v11 = vld [vmem:[%s1785_s1 + $0x18] sm:$0xff] }
   0x2   :  { %v817_v1 = vld [vmem:[%s1784_s3 + $0x8] sm:$0xff]  ;;  %vm372_vm1 = vcmp.gt.f32.partialorder %v816_v0, 0.0  ;;  %v373_v3 = vmul.f32 0.01, %v816_v0  ;;  %vm263_vm3 = vcmp.gt.f32.partialorder %v262_v2, 0.0  ;;  %v266_v4 = vld [vmem:[%s1784_s3] sm:$0xff] }
   0x3   :  { %vm377_vm2 = vcmp.gt.f32.partialorder %v817_v1, 0.0  ;;  %v264_v5 = vmul.f32 0.01, %v262_v2  ;;  %vm267_vm4 = vcmp.gt.f32.partialorder %v266_v4, 0.0  ;;  %v26_v6 = vld [vmem:[%s1785_s1 + $0x8] sm:$0xff]  ;;  %v29_v7 = vld [vmem:[%s1785_s1 + $0x20] sm:$0xff] }
   0x4   :  { %v25_v8 = vld [vmem:[%s1785_s1] sm:$0xff]  ;;  %v374_v9 = vsel %vm372_vm1, %v816_v0, %v373_v3  ;;  %v1035_v10 = vpack.c.bf16 %v29_v7, %v26_v6  ;;  %v32_v12 = vld [vmem:[%s1785_s1 + $0x38] sm:$0xff]  ;;  %v35_v13 = vld [vmem:[%s1785_s1 + $0x50] sm:$0xff] }
   0x5   :  { %v1286_v14 = vsel %vm377_vm2, %v374_v9, -9e+15  ;;  %v265_v15 = vsel %vm263_vm3, %v262_v2, %v264_v5  ;;  %v1037_v16 = vpack.c.bf16 %v28_v11, %v25_v8  ;;  %v1039_v17 = vpack.c.bf16 %v35_v13, %v32_v12  ;;  %v31_v18 = vld [vmem:[%s1785_s1 + $0x30] sm:$0xff]  ;;  %v34_v19 = vld [vmem:[%s1785_s1 + $0x48] sm:$0xff]  ;;  %v41_v23 = vld [vmem:[%s1785_s1 + $0x80] sm:$0xff] }
   0x6   :  { %v38_v20 = vld [vmem:[%s1785_s1 + $0x68] sm:$0xff]  ;;  %v379_v21 = vsel %vm269_vm0, %v1286_v14, -inf  ;;  %v1300_v22 = vsel %vm267_vm4, %v265_v15, -9e+15  ;;  %1036 = vmatprep.subr.bf16.mxu0 %v1035_v10  ;;  %v1041_v25 = vpack.c.bf16 %v34_v19, %v31_v18  ;;  %v37_v27 = vld [vmem:[%s1785_s1 + $0x60] sm:$0xff]  ;;  %v40_v28 = vld [vmem:[%s1785_s1 + $0x78] sm:$0xff] }
   0x7   :  { %380 = vmax.xlane.f32.xlu0 %v379_v21  ;;  %v270_v24 = vsel %vm269_vm0, %v1300_v22, -inf  ;;  %1038 = vmatpush1.bf16.msra.mxu0 %v1037_v16  ;;  %v1043_v26 = vpack.c.bf16 %v41_v23, %v38_v20  ;;  %v44_v29 = vld [vmem:[%s1785_s1 + $0x98] sm:$0xff]  ;;  %v47_v30 = vld [vmem:[%s1785_s1 + $0xb0] sm:$0xff]  ;;  %v1045_v31 = vpack.c.bf16 %v40_v28, %v37_v27  ;;  %v46_v34 = vld [vmem:[%s1785_s1 + $0xa8] sm:$0xff] }
   0x8   :  { %271 = vmax.xlane.f32.xlu1 %v270_v24  ;;  %1040 = vmatprep.subr.bf16.mxu0 %v1039_v17  ;;  %v1047_v32 = vpack.c.bf16 %v47_v30, %v44_v29  ;;  %v43_v33 = vld [vmem:[%s1785_s1 + $0x90] sm:$0xff]  ;;  %v50_v35 = vld [vmem:[%s1785_s1 + $0xc8] sm:$0xff]  ;;  %v53_v36 = vld [vmem:[%s1785_s1 + $0xe0] sm:$0xff] }
   0x9   :  { %v819_v37 = vld [vmem:[%s1783_s2 + $0x10] sm:$0xff]  ;;  %v1049_v40 = vpack.c.bf16 %v46_v34, %v43_v33  ;;  %v1051_v41 = vpack.c.bf16 %v53_v36, %v50_v35  ;;  %v49_v42 = vld [vmem:[%s1785_s1 + $0xc0] sm:$0xff]  ;;  %v52_v43 = vld [vmem:[%s1785_s1 + $0xd8] sm:$0xff] }
   0xa   :  { %vm621_vm5 = vcmp.gt.f32.partialorder %v819_v37, 0.0  ;;  %v622_v38 = vmul.f32 0.01, %v819_v37  ;;  %v820_v39 = vld [vmem:[%s1784_s3 + $0x10] sm:$0xff]  ;;  %v56_v45 = vld [vmem:[%s1785_s1 + $0xf8] sm:$0xff]  ;;  %v1053_v49 = vpack.c.bf16 %v52_v43, %v49_v42  ;;  %v58_v52 = vld [vmem:[%s1785_s1 + $0x108] sm:$0xff] }
   0xb   :  { %1042 = vmatpush1.bf16.msra.mxu0 %v1041_v25  ;;  %vm626_vm6 = vcmp.gt.f32.partialorder %v820_v39, 0.0  ;;  %v59_v46 = vld [vmem:[%s1785_s1 + $0x110] sm:$0xff]  ;;  %v62_v53 = vld [vmem:[%s1785_s1 + $0x128] sm:$0xff]  ;;  %v65_v54 = vld [vmem:[%s1785_s1 + $0x140] sm:$0xff] }
   0xc   :  { %1044 = vmatprep.subr.bf16.mxu0 %v1043_v26  ;;  %v623_v44 = vsel %vm621_vm5, %v819_v37, %v622_v38  ;;  %v1055_v50 = vpack.c.bf16 %v59_v46, %v56_v45  ;;  %v55_v51 = vld [vmem:[%s1785_s1 + $0xf0] sm:$0xff]  ;;  %v1059_v56 = vpack.c.bf16 %v65_v54, %v62_v53  ;;  %v61_v57 = vld [vmem:[%s1785_s1 + $0x120] sm:$0xff]  ;;  %v64_v58 = vld [vmem:[%s1785_s1 + $0x138] sm:$0xff] }
   0xd   :  { %v1349_v47 = vsel %vm626_vm6, %v623_v44, -9e+15  ;;  %v1057_v55 = vpack.c.bf16 %v58_v52, %v55_v51  ;;  %v68_v59 = vld [vmem:[%s1785_s1 + $0x158] sm:$0xff]  ;;  %v71_v60 = vld [vmem:[%s1785_s1 + $0x170] sm:$0xff]  ;;  %v24_v61 = vld [vmem:[%s1786_s0 + $0x8] sm:$0xff]  ;;  %v1061_v62 = vpack.c.bf16 %v64_v58, %v61_v57 }
   0xe   :  { %v628_v48 = vsel %vm269_vm0, %v1349_v47, -inf  ;;  %185 = vmatprep.mubr.f32.mxu0 %v24_v61  ;;  %256 = vmatprep.mubr.f32.mxu1 %v24_v61  ;;  %v1063_v63 = vpack.c.bf16 %v71_v60, %v68_v59  ;;  %v67_v0 = vld [vmem:[%s1785_s1 + $0x150] sm:$0xff]  ;;  %v70_v1 = vld [vmem:[%s1785_s1 + $0x168] sm:$0xff]  ;;  %v77_v3 = vld [vmem:[%s1785_s1 + $0x1a0] sm:$0xff] }
   0xf   :  { %1046 = vmatpush1.bf16.msra.mxu0 %v1045_v31  ;;  %629 = vmax.xlane.f32.xlu1 %v628_v48  ;;  %v74_v2 = vld [vmem:[%s1785_s1 + $0x188] sm:$0xff]  ;;  %v1065_v4 = vpack.c.bf16 %v70_v1, %v67_v0  ;;  %v73_v6 = vld [vmem:[%s1785_s1 + $0x180] sm:$0xff]  ;;  %v76_v7 = vld [vmem:[%s1785_s1 + $0x198] sm:$0xff] }
  0x10   :  { %1048 = vmatprep.subr.bf16.mxu0 %v1047_v32  ;;  %v1067_v5 = vpack.c.bf16 %v77_v3, %v74_v2  ;;  %v80_v8 = vld [vmem:[%s1785_s1 + $0x1b8] sm:$0xff]  ;;  %v83_v9 = vld [vmem:[%s1785_s1 + $0x1d0] sm:$0xff]  ;;  %v1069_v10 = vpack.c.bf16 %v76_v7, %v73_v6  ;;  %v82_v13 = vld [vmem:[%s1785_s1 + $0x1c8] sm:$0xff] }
  0x11   :  { %v1071_v11 = vpack.c.bf16 %v83_v9, %v80_v8  ;;  %v79_v12 = vld [vmem:[%s1785_s1 + $0x1b0] sm:$0xff]  ;;  %v86_v15 = vld [vmem:[%s1785_s1 + $0x1e8] sm:$0xff]  ;;  %v89_v16 = vld [vmem:[%s1785_s1 + $0x200] sm:$0xff] }
  0x12   :  { %v1073_v17 = vpack.c.bf16 %v82_v13, %v79_v12  ;;  %v1075_v18 = vpack.c.bf16 %v89_v16, %v86_v15  ;;  %v85_v19 = vld [vmem:[%s1785_s1 + $0x1e0] sm:$0xff]  ;;  %v88_v20 = vld [vmem:[%s1785_s1 + $0x1f8] sm:$0xff]  ;;  %v95_v23 = vld [vmem:[%s1785_s1 + $0x230] sm:$0xff] }
  0x13   :  { %1050 = vmatpush1.bf16.msra.mxu0 %v1049_v40  ;;  %v92_v21 = vld [vmem:[%s1785_s1 + $0x218] sm:$0xff]  ;;  %v1077_v24 = vpack.c.bf16 %v88_v20, %v85_v19  ;;  %v91_v26 = vld [vmem:[%s1785_s1 + $0x210] sm:$0xff]  ;;  %v94_v27 = vld [vmem:[%s1785_s1 + $0x228] sm:$0xff] }
  0x14   :  { %1052 = vmatprep.subr.bf16.mxu0 %v1051_v41  ;;  %v1079_v25 = vpack.c.bf16 %v95_v23, %v92_v21  ;;  %v98_v28 = vld [vmem:[%s1785_s1 + $0x248] sm:$0xff]  ;;  %v101_v29 = vld [vmem:[%s1785_s1 + $0x260] sm:$0xff]  ;;  %v1081_v30 = vpack.c.bf16 %v94_v27, %v91_v26  ;;  %v100_v33 = vld [vmem:[%s1785_s1 + $0x258] sm:$0xff] }
  0x15   :  { %v97_v31 = vld [vmem:[%s1785_s1 + $0x240] sm:$0xff]  ;;  %v1083_v32 = vpack.c.bf16 %v101_v29, %v98_v28  ;;  %v104_v34 = vld [vmem:[%s1785_s1 + $0x278] sm:$0xff]  ;;  %v107_v35 = vld [vmem:[%s1785_s1 + $0x290] sm:$0xff] }
  0x16   :  { %v75_v36 = vld [vmem:[%s1785_s1 + $0x190] sm:$0xff]  ;;  %v78_v37 = vld [vmem:[%s1785_s1 + $0x1a8] sm:$0xff]  ;;  %v81_v41 = vld [vmem:[%s1785_s1 + $0x1c0] sm:$0xff]  ;;  %v1085_v43 = vpack.c.bf16 %v100_v33, %v97_v31 }
  0x17   :  { %1054 = vmatpush1.bf16.msra.mxu0 %v1053_v49  ;;  %v27_v38 = vld [vmem:[%s1785_s1 + $0x10] sm:$0xff]  ;;  %v1099_v39 = vpack.c.bf16 %v78_v37, %v75_v36  ;;  %v30_v40 = vld [vmem:[%s1785_s1 + $0x28] sm:$0xff]  ;;  %v84_v42 = vld [vmem:[%s1785_s1 + $0x1d8] sm:$0xff] }
  0x18   :  { %1056 = vmatprep.subr.bf16.mxu0 %v1055_v50  ;;  %v1101_v44 = vpack.c.bf16 %v30_v40, %v27_v38  ;;  %v1103_v45 = vpack.c.bf16 %v84_v42, %v81_v41  ;;  %v33_v46 = vld [vmem:[%s1785_s1 + $0x40] sm:$0xff]  ;;  %v36_v48 = vld [vmem:[%s1785_s1 + $0x58] sm:$0xff]  ;;  %v87_v49 = vld [vmem:[%s1785_s1 + $0x1f0] sm:$0xff]  ;;  %v1087_v50 = vpack.c.bf16 %v107_v35, %v104_v34 }
  0x19   :  { %v103_v51 = vld [vmem:[%s1785_s1 + $0x270] sm:$0xff]  ;;  %v106_v52 = vld [vmem:[%s1785_s1 + $0x288] sm:$0xff]  ;;  %1100 = vmatprep.subr.bf16.mxu1 %v1099_v39  ;;  %v93_v61 = vld [vmem:[%s1785_s1 + $0x220] sm:$0xff] }
  0x1a   :  { %v90_v53 = vld [vmem:[%s1785_s1 + $0x208] sm:$0xff]  ;;  %1102 = vmatpush3.bf16.msra.mxu1 %v1101_v44  ;;  %v39_v58 = vld [vmem:[%s1785_s1 + $0x70] sm:$0xff]  ;;  %v1089_v60 = vpack.c.bf16 %v106_v52, %v103_v51  ;;  %v109_v0 = vld [vmem:[%s1785_s1 + $0x2a0] sm:$0xff] }
  0x1b   :  { %1058 = vmatpush1.bf16.msra.mxu0 %v1057_v55  ;;  %v110_v54 = vld [vmem:[%s1785_s1 + $0x2a8] sm:$0xff]  ;;  %v113_v55 = vld [vmem:[%s1785_s1 + $0x2c0] sm:$0xff]  ;;  %1104 = vmatprep.subr.bf16.mxu1 %v1103_v45  ;;  %v1107_v57 = vpack.c.bf16 %v90_v53, %v87_v49  ;;  %v112_v1 = vld [vmem:[%s1785_s1 + $0x2b8] sm:$0xff] }
  0x1c   :  { %1060 = vmatprep.subr.bf16.mxu0 %v1059_v56  ;;  %v1105_v56 = vpack.c.bf16 %v36_v48, %v33_v46  ;;  %v42_v59 = vld [vmem:[%s1785_s1 + $0x88] sm:$0xff]  ;;  %v116_v2 = vld [vmem:[%s1785_s1 + $0x2d8] sm:$0xff]  ;;  %v119_v3 = vld [vmem:[%s1785_s1 + $0x2f0] sm:$0xff]  ;;  %v1093_v8 = vpack.c.bf16 %v112_v1, %v109_v0 }
  0x1d   :  { %v45_v6 = vld [vmem:[%s1785_s1 + $0xa0] sm:$0xff]  ;;  %v48_v7 = vld [vmem:[%s1785_s1 + $0xb8] sm:$0xff]  ;;  %v99_v9 = vld [vmem:[%s1785_s1 + $0x250] sm:$0xff] }
  0x1e   :  { %1106 = vmatpush3.bf16.msra.mxu1 %v1105_v56  ;;  %v115_v12 = vld [vmem:[%s1785_s1 + $0x2d0] sm:$0xff]  ;;  %v118_v13 = vld [vmem:[%s1785_s1 + $0x2e8] sm:$0xff]  ;;  %v1113_v15 = vpack.c.bf16 %v48_v7, %v45_v6  ;;  %v105_v20 = vld [vmem:[%s1785_s1 + $0x280] sm:$0xff] }
  0x1f   :  { %1062 = vmatpush1.bf16.msra.mxu0 %v1061_v62  ;;  %v96_v62 = vld [vmem:[%s1785_s1 + $0x238] sm:$0xff]  ;;  %1108 = vmatprep.subr.bf16.mxu1 %v1107_v57  ;;  %v1097_v19 = vpack.c.bf16 %v118_v13, %v115_v12  ;;  %v23_v27 = vld [vmem:[%s1786_s0] sm:$0xff]  ;;  %v111_v42 = vld [vmem:[%s1785_s1 + $0x2b0] sm:$0xff]  ;;  %v1220_v57 = vmov 0.0|0.0  }
  0x20   :  { %1064 = vmatprep.subr.bf16.mxu0 %v1063_v63  ;;  %v1091_v63 = vpack.c.bf16 %v113_v55, %v110_v54  ;;  %v108_v21 = vld [vmem:[%s1785_s1 + $0x298] sm:$0xff]  ;;  %v63_v44 = vld [vmem:[%s1785_s1 + $0x130] sm:$0xff]  ;;  %v66_v45 = vld [vmem:[%s1785_s1 + $0x148] sm:$0xff]  ;;  %v1218_v54 = vmov 0.0  }
  0x21   :  { %v60_v26 = vld [vmem:[%s1785_s1 + $0x118] sm:$0xff]  ;;  %v1125_v46 = vpack.c.bf16 %v66_v45, %v63_v44  ;;  %v117_v48 = vld [vmem:[%s1785_s1 + $0x2e0] sm:$0xff]  ;;  %v465_v0 = vld [vmem:[%s1787_s4 + $0x90] sm:$0xff] }
  0x22   :  { %v120_v49 = vld [vmem:[%s1785_s1 + $0x2f8] sm:$0xff]  ;;  %v69_v51 = vld [vmem:[%s1785_s1 + $0x160] sm:$0xff] }
  0x23   :  { %1066 = vmatpush1.bf16.msra.mxu0 %v1065_v4  ;;  %v1109_v4 = vpack.c.bf16 %v42_v59, %v39_v58  ;;  %v72_v52 = vld [vmem:[%s1785_s1 + $0x178] sm:$0xff] }
  0x24   :  { %1068 = vmatprep.subr.bf16.mxu0 %v1067_v5  ;;  %v1111_v5 = vpack.c.bf16 %v96_v62, %v93_v61  ;;  %v1129_v53 = vpack.c.bf16 %v72_v52, %v69_v51  ;;  %v464_v61 = vld [vmem:[%s1787_s4 + $0x88] sm:$0xff]  ;;  %v357_v12 = vld [vmem:[%s1787_s4 + $0x18] sm:$0xff] }
  0x25   :  { %1110 = vmatpush3.bf16.msra.mxu1 %v1109_v4  ;;  %v355_v4 = vld [vmem:[%s1787_s4 + $0x8] sm:$0xff] }
  0x26   :  { %1112 = vmatprep.subr.bf16.mxu1 %v1111_v5 }
  0x27   :  { %1070 = vmatpush1.bf16.msra.mxu0 %v1069_v10  ;;  %v102_v10 = vld [vmem:[%s1785_s1 + $0x268] sm:$0xff] }
  0x28   :  { %1072 = vmatprep.subr.bf16.mxu0 %v1071_v11  ;;  %v1095_v11 = vpack.c.bf16 %v119_v3, %v116_v2  ;;  %v1115_v16 = vpack.c.bf16 %v102_v10, %v99_v9  ;;  %v466_v2 = vld [vmem:[%s1787_s4 + $0x98] sm:$0xff]  ;;  %v354_v3 = vld [vmem:[%s1787_s4] sm:$0xff]  ;;  %v468_v10 = vld [vmem:[%s1787_s4 + $0xa8] sm:$0xff] }
  0x29   :  { %1114 = vmatpush3.bf16.msra.mxu1 %v1113_v15  ;;  %v1135_v6 = vpack.c.bf16 %v466_v2, %v465_v0  ;;  %v1156_v7 = vpack.c.bf16 %v355_v4, %v354_v3  ;;  %v717_v3 = vld [vmem:[%s1787_s4 + $0x128] sm:$0xff] }
  0x2a   :  { %1116 = vmatprep.subr.bf16.mxu1 %v1115_v16  ;;  %v469_v16 = vld [vmem:[%s1787_s4 + $0xb0] sm:$0xff] }
  0x2b   :  { %1074 = vmatpush1.bf16.msra.mxu0 %v1073_v17  ;;  %v51_v17 = vld [vmem:[%s1785_s1 + $0xd0] sm:$0xff] }
  0x2c   :  { %1076 = vmatprep.subr.bf16.mxu0 %v1075_v18  ;;  %v54_v18 = vld [vmem:[%s1785_s1 + $0xe8] sm:$0xff] }
  0x2d   :  { %v1117_v23 = vpack.c.bf16 %v54_v18, %v51_v17  ;;  %v470_v17 = vld [vmem:[%s1787_s4 + $0xb8] sm:$0xff]  ;;  %v358_v18 = vld [vmem:[%s1787_s4 + $0x20] sm:$0xff] }
  0x2f   :  { %1078 = vmatpush1.bf16.msra.mxu0 %v1077_v24  ;;  %v1119_v24 = vpack.c.bf16 %v108_v21, %v105_v20  ;;  %1118 = vmatpush3.bf16.msra.mxu1 %v1117_v23  ;;  %v1141_v20 = vpack.c.bf16 %v470_v17, %v469_v16  ;;  %v471_v23 = vld [vmem:[%s1787_s4 + $0xc0] sm:$0xff]  ;;  %v726_v17 = vld [vmem:[%s1787_s4 + $0x170] sm:$0xff] }
  0x30   :  { %1080 = vmatprep.subr.bf16.mxu0 %v1079_v25  ;;  %v57_v25 = vld [vmem:[%s1785_s1 + $0x100] sm:$0xff] }
  0x31   :  { %v1121_v28 = vpack.c.bf16 %v60_v26, %v57_v25  ;;  %1120 = vmatprep.subr.bf16.mxu1 %v1119_v24  ;;  %v472_v24 = vld [vmem:[%s1787_s4 + $0xc8] sm:$0xff]  ;;  %v360_v25 = vld [vmem:[%s1787_s4 + $0x30] sm:$0xff]  ;;  %v361_v26 = vld [vmem:[%s1787_s4 + $0x38] sm:$0xff] }
  0x33   :  { %1082 = vmatpush1.bf16.msra.mxu0 %v1081_v30  ;;  %1122 = vmatpush3.bf16.msra.mxu1 %v1121_v28  ;;  %v1165_v28 = vpack.c.bf16 %v361_v26, %v360_v25 }
  0x34   :  { %1084 = vmatprep.subr.bf16.mxu0 %v1083_v32 }
  0x37   :  { %1086 = vmatpush1.bf16.msra.mxu0 %v1085_v43 }
  0x38   :  { %1088 = vmatprep.subr.bf16.mxu0 %v1087_v50  ;;  %v1127_v50 = vpack.c.bf16 %v120_v49, %v117_v48  ;;  %v368_v49 = vld [vmem:[%s1787_s4 + $0x70] sm:$0xff] }
  0x3b   :  { %1090 = vmatpush1.bf16.msra.mxu0 %v1089_v60  ;;  %v463_v60 = vld [vmem:[%s1787_s4 + $0x80] sm:$0xff] }
  0x3c   :  { %1092 = vmatprep.subr.bf16.mxu0 %v1091_v63  ;;  %v1132_v63 = vpack.c.bf16 %v464_v61, %v463_v60 }
  0x3f   :  { %1094 = vmatpush1.bf16.msra.mxu0 %v1093_v8  ;;  %v467_v8 = vld [vmem:[%s1787_s4 + $0xa0] sm:$0xff] }
  0x40   :  { %1096 = vmatprep.subr.bf16.mxu0 %v1095_v11  ;;  %v356_v11 = vld [vmem:[%s1787_s4 + $0x10] sm:$0xff]  ;;  %v1138_v13 = vpack.c.bf16 %v468_v10, %v467_v8  ;;  %v721_v8 = vld [vmem:[%s1787_s4 + $0x148] sm:$0xff] }
  0x41   :  { %v1159_v15 = vpack.c.bf16 %v357_v12, %v356_v11  ;;  %v722_v10 = vld [vmem:[%s1787_s4 + $0x150] sm:$0xff]  ;;  %v723_v11 = vld [vmem:[%s1787_s4 + $0x158] sm:$0xff] }
  0x42   :  { %v1195_v12 = vpack.c.bf16 %v723_v11, %v722_v10 }
  0x43   :  { %1098 = vmatpush1.bf16.msra.mxu0 %v1097_v19  ;;  %v359_v19 = vld [vmem:[%s1787_s4 + $0x28] sm:$0xff] }
  0x44   :  { %915 = vmatprep.subr.mxu0 %v1218_v54  ;;  %v1162_v21 = vpack.c.bf16 %v359_v19, %v358_v18  ;;  %v727_v18 = vld [vmem:[%s1787_s4 + $0x178] sm:$0xff] }
  0x45   :  { %v1201_v19 = vpack.c.bf16 %v727_v18, %v726_v17 }
  0x46   :  { %186 = vmatmul.mubr.f32.vlgmr.msra.gmra.mrb[0].mxu0 %v23_v27 }
  0x47   :  { %917 = vmatprep.mubr.msk.f32.mxu0 %vm1219_vm7, %v1218_v54 }
  0x94   :  { %v381_v29 = vpop.xlane.xlu0 %380 }
  0x95   :  { %v382_v30 = vsub.f32 %v1286_v14, %v381_v29  ;;  %v272_v31 = vpop.xlane.xlu1 %271  ;;  %v473_v29 = vld [vmem:[%s1787_s4 + $0xd0] sm:$0xff] }
  0x96   :  { %v273_v32 = vsub.f32 %v1300_v22, %v272_v31  ;;  %v362_v31 = vld [vmem:[%s1787_s4 + $0x40] sm:$0xff] }
  0x97   :  { %v383_v33 = vmul.f32 1.442695, %v382_v30  ;;  %v474_v30 = vld [vmem:[%s1787_s4 + $0xd8] sm:$0xff] }
  0x98   :  { %v274_v34 = vmul.f32 1.442695, %v273_v32  ;;  %v363_v32 = vld [vmem:[%s1787_s4 + $0x48] sm:$0xff] }
  0x99   :  { %1206 = vpow2.f32 %v383_v33  ;;  %v1147_v33 = vpack.c.bf16 %v474_v30, %v473_v29 }
  0x9a   :  { %1208 = vpow2.f32 %v274_v34  ;;  %v1168_v34 = vpack.c.bf16 %v363_v32, %v362_v31 }
  0x9c   :  { %v630_v35 = vpop.xlane.xlu1 %629 }
  0x9d   :  { %v631_v36 = vsub.f32 %v1349_v47, %v630_v35  ;;  %v114_v47 = vld [vmem:[%s1785_s1 + $0x2c8] sm:$0xff]  ;;  %v475_v35 = vld [vmem:[%s1787_s4 + $0xe0] sm:$0xff] }
  0x9e   :  { %v1123_v43 = vpack.c.bf16 %v114_v47, %v111_v42  ;;  %v366_v42 = vld [vmem:[%s1787_s4 + $0x60] sm:$0xff]  ;;  %v367_v47 = vld [vmem:[%s1787_s4 + $0x68] sm:$0xff] }
  0x9f   :  { %v632_v38 = vmul.f32 1.442695, %v631_v36  ;;  %v476_v36 = vld [vmem:[%s1787_s4 + $0xe8] sm:$0xff]  ;;  %v1174_v44 = vpack.c.bf16 %v367_v47, %v366_v42 }
  0xa0   :  { %1124 = vmatprep.subr.bf16.mxu1 %v1123_v43 }
  0xa1   :  { %1210 = vpow2.f32 %v632_v38  ;;  %1126 = vmatpush3.bf16.msra.mxu1 %v1125_v46  ;;  %v365_v38 = vld [vmem:[%s1787_s4 + $0x58] sm:$0xff] }
  0xa2   :  { %1128 = vmatprep.subr.bf16.mxu1 %v1127_v50  ;;  %v369_v50 = vld [vmem:[%s1787_s4 + $0x78] sm:$0xff] }
  0xa3   :  { %v1207_v37 = vpop.eup %1206  ;;  %v1177_v51 = vpack.c.bf16 %v369_v50, %v368_v49 }
  0xa4   :  { %v1209_v39 = vpop.eup %1208  ;;  %v385_v40 = vsel %vm269_vm0, %v1207_v37, 0.0 }
  0xa5   :  { %386 = vadd.xlane.f32.xlu0 %v385_v40  ;;  %v276_v41 = vsel %vm269_vm0, %v1209_v39, 0.0  ;;  %1130 = vmatpush3.bf16.msra.mxu1 %v1129_v53  ;;  %v712_v53 = vld [vmem:[%s1787_s4 + $0x100] sm:$0xff] }
  0xa6   :  { %920 = vmatprep.subr.mxu1 %v1218_v54 }
  0xa8   :  { %257 = vmatmul.mubr.f32.vlgmr.msra.gmra.mrb[0].mxu1 %v23_v27  ;;  %v1144_v27 = vpack.c.bf16 %v472_v24, %v471_v23 }
  0xa9   :  { %277 = vadd.xlane.f32.xlu0 %v276_v41  ;;  %922 = vmatprep.mubr.msk.f32.mxu1 %vm1219_vm7, %v1218_v54  ;;  %v477_v41 = vld [vmem:[%s1787_s4 + $0xf0] sm:$0xff] }
  0xab   :  { %v1562_v14 = vpop.eup %1210 }
  0xac   :  { %v634_v22 = vsel %vm269_vm0, %v1562_v14, 0.0 }
  0xad   :  { %635 = vadd.xlane.f32.xlu1 %v634_v22  ;;  %v478_v22 = vld [vmem:[%s1787_s4 + $0xf8] sm:$0xff] }
  0xae   :  { %v1153_v43 = vpack.c.bf16 %v478_v22, %v477_v41 }
 0x119   :  { %v187_v55 = vpop.f32.mrb[0].mxu0 }
 0x11a   :  { %v189_v56 = vpop.f32.mrb[1].mxu0  ;;  %916 = vmatpush3.msra.mxu0 %v187_v55  ;;  %v713_v55 = vld [vmem:[%s1787_s4 + $0x108] sm:$0xff] }
 0x11b   :  { %921 = vmatpush3.msra.mxu1 %v189_v56  ;;  %1155 = vmatprep.subr.bf16.mxu0 %v1220_v57  ;;  %v1180_v60 = vpack.c.bf16 %v713_v55, %v712_v53 }
 0x11c   :  { %1131 = vmatprep.subr.bf16.mxu1 %v1220_v57 }
 0x132   :  { %v387_v58 = vpop.xlane.xlu0 %386 }
 0x133   :  { %1212 = vrcp.f32 %v387_v58 }
 0x136   :  { %v278_v59 = vpop.xlane.xlu0 %277 }
 0x137   :  { %1214 = vrcp.f32 %v278_v59 }
 0x13a   :  { %v636_v52 = vpop.xlane.xlu1 %635 }
 0x13b   :  { %1216 = vrcp.f32 %v636_v52 }
 0x13d   :  { %v1213_v62 = vpop.eup %1212 }
 0x13e   :  { %v389_v1 = vmul.f32 %v1213_v62, %v1207_v37  ;;  %v364_v37 = vld [vmem:[%s1787_s4 + $0x50] sm:$0xff] }
 0x13f   :  { %v1171_v40 = vpack.c.bf16 %v365_v38, %v364_v37  ;;  %v714_v62 = vld [vmem:[%s1787_s4 + $0x110] sm:$0xff] }
 0x140   :  { %923 = vmatmul.mubr.msk.f32.vlgmr.msra.gmra.mrb[2].mxu1 %vm269_vm0, %v389_v1 }
 0x141   :  { %v1215_v5 = vpop.eup %1214  ;;  %1133 = vmatpush3.bf16.msra.mxu1 %v1132_v63  ;;  %957 = vmatprep.mubr.msk.f32.mxu1 %vm1219_vm7, %v1218_v54  ;;  %v715_v63 = vld [vmem:[%s1787_s4 + $0x118] sm:$0xff] }
 0x142   :  { %v280_v9 = vmul.f32 %v1215_v5, %v1209_v39  ;;  %1134 = vmatprep.subr.bf16.mxu1 %v1220_v57  ;;  %v1150_v39 = vpack.c.bf16 %v476_v36, %v475_v35  ;;  %v1183_v2 = vpack.c.bf16 %v715_v63, %v714_v62  ;;  %v718_v5 = vld [vmem:[%s1787_s4 + $0x130] sm:$0xff] }
 0x144   :  { %918 = vmatmul.mubr.msk.f32.vlgmr.msra.gmra.mrb[2].mxu0 %vm269_vm0, %v280_v9 }
 0x145   :  { %1136 = vmatpush3.bf16.msra.mxu1 %v1135_v6  ;;  %1157 = vmatpush3.bf16.msra.mxu0 %v1156_v7  ;;  %v1217_v56 = vpop.eup %1216  ;;  %v720_v7 = vld [vmem:[%s1787_s4 + $0x140] sm:$0xff] }
 0x146   :  { %1137 = vmatprep.subr.bf16.mxu1 %v1220_v57  ;;  %1158 = vmatprep.subr.bf16.mxu0 %v1220_v57  ;;  %v638_v61 = vmul.f32 %v1217_v56, %v1562_v14  ;;  %v716_v14 = vld [vmem:[%s1787_s4 + $0x120] sm:$0xff]  ;;  %v1192_v9 = vpack.c.bf16 %v721_v8, %v720_v7 }
 0x147   :  { %992 = vmatprep.mubr.msk.f32.mxu0 %vm1219_vm7, %v1218_v54  ;;  %v1186_v4 = vpack.c.bf16 %v717_v3, %v716_v14 }
 0x149   :  { %1139 = vmatpush3.bf16.msra.mxu1 %v1138_v13  ;;  %1160 = vmatpush3.bf16.msra.mxu0 %v1159_v15  ;;  %v724_v13 = vld [vmem:[%s1787_s4 + $0x160] sm:$0xff]  ;;  %v725_v15 = vld [vmem:[%s1787_s4 + $0x168] sm:$0xff] }
 0x14a   :  { %1140 = vmatprep.subr.bf16.mxu1 %v1220_v57  ;;  %1161 = vmatprep.subr.bf16.mxu0 %v1220_v57  ;;  %v1198_v16 = vpack.c.bf16 %v725_v15, %v724_v13 }
 0x14d   :  { %1142 = vmatpush3.bf16.msra.mxu1 %v1141_v20  ;;  %1163 = vmatpush3.bf16.msra.mxu0 %v1162_v21 }
 0x14e   :  { %1143 = vmatprep.subr.bf16.mxu1 %v1220_v57  ;;  %1164 = vmatprep.subr.bf16.mxu0 %v1220_v57 }
 0x151   :  { %1145 = vmatpush3.bf16.msra.mxu1 %v1144_v27  ;;  %1166 = vmatpush3.bf16.msra.mxu0 %v1165_v28 }
 0x152   :  { %1146 = vmatprep.subr.bf16.mxu1 %v1220_v57  ;;  %1167 = vmatprep.subr.bf16.mxu0 %v1220_v57 }
 0x155   :  { %1148 = vmatpush3.bf16.msra.mxu1 %v1147_v33  ;;  %1169 = vmatpush3.bf16.msra.mxu0 %v1168_v34 }
 0x156   :  { %1149 = vmatprep.subr.bf16.mxu1 %v1220_v57  ;;  %1170 = vmatprep.subr.bf16.mxu0 %v1220_v57 }
 0x159   :  { %1151 = vmatpush3.bf16.msra.mxu1 %v1150_v39  ;;  %1172 = vmatpush3.bf16.msra.mxu0 %v1171_v40 }
 0x15a   :  { %1152 = vmatprep.subr.bf16.mxu1 %v1220_v57  ;;  %1173 = vmatprep.subr.bf16.mxu0 %v1220_v57 }
 0x15d   :  { %1154 = vmatpush3.bf16.msra.mxu1 %v1153_v43  ;;  %1175 = vmatpush3.bf16.msra.mxu0 %v1174_v44 }
 0x15e   :  { %995 = vmatprep.subr.mxu1 %v1218_v54  ;;  %1176 = vmatprep.subr.bf16.mxu0 %v1220_v57 }
 0x161   :  { %1178 = vmatpush3.bf16.msra.mxu0 %v1177_v51 }
 0x17b   :  { %v855_v45 = vpop.f32.mrb[0].mxu1 }
 0x17c   :  { %v856_v46 = vpop.f32.mrb[1].mxu1 }
 0x17d   :  { %v857_v48 = vadd.f32 %v856_v46, %v855_v45 }
 0x213   :  { %v459_v58 = vpop.f32.mrb[2].mxu1 }
 0x214   :  { %v924_v59 = vpop.f32.mrb[3].mxu1  ;;  %958 = vmatmul.mubr.f32.vlgmr.msra.gmra.mrb[4].mxu1 %v459_v58 }
 0x215   :  { %996 = vmatpush3.msra.mxu1 %v857_v48  ;;  %997 = vmatprep.mubr.msk.f32.mxu1 %vm1219_vm7, %v1218_v54 }
 0x216   :  { %1179 = vmatprep.subr.bf16.mxu1 %v1220_v57 }
 0x217   :  { %v350_v0 = vpop.f32.mrb[2].mxu0 }
 0x218   :  { %993 = vmatmul.mubr.f32.vlgmr.msra.gmra.mrb[4].mxu0 %v350_v0  ;;  %998 = vmatmul.mubr.msk.f32.vlgmr.msra.gmra.mrb[6].mxu1 %vm269_vm0, %v638_v61  ;;  %v919_v1 = vpop.f32.mrb[3].mxu0 }
 0x219   :  { %1181 = vmatpush3.bf16.msra.mxu1 %v1180_v60  ;;  %1032 = vmatprep.mubr.msk.f32.mxu1 %vm1219_vm7, %v1218_v54  ;;  %v719_v54 = vld [vmem:[%s1787_s4 + $0x138] sm:$0xff] }
 0x21a   :  { %1182 = vmatprep.subr.bf16.mxu1 %v1220_v57  ;;  %v1189_v6 = vpack.c.bf16 %v719_v54, %v718_v5 }
 0x21d   :  { %1184 = vmatpush3.bf16.msra.mxu1 %v1183_v2 }
 0x21e   :  { %1185 = vmatprep.subr.bf16.mxu1 %v1220_v57 }
 0x221   :  { %1187 = vmatpush3.bf16.msra.mxu1 %v1186_v4 }
 0x222   :  { %1188 = vmatprep.subr.bf16.mxu1 %v1220_v57 }
 0x225   :  { %1190 = vmatpush3.bf16.msra.mxu1 %v1189_v6 }
 0x226   :  { %1191 = vmatprep.subr.bf16.mxu1 %v1220_v57 }
 0x229   :  { %1193 = vmatpush3.bf16.msra.mxu1 %v1192_v9 }
 0x22a   :  { %1194 = vmatprep.subr.bf16.mxu1 %v1220_v57 }
 0x22d   :  { %1196 = vmatpush3.bf16.msra.mxu1 %v1195_v12 }
 0x22e   :  { %1197 = vmatprep.subr.bf16.mxu1 %v1220_v57 }
 0x231   :  { %1199 = vmatpush3.bf16.msra.mxu1 %v1198_v16 }
 0x232   :  { %1200 = vmatprep.subr.bf16.mxu1 %v1220_v57  ;;  %v822_v57 = vld [vmem:[%s1788_s5] ss:$0 sm:$0xff] }
 0x235   :  { %1202 = vmatpush3.bf16.msra.mxu1 %v1201_v19 }
 0x2e7   :  { %v545_v20 = vpop.f32.mrb[4].mxu1 }
 0x2e8   :  { %v959_v21 = vpop.f32.mrb[5].mxu1 }
 0x2eb   :  { %v615_v23 = vpop.f32.mrb[4].mxu0  ;;  %v708_v24 = vpop.f32.mrb[6].mxu1 }
 0x2ec   :  { %v616_v25 = vadd.f32 %v615_v23, %v545_v20  ;;  %v999_v26 = vpop.f32.mrb[7].mxu1  ;;  %1033 = vmatmul.mubr.f32.vlgmr.msra.gmra.mrb[8].mxu1 %v708_v24  ;;  %v994_v27 = vpop.f32.mrb[5].mxu0 }
 0x3bf   :  { %v794_v28 = vpop.f32.mrb[8].mxu1 }
 0x3c0   :  { %v798_v29 = vadd.f32 %v794_v28, %v616_v25  ;;  %v1034_v30 = vpop.f32.mrb[9].mxu1 }
 0x3c2   :  { %v806_v31 = vadd.f32 %v822_v57, %v798_v29 }
 0x3c4   :  { %vm807_vm8 = vcmp.gt.f32.partialorder %v806_v31, 0.0  ;;  %v808_v32 = vmul.f32 0.01, %v806_v31 }
 0x3c6   :  { %v809_v33 = vsel %vm807_vm8, %v806_v31, %v808_v32 }
 0x3c7   :  { %810 = vst [vmem:[%s1789_s6] sm:$0xff] %v809_v33 }

// kernel: backbone_forward.8
= control target key start
LH: loop header
LB: loop body
LE: loop exit
PB: predicated region body
PF: predicated region fallthrough
CT: control target
= control target key end

     0   :  { %vm220_vm0 = vcmask 64512   ;;  %v1147_v3 = vmov 0.0   ;;  %vm1149_vm7 = vmmov 0   ;;  %s1590_s2 = inlined_call_operand.vmem [shape: f32[3,8,8], index: 2, kind: input, shape index: {}]   ;;  %s1591_s3 = inlined_call_operand.vmem [shape: f32[3,8,8], index: 3, kind: input, shape index: {}]   ;;  %s1592_s1 = inlined_call_operand.vmem [shape: f32[128,384], index: 1, kind: input, shape index: {}]   ;;  %s1593_s0 = inlined_call_operand.vmem [shape: f32[8,128], index: 0, kind: input, shape index: {}]   ;;  %s1594_s4 = inlined_call_operand.vmem [shape: f32[384,128], index: 4, kind: input, shape index: {}]   ;;  %s1595_s5 = inlined_call_operand.vmem [shape: f32[1,128], index: 5, kind: input, shape index: {}]   ;;  %s1596_s6 = inlined_call_operand.vmem [shape: f32[8,128], index: 6, kind: output, shape index: {}]  }
   0x1   :  { %v213_v0 = vld [vmem:[%s1590_s2] sm:$0xff]  ;;  %v768_v2 = vld [vmem:[%s1590_s2 + $0x8] sm:$0xff]  ;;  %136 = vmatprep.mubr.f32.mxu0 %v1147_v3  ;;  %v27_v12 = vld [vmem:[%s1592_s1 + $0x18] sm:$0xff]  ;;  %881 = vmatprep.mubr.msk.f32.mxu1 %vm1149_vm7, %v1147_v3 }
   0x2   :  { %v217_v1 = vld [vmem:[%s1591_s3] sm:$0xff]  ;;  %vm214_vm1 = vcmp.gt.f32.partialorder %v213_v0, 0.0  ;;  %v215_v4 = vmul.f32 0.01, %v213_v0  ;;  %vm323_vm3 = vcmp.gt.f32.partialorder %v768_v2, 0.0  ;;  %v769_v5 = vld [vmem:[%s1591_s3 + $0x8] sm:$0xff] }
   0x3   :  { %vm218_vm2 = vcmp.gt.f32.partialorder %v217_v1, 0.0  ;;  %v324_v6 = vmul.f32 0.01, %v768_v2  ;;  %vm328_vm4 = vcmp.gt.f32.partialorder %v769_v5, 0.0  ;;  %v25_v7 = vld [vmem:[%s1592_s1 + $0x8] sm:$0xff]  ;;  %v28_v8 = vld [vmem:[%s1592_s1 + $0x20] sm:$0xff] }
   0x4   :  { %v24_v9 = vld [vmem:[%s1592_s1] sm:$0xff]  ;;  %v216_v10 = vsel %vm214_vm1, %v213_v0, %v215_v4  ;;  %v1004_v11 = vpack.c.bf16 %v28_v8, %v25_v7  ;;  %v771_v13 = vld [vmem:[%s1590_s2 + $0x10] sm:$0xff]  ;;  %v31_v18 = vld [vmem:[%s1592_s1 + $0x38] sm:$0xff]  ;;  %v1148_v8 = vmov 0.0|0.0  }
   0x5   :  { %v772_v14 = vld [vmem:[%s1591_s3 + $0x10] sm:$0xff]  ;;  %v1216_v15 = vsel %vm218_vm2, %v216_v10, -9e+15  ;;  %v325_v16 = vsel %vm323_vm3, %v768_v2, %v324_v6  ;;  %v1006_v17 = vpack.c.bf16 %v27_v12, %v24_v9  ;;  %vm572_vm5 = vcmp.gt.f32.partialorder %v771_v13, 0.0  ;;  %v33_v25 = vld [vmem:[%s1592_s1 + $0x48] sm:$0xff]  ;;  %v40_v27 = vld [vmem:[%s1592_s1 + $0x80] sm:$0xff]  ;;  %1036 = vmatprep.subr.bf16.mxu1 %v1148_v8 }
   0x6   :  { %v34_v19 = vld [vmem:[%s1592_s1 + $0x50] sm:$0xff]  ;;  %v221_v21 = vsel %vm220_vm0, %v1216_v15, -inf  ;;  %v1230_v22 = vsel %vm328_vm4, %v325_v16, -9e+15  ;;  %1005 = vmatprep.subr.bf16.mxu0 %v1004_v11  ;;  %v573_v23 = vmul.f32 0.01, %v771_v13 }
   0x7   :  { %v30_v20 = vld [vmem:[%s1592_s1 + $0x30] sm:$0xff]  ;;  %vm577_vm6 = vcmp.gt.f32.partialorder %v772_v14, 0.0  ;;  %222 = vmax.xlane.f32.xlu0 %v221_v21  ;;  %1007 = vmatpush1.bf16.msra.mxu0 %v1006_v17  ;;  %v1008_v24 = vpack.c.bf16 %v34_v19, %v31_v18  ;;  %v37_v26 = vld [vmem:[%s1592_s1 + $0x68] sm:$0xff]  ;;  %v330_v28 = vsel %vm220_vm0, %v1230_v22, -inf  ;;  %v36_v32 = vld [vmem:[%s1592_s1 + $0x60] sm:$0xff] }
   0x8   :  { %v574_v29 = vsel %vm572_vm5, %v771_v13, %v573_v23  ;;  %v1010_v30 = vpack.c.bf16 %v33_v25, %v30_v20  ;;  %v1012_v31 = vpack.c.bf16 %v40_v27, %v37_v26  ;;  %v39_v33 = vld [vmem:[%s1592_s1 + $0x78] sm:$0xff]  ;;  %v46_v36 = vld [vmem:[%s1592_s1 + $0xb0] sm:$0xff]  ;;  %v45_v41 = vld [vmem:[%s1592_s1 + $0xa8] sm:$0xff] }
   0x9   :  { %v1250_v34 = vsel %vm577_vm6, %v574_v29, -9e+15  ;;  %1009 = vmatprep.subr.bf16.mxu0 %v1008_v24  ;;  %v43_v35 = vld [vmem:[%s1592_s1 + $0x98] sm:$0xff]  ;;  %v1014_v37 = vpack.c.bf16 %v39_v33, %v36_v32  ;;  %v42_v40 = vld [vmem:[%s1592_s1 + $0x90] sm:$0xff]  ;;  %v49_v42 = vld [vmem:[%s1592_s1 + $0xc8] sm:$0xff] }
   0xa   :  { %v579_v38 = vsel %vm220_vm0, %v1250_v34, -inf  ;;  %v1016_v39 = vpack.c.bf16 %v46_v36, %v43_v35  ;;  %v52_v43 = vld [vmem:[%s1592_s1 + $0xe0] sm:$0xff]  ;;  %v1018_v44 = vpack.c.bf16 %v45_v41, %v42_v40  ;;  %v51_v47 = vld [vmem:[%s1592_s1 + $0xd8] sm:$0xff]  ;;  %v58_v49 = vld [vmem:[%s1592_s1 + $0x110] sm:$0xff] }
   0xb   :  { %331 = vmax.xlane.f32.xlu0 %v330_v28  ;;  %1011 = vmatpush1.bf16.msra.mxu0 %v1010_v30  ;;  %v1020_v45 = vpack.c.bf16 %v52_v43, %v49_v42  ;;  %v48_v46 = vld [vmem:[%s1592_s1 + $0xc0] sm:$0xff]  ;;  %v55_v48 = vld [vmem:[%s1592_s1 + $0xf8] sm:$0xff]  ;;  %v54_v52 = vld [vmem:[%s1592_s1 + $0xf0] sm:$0xff] }
   0xc   :  { %1013 = vmatprep.subr.bf16.mxu0 %v1012_v31  ;;  %v1022_v50 = vpack.c.bf16 %v51_v47, %v48_v46  ;;  %v1024_v51 = vpack.c.bf16 %v58_v49, %v55_v48  ;;  %v57_v53 = vld [vmem:[%s1592_s1 + $0x108] sm:$0xff]  ;;  %v64_v55 = vld [vmem:[%s1592_s1 + $0x140] sm:$0xff]  ;;  %v63_v59 = vld [vmem:[%s1592_s1 + $0x138] sm:$0xff] }
   0xd   :  { %v61_v54 = vld [vmem:[%s1592_s1 + $0x128] sm:$0xff]  ;;  %v1026_v56 = vpack.c.bf16 %v57_v53, %v54_v52  ;;  %v60_v58 = vld [vmem:[%s1592_s1 + $0x120] sm:$0xff]  ;;  %v67_v60 = vld [vmem:[%s1592_s1 + $0x158] sm:$0xff] }
   0xe   :  { %v1028_v57 = vpack.c.bf16 %v64_v55, %v61_v54  ;;  %v70_v61 = vld [vmem:[%s1592_s1 + $0x170] sm:$0xff]  ;;  %v1030_v62 = vpack.c.bf16 %v63_v59, %v60_v58  ;;  %v69_v1 = vld [vmem:[%s1592_s1 + $0x168] sm:$0xff]  ;;  %v1317_v4 = vld [vmem:[%s1593_s0] sm:$0xff] }
   0xf   :  { %580 = vmax.xlane.f32.xlu0 %v579_v38  ;;  %1015 = vmatpush1.bf16.msra.mxu0 %v1014_v37  ;;  %v1032_v63 = vpack.c.bf16 %v70_v61, %v67_v60  ;;  %v66_v0 = vld [vmem:[%s1592_s1 + $0x150] sm:$0xff]  ;;  %v29_v6 = vld [vmem:[%s1592_s1 + $0x28] sm:$0xff]  ;;  %v32_v7 = vld [vmem:[%s1592_s1 + $0x40] sm:$0xff] }
  0x10   :  { %1017 = vmatprep.subr.bf16.mxu0 %v1016_v39  ;;  %v1034_v2 = vpack.c.bf16 %v69_v1, %v66_v0  ;;  %v26_v5 = vld [vmem:[%s1592_s1 + $0x10] sm:$0xff]  ;;  %v35_v10 = vld [vmem:[%s1592_s1 + $0x58] sm:$0xff]  ;;  %v41_v13 = vld [vmem:[%s1592_s1 + $0x88] sm:$0xff] }
  0x11   :  { %v1037_v9 = vpack.c.bf16 %v29_v6, %v26_v5  ;;  %v1040_v11 = vpack.c.bf16 %v35_v10, %v32_v7  ;;  %v38_v12 = vld [vmem:[%s1592_s1 + $0x70] sm:$0xff]  ;;  %v44_v16 = vld [vmem:[%s1592_s1 + $0xa0] sm:$0xff]  ;;  %v47_v17 = vld [vmem:[%s1592_s1 + $0xb8] sm:$0xff] }
  0x12   :  { %v1043_v14 = vpack.c.bf16 %v41_v13, %v38_v12  ;;  %v1046_v18 = vpack.c.bf16 %v47_v17, %v44_v16  ;;  %v50_v33 = vld [vmem:[%s1592_s1 + $0xd0] sm:$0xff]  ;;  %v56_v36 = vld [vmem:[%s1592_s1 + $0x100] sm:$0xff]  ;;  %v59_v37 = vld [vmem:[%s1592_s1 + $0x118] sm:$0xff] }
  0x13   :  { %1019 = vmatpush1.bf16.msra.mxu0 %v1018_v44  ;;  %1038 = vmatpush3.bf16.msra.mxu1 %v1037_v9  ;;  %v1052_v38 = vpack.c.bf16 %v59_v37, %v56_v36  ;;  %v62_v39 = vld [vmem:[%s1592_s1 + $0x130] sm:$0xff]  ;;  %v65_v40 = vld [vmem:[%s1592_s1 + $0x148] sm:$0xff]  ;;  %v68_v42 = vld [vmem:[%s1592_s1 + $0x160] sm:$0xff] }
  0x14   :  { %1021 = vmatprep.subr.bf16.mxu0 %v1020_v45  ;;  %1039 = vmatprep.subr.bf16.mxu1 %v1148_v8  ;;  %v1055_v41 = vpack.c.bf16 %v65_v40, %v62_v39  ;;  %v71_v43 = vld [vmem:[%s1592_s1 + $0x178] sm:$0xff]  ;;  %v305_v45 = vld [vmem:[%s1594_s4] sm:$0xff]  ;;  %v306_v46 = vld [vmem:[%s1594_s4 + $0x8] sm:$0xff] }
  0x15   :  { %v1058_v44 = vpack.c.bf16 %v71_v43, %v68_v42  ;;  %v1085_v47 = vpack.c.bf16 %v306_v46, %v305_v45  ;;  %v307_v48 = vld [vmem:[%s1594_s4 + $0x10] sm:$0xff]  ;;  %v308_v49 = vld [vmem:[%s1594_s4 + $0x18] sm:$0xff]  ;;  %v310_v52 = vld [vmem:[%s1594_s4 + $0x28] sm:$0xff] }
  0x16   :  { %v311_v54 = vld [vmem:[%s1594_s4 + $0x30] sm:$0xff]  ;;  %v312_v55 = vld [vmem:[%s1594_s4 + $0x38] sm:$0xff]  ;;  %v314_v58 = vld [vmem:[%s1594_s4 + $0x48] sm:$0xff] }
  0x17   :  { %1023 = vmatpush1.bf16.msra.mxu0 %v1022_v50  ;;  %1041 = vmatpush3.bf16.msra.mxu1 %v1040_v11  ;;  %v1088_v50 = vpack.c.bf16 %v308_v49, %v307_v48  ;;  %v315_v60 = vld [vmem:[%s1594_s4 + $0x50] sm:$0xff]  ;;  %v316_v61 = vld [vmem:[%s1594_s4 + $0x58] sm:$0xff]  ;;  %v318_v0 = vld [vmem:[%s1594_s4 + $0x68] sm:$0xff] }
  0x18   :  { %1025 = vmatprep.subr.bf16.mxu0 %v1024_v51  ;;  %1042 = vmatprep.subr.bf16.mxu1 %v1148_v8  ;;  %v309_v51 = vld [vmem:[%s1594_s4 + $0x20] sm:$0xff]  ;;  %v320_v5 = vld [vmem:[%s1594_s4 + $0x78] sm:$0xff]  ;;  %v415_v16 = vld [vmem:[%s1594_s4 + $0x88] sm:$0xff] }
  0x19   :  { %v1091_v53 = vpack.c.bf16 %v310_v52, %v309_v51  ;;  %v427_v36 = vld [vmem:[%s1594_s4 + $0xe8] sm:$0xff]  ;;  %v429_v39 = vld [vmem:[%s1594_s4 + $0xf8] sm:$0xff]  ;;  %v665_v48 = vld [vmem:[%s1594_s4 + $0x110] sm:$0xff] }
  0x1a   :  { %v664_v45 = vld [vmem:[%s1594_s4 + $0x108] sm:$0xff]  ;;  %v666_v49 = vld [vmem:[%s1594_s4 + $0x118] sm:$0xff] }
  0x1b   :  { %1027 = vmatpush1.bf16.msra.mxu0 %v1026_v56  ;;  %1044 = vmatpush3.bf16.msra.mxu1 %v1043_v14  ;;  %v1094_v56 = vpack.c.bf16 %v312_v55, %v311_v54  ;;  %v414_v14 = vld [vmem:[%s1594_s4 + $0x80] sm:$0xff]  ;;  %v1112_v51 = vpack.c.bf16 %v666_v49, %v665_v48  ;;  %v668_v55 = vld [vmem:[%s1594_s4 + $0x128] sm:$0xff] }
  0x1c   :  { %1029 = vmatprep.subr.bf16.mxu0 %v1028_v57  ;;  %1045 = vmatprep.subr.bf16.mxu1 %v1148_v8  ;;  %v313_v57 = vld [vmem:[%s1594_s4 + $0x40] sm:$0xff] }
  0x1d   :  { %v1097_v59 = vpack.c.bf16 %v314_v58, %v313_v57  ;;  %v667_v54 = vld [vmem:[%s1594_s4 + $0x120] sm:$0xff] }
  0x1e   :  { %v1115_v58 = vpack.c.bf16 %v668_v55, %v667_v54 }
  0x1f   :  { %1031 = vmatpush1.bf16.msra.mxu0 %v1030_v62  ;;  %1047 = vmatpush3.bf16.msra.mxu1 %v1046_v18  ;;  %v1100_v62 = vpack.c.bf16 %v316_v61, %v315_v60  ;;  %v1061_v18 = vpack.c.bf16 %v415_v16, %v414_v14  ;;  %v670_v60 = vld [vmem:[%s1594_s4 + $0x138] sm:$0xff] }
  0x20   :  { %1033 = vmatprep.subr.bf16.mxu0 %v1032_v63  ;;  %1048 = vmatprep.subr.bf16.mxu1 %v1148_v8  ;;  %v317_v63 = vld [vmem:[%s1594_s4 + $0x60] sm:$0xff] }
  0x21   :  { %v1103_v1 = vpack.c.bf16 %v318_v0, %v317_v63  ;;  %v673_v63 = vld [vmem:[%s1594_s4 + $0x150] sm:$0xff]  ;;  %v674_v0 = vld [vmem:[%s1594_s4 + $0x158] sm:$0xff] }
  0x23   :  { %1035 = vmatpush1.bf16.msra.mxu0 %v1034_v2  ;;  %v319_v2 = vld [vmem:[%s1594_s4 + $0x70] sm:$0xff] }
  0x24   :  { %884 = vmatprep.subr.mxu0 %v1147_v3  ;;  %v1106_v6 = vpack.c.bf16 %v320_v5, %v319_v2  ;;  %v675_v2 = vld [vmem:[%s1594_s4 + $0x160] sm:$0xff]  ;;  %v676_v5 = vld [vmem:[%s1594_s4 + $0x168] sm:$0xff] }
  0x26   :  { %137 = vmatmul.mubr.f32.vlgmr.msra.gmra.mrb[0].mxu0 %v1317_v4 }
  0x27   :  { %886 = vmatprep.mubr.msk.f32.mxu0 %vm1149_vm7, %v1147_v3 }
  0x94   :  { %v223_v19 = vpop.xlane.xlu0 %222 }
  0x95   :  { %v224_v20 = vsub.f32 %v1216_v15, %v223_v19 }
  0x97   :  { %v225_v21 = vmul.f32 1.442695, %v224_v20  ;;  %v416_v20 = vld [vmem:[%s1594_s4 + $0x90] sm:$0xff] }
  0x98   :  { %v332_v23 = vpop.xlane.xlu0 %331 }
  0x99   :  { %1135 = vpow2.f32 %v225_v21  ;;  %v333_v24 = vsub.f32 %v1230_v22, %v332_v23  ;;  %v417_v21 = vld [vmem:[%s1594_s4 + $0x98] sm:$0xff] }
  0x9a   :  { %v1064_v23 = vpack.c.bf16 %v417_v21, %v416_v20 }
  0x9b   :  { %v334_v25 = vmul.f32 1.442695, %v333_v24  ;;  %v418_v24 = vld [vmem:[%s1594_s4 + $0xa0] sm:$0xff] }
  0x9c   :  { %v581_v26 = vpop.xlane.xlu0 %580 }
  0x9d   :  { %1137 = vpow2.f32 %v334_v25  ;;  %v582_v27 = vsub.f32 %v1250_v34, %v581_v26  ;;  %v53_v34 = vld [vmem:[%s1592_s1 + $0xe8] sm:$0xff] }
  0x9e   :  { %v1049_v35 = vpack.c.bf16 %v53_v34, %v50_v33  ;;  %v419_v25 = vld [vmem:[%s1594_s4 + $0xa8] sm:$0xff]  ;;  %v425_v33 = vld [vmem:[%s1594_s4 + $0xd8] sm:$0xff] }
  0x9f   :  { %v583_v28 = vmul.f32 1.442695, %v582_v27  ;;  %v1067_v26 = vpack.c.bf16 %v419_v25, %v418_v24  ;;  %v420_v27 = vld [vmem:[%s1594_s4 + $0xb0] sm:$0xff] }
  0xa0   :  { %1050 = vmatpush3.bf16.msra.mxu1 %v1049_v35  ;;  %v426_v35 = vld [vmem:[%s1594_s4 + $0xe0] sm:$0xff] }
  0xa1   :  { %1139 = vpow2.f32 %v583_v28  ;;  %1051 = vmatprep.subr.bf16.mxu1 %v1148_v8  ;;  %v421_v28 = vld [vmem:[%s1594_s4 + $0xb8] sm:$0xff]  ;;  %v1079_v37 = vpack.c.bf16 %v427_v36, %v426_v35 }
  0xa3   :  { %v1353_v29 = vpop.eup %1135 }
  0xa4   :  { %v227_v30 = vsel %vm220_vm0, %v1353_v29, 0.0  ;;  %1053 = vmatpush3.bf16.msra.mxu1 %v1052_v38  ;;  %v428_v38 = vld [vmem:[%s1594_s4 + $0xf0] sm:$0xff] }
  0xa5   :  { %228 = vadd.xlane.f32.xlu1 %v227_v30  ;;  %1054 = vmatprep.subr.bf16.mxu1 %v1148_v8  ;;  %v422_v30 = vld [vmem:[%s1594_s4 + $0xc0] sm:$0xff]  ;;  %v1082_v40 = vpack.c.bf16 %v429_v39, %v428_v38 }
  0xa7   :  { %v1357_v31 = vpop.eup %1137 }
  0xa8   :  { %v336_v15 = vsel %vm220_vm0, %v1357_v31, 0.0  ;;  %1056 = vmatpush3.bf16.msra.mxu1 %v1055_v41 }
  0xa9   :  { %337 = vadd.xlane.f32.xlu1 %v336_v15  ;;  %1057 = vmatprep.subr.bf16.mxu1 %v1148_v8 }
  0xab   :  { %v1361_v22 = vpop.eup %1139 }
  0xac   :  { %v585_v32 = vsel %vm220_vm0, %v1361_v22, 0.0  ;;  %1059 = vmatpush3.bf16.msra.mxu1 %v1058_v44  ;;  %v663_v44 = vld [vmem:[%s1594_s4 + $0x100] sm:$0xff] }
  0xad   :  { %586 = vadd.xlane.f32.xlu1 %v585_v32  ;;  %1084 = vmatprep.subr.bf16.mxu1 %v1148_v8  ;;  %v424_v32 = vld [vmem:[%s1594_s4 + $0xd0] sm:$0xff]  ;;  %v1109_v46 = vpack.c.bf16 %v664_v45, %v663_v44 }
  0xae   :  { %v1076_v34 = vpack.c.bf16 %v425_v33, %v424_v32 }
  0xaf   :  { %882 = vmatmul.mubr.f32.vlgmr.msra.gmra.mrb[0].mxu1 %v1317_v4 }
  0xb0   :  { %961 = vmatprep.mubr.msk.f32.mxu1 %vm1149_vm7, %v1147_v3  ;;  %1086 = vmatpush3.bf16.msra.mxu1 %v1085_v47 }
  0xb1   :  { %1087 = vmatprep.subr.bf16.mxu1 %v1148_v8 }
  0xb4   :  { %1089 = vmatpush3.bf16.msra.mxu1 %v1088_v50 }
  0xb5   :  { %1090 = vmatprep.subr.bf16.mxu1 %v1148_v8 }
  0xb8   :  { %1092 = vmatpush3.bf16.msra.mxu1 %v1091_v53 }
  0xb9   :  { %1093 = vmatprep.subr.bf16.mxu1 %v1148_v8 }
  0xbc   :  { %1095 = vmatpush3.bf16.msra.mxu1 %v1094_v56 }
  0xbd   :  { %1096 = vmatprep.subr.bf16.mxu1 %v1148_v8 }
  0xc0   :  { %1098 = vmatpush3.bf16.msra.mxu1 %v1097_v59  ;;  %v669_v59 = vld [vmem:[%s1594_s4 + $0x130] sm:$0xff] }
  0xc1   :  { %1099 = vmatprep.subr.bf16.mxu1 %v1148_v8  ;;  %v1118_v61 = vpack.c.bf16 %v670_v60, %v669_v59 }
  0xc4   :  { %1101 = vmatpush3.bf16.msra.mxu1 %v1100_v62 }
  0xc5   :  { %1102 = vmatprep.subr.bf16.mxu1 %v1148_v8 }
  0xc8   :  { %1104 = vmatpush3.bf16.msra.mxu1 %v1103_v1  ;;  %v1124_v1 = vpack.c.bf16 %v674_v0, %v673_v63 }
  0xc9   :  { %1105 = vmatprep.subr.bf16.mxu1 %v1148_v8 }
  0xcc   :  { %1107 = vmatpush3.bf16.msra.mxu1 %v1106_v6  ;;  %v1127_v6 = vpack.c.bf16 %v676_v5, %v675_v2 }
  0xcd   :  { %1108 = vmatprep.subr.bf16.mxu1 %v1148_v8 }
  0xf9   :  { %v138_v7 = vpop.f32.mrb[0].mxu0 }
  0xfa   :  { %v140_v9 = vpop.f32.mrb[1].mxu0  ;;  %885 = vmatpush3.msra.mxu0 %v138_v7  ;;  %v677_v7 = vld [vmem:[%s1594_s4 + $0x170] sm:$0xff] }
  0xfb   :  { %889 = vmatprep.subr.mxu0 %v1147_v3 }
 0x132   :  { %v229_v10 = vpop.xlane.xlu1 %228 }
 0x133   :  { %1141 = vrcp.f32 %v229_v10 }
 0x136   :  { %v338_v11 = vpop.xlane.xlu1 %337 }
 0x137   :  { %1143 = vrcp.f32 %v338_v11 }
 0x13a   :  { %v587_v43 = vpop.xlane.xlu1 %586 }
 0x13b   :  { %1145 = vrcp.f32 %v587_v43 }
 0x13d   :  { %v1142_v12 = vpop.eup %1141 }
 0x13e   :  { %v231_v13 = vmul.f32 %v1142_v12, %v1353_v29  ;;  %v1070_v29 = vpack.c.bf16 %v421_v28, %v420_v27 }
 0x140   :  { %887 = vmatmul.mubr.msk.f32.vlgmr.msra.gmra.mrb[2].mxu0 %vm220_vm0, %v231_v13 }
 0x141   :  { %v1144_v17 = vpop.eup %1143  ;;  %890 = vmatpush3.msra.mxu0 %v140_v9  ;;  %891 = vmatprep.mubr.msk.f32.mxu0 %vm1149_vm7, %v1147_v3  ;;  %v678_v9 = vld [vmem:[%s1594_s4 + $0x178] sm:$0xff] }
 0x142   :  { %v340_v19 = vmul.f32 %v1144_v17, %v1357_v31  ;;  %1060 = vmatprep.subr.bf16.mxu0 %v1148_v8  ;;  %v423_v31 = vld [vmem:[%s1594_s4 + $0xc8] sm:$0xff]  ;;  %v1130_v10 = vpack.c.bf16 %v678_v9, %v677_v7 }
 0x143   :  { %v1073_v15 = vpack.c.bf16 %v423_v31, %v422_v30 }
 0x144   :  { %892 = vmatmul.mubr.msk.f32.vlgmr.msra.gmra.mrb[4].mxu0 %vm220_vm0, %v340_v19 }
 0x145   :  { %1062 = vmatpush3.bf16.msra.mxu0 %v1061_v18  ;;  %926 = vmatprep.mubr.msk.f32.mxu0 %vm1149_vm7, %v1147_v3  ;;  %v1146_v52 = vpop.eup %1145 }
 0x146   :  { %1063 = vmatprep.subr.bf16.mxu0 %v1148_v8  ;;  %v589_v57 = vmul.f32 %v1146_v52, %v1361_v22  ;;  %v672_v22 = vld [vmem:[%s1594_s4 + $0x148] sm:$0xff] }
 0x149   :  { %1065 = vmatpush3.bf16.msra.mxu0 %v1064_v23 }
 0x14a   :  { %1066 = vmatprep.subr.bf16.mxu0 %v1148_v8 }
 0x14d   :  { %1068 = vmatpush3.bf16.msra.mxu0 %v1067_v26 }
 0x14e   :  { %1069 = vmatprep.subr.bf16.mxu0 %v1148_v8 }
 0x151   :  { %1071 = vmatpush3.bf16.msra.mxu0 %v1070_v29 }
 0x152   :  { %1072 = vmatprep.subr.bf16.mxu0 %v1148_v8 }
 0x155   :  { %1074 = vmatpush3.bf16.msra.mxu0 %v1073_v15 }
 0x156   :  { %1075 = vmatprep.subr.bf16.mxu0 %v1148_v8 }
 0x159   :  { %1077 = vmatpush3.bf16.msra.mxu0 %v1076_v34 }
 0x15a   :  { %1078 = vmatprep.subr.bf16.mxu0 %v1148_v8 }
 0x15d   :  { %1080 = vmatpush3.bf16.msra.mxu0 %v1079_v37 }
 0x15e   :  { %1081 = vmatprep.subr.bf16.mxu0 %v1148_v8 }
 0x161   :  { %1083 = vmatpush3.bf16.msra.mxu0 %v1082_v40 }
 0x162   :  { %964 = vmatprep.subr.mxu0 %v1147_v3 }
 0x182   :  { %v209_v41 = vpop.f32.mrb[0].mxu1 }
 0x183   :  { %v883_v42 = vpop.f32.mrb[1].mxu1 }
 0x213   :  { %v301_v47 = vpop.f32.mrb[2].mxu0 }
 0x214   :  { %v888_v50 = vpop.f32.mrb[3].mxu0  ;;  %962 = vmatmul.mubr.f32.vlgmr.msra.gmra.mrb[2].mxu1 %v301_v47 }
 0x215   :  { %1110 = vmatpush3.bf16.msra.mxu1 %v1109_v46  ;;  %1001 = vmatprep.mubr.msk.f32.mxu1 %vm1149_vm7, %v1147_v3 }
 0x216   :  { %1111 = vmatprep.subr.bf16.mxu1 %v1148_v8 }
 0x217   :  { %v410_v53 = vpop.f32.mrb[4].mxu0 }
 0x218   :  { %v893_v56 = vpop.f32.mrb[5].mxu0  ;;  %927 = vmatmul.mubr.f32.vlgmr.msra.gmra.mrb[6].mxu0 %v410_v53 }
 0x219   :  { %965 = vmatpush3.msra.mxu0 %v209_v41  ;;  %966 = vmatprep.mubr.msk.f32.mxu0 %vm1149_vm7, %v1147_v3  ;;  %v671_v3 = vld [vmem:[%s1594_s4 + $0x140] sm:$0xff] }
 0x21a   :  { %1113 = vmatpush3.bf16.msra.mxu1 %v1112_v51  ;;  %v1121_v62 = vpack.c.bf16 %v672_v22, %v671_v3 }
 0x21b   :  { %1114 = vmatprep.subr.bf16.mxu1 %v1148_v8 }
 0x21c   :  { %967 = vmatmul.mubr.msk.f32.vlgmr.msra.gmra.mrb[8].mxu0 %vm220_vm0, %v589_v57 }
 0x21e   :  { %1116 = vmatpush3.bf16.msra.mxu1 %v1115_v58 }
 0x21f   :  { %1117 = vmatprep.subr.bf16.mxu1 %v1148_v8 }
 0x222   :  { %1119 = vmatpush3.bf16.msra.mxu1 %v1118_v61 }
 0x223   :  { %1120 = vmatprep.subr.bf16.mxu1 %v1148_v8 }
 0x226   :  { %1122 = vmatpush3.bf16.msra.mxu1 %v1121_v62 }
 0x227   :  { %1123 = vmatprep.subr.bf16.mxu1 %v1148_v8 }
 0x22a   :  { %1125 = vmatpush3.bf16.msra.mxu1 %v1124_v1 }
 0x22b   :  { %1126 = vmatprep.subr.bf16.mxu1 %v1148_v8 }
 0x22e   :  { %1128 = vmatpush3.bf16.msra.mxu1 %v1127_v6 }
 0x22f   :  { %1129 = vmatprep.subr.bf16.mxu1 %v1148_v8  ;;  %v774_v8 = vld [vmem:[%s1595_s5] ss:$0 sm:$0xff] }
 0x232   :  { %1131 = vmatpush3.bf16.msra.mxu1 %v1130_v10 }
 0x2e7   :  { %v566_v11 = vpop.f32.mrb[2].mxu1 }
 0x2e8   :  { %v963_v12 = vpop.f32.mrb[3].mxu1 }
 0x2eb   :  { %v496_v13 = vpop.f32.mrb[6].mxu0 }
 0x2ec   :  { %v567_v14 = vadd.f32 %v566_v11, %v496_v13  ;;  %v928_v16 = vpop.f32.mrb[7].mxu0 }
 0x2ef   :  { %v659_v17 = vpop.f32.mrb[8].mxu0 }
 0x2f0   :  { %v968_v18 = vpop.f32.mrb[9].mxu0  ;;  %1002 = vmatmul.mubr.f32.vlgmr.msra.gmra.mrb[4].mxu1 %v659_v17 }
 0x3c3   :  { %v745_v19 = vpop.f32.mrb[4].mxu1 }
 0x3c4   :  { %v749_v20 = vadd.f32 %v745_v19, %v567_v14  ;;  %v1003_v21 = vpop.f32.mrb[5].mxu1 }
 0x3c6   :  { %v757_v23 = vadd.f32 %v774_v8, %v749_v20 }
 0x3c8   :  { %vm758_vm8 = vcmp.gt.f32.partialorder %v757_v23, 0.0  ;;  %v759_v24 = vmul.f32 0.01, %v757_v23 }
 0x3ca   :  { %v760_v25 = vsel %vm758_vm8, %v757_v23, %v759_v24 }
 0x3cb   :  { %v761_v26 = vadd.f32 %v760_v25, %v1317_v4 }
 0x3cd   :  { %762 = vst [vmem:[%s1596_s6] sm:$0xff] %v761_v26 }

// kernel: backbone_forward.10
= control target key start
LH: loop header
LB: loop body
LE: loop exit
PB: predicated region body
PF: predicated region fallthrough
CT: control target
= control target key end

     0   :  { %vm459_vm2 = vcmask 64512   ;;  %vm1520_vm7 = vmmov 0   ;;  %s2245_s1 = inlined_call_operand.vmem [shape: f32[384,384], index: 1, kind: input, shape index: {}]   ;;  %s2246_s2 = inlined_call_operand.vmem [shape: f32[3,8,8], index: 2, kind: input, shape index: {}]   ;;  %s2247_s3 = inlined_call_operand.vmem [shape: f32[3,8,8], index: 3, kind: input, shape index: {}]   ;;  %s2248_s0 = inlined_call_operand.vmem [shape: f32[8,384], index: 0, kind: input, shape index: {}]   ;;  %s2249_s4 = inlined_call_operand.vmem [shape: f32[384,128], index: 4, kind: input, shape index: {}]   ;;  %s2250_s5 = inlined_call_operand.vmem [shape: f32[1,128], index: 5, kind: input, shape index: {}]   ;;  %s2251_s6 = inlined_call_operand.vmem [shape: f32[8,128], index: 6, kind: output, shape index: {}]  }
   0x1   :  { %v27_v0 = vld [vmem:[%s2245_s1 + $0x8] sm:$0xff]  ;;  %v30_v1 = vld [vmem:[%s2245_s1 + $0x20] sm:$0xff]  ;;  %v29_v4 = vld [vmem:[%s2245_s1 + $0x18] sm:$0xff] }
   0x2   :  { %v26_v2 = vld [vmem:[%s2245_s1] sm:$0xff]  ;;  %v1277_v3 = vpack.c.bf16 %v30_v1, %v27_v0  ;;  %v1006_v5 = vld [vmem:[%s2246_s2 + $0x8] sm:$0xff]  ;;  %v33_v9 = vld [vmem:[%s2245_s1 + $0x38] sm:$0xff] }
   0x3   :  { %v1007_v6 = vld [vmem:[%s2247_s3 + $0x8] sm:$0xff]  ;;  %v1279_v7 = vpack.c.bf16 %v29_v4, %v26_v2  ;;  %vm562_vm0 = vcmp.gt.f32.partialorder %v1006_v5, 0.0  ;;  %v563_v8 = vmul.f32 0.01, %v1006_v5  ;;  %v36_v10 = vld [vmem:[%s2245_s1 + $0x50] sm:$0xff]  ;;  %v452_v14 = vld [vmem:[%s2246_s2] sm:$0xff] }
   0x4   :  { %vm567_vm1 = vcmp.gt.f32.partialorder %v1007_v6, 0.0  ;;  %1278 = vmatprep.subr.bf16.mxu0 %v1277_v3  ;;  %v1281_v11 = vpack.c.bf16 %v36_v10, %v33_v9  ;;  %v32_v12 = vld [vmem:[%s2245_s1 + $0x30] sm:$0xff]  ;;  %v35_v13 = vld [vmem:[%s2245_s1 + $0x48] sm:$0xff]  ;;  %vm453_vm3 = vcmp.gt.f32.partialorder %v452_v14, 0.0  ;;  %v454_v17 = vmul.f32 0.01, %v452_v14 }
   0x5   :  { %1280 = vmatpush1.bf16.msra.mxu0 %v1279_v7  ;;  %v564_v15 = vsel %vm562_vm0, %v1006_v5, %v563_v8  ;;  %v1283_v16 = vpack.c.bf16 %v35_v13, %v32_v12  ;;  %v456_v18 = vld [vmem:[%s2247_s3] sm:$0xff]  ;;  %v39_v19 = vld [vmem:[%s2245_s1 + $0x68] sm:$0xff]  ;;  %v41_v24 = vld [vmem:[%s2245_s1 + $0x78] sm:$0xff] }
   0x6   :  { %v42_v20 = vld [vmem:[%s2245_s1 + $0x80] sm:$0xff]  ;;  %v1599_v21 = vsel %vm567_vm1, %v564_v15, -9e+15  ;;  %1282 = vmatprep.subr.bf16.mxu0 %v1281_v11  ;;  %vm457_vm4 = vcmp.gt.f32.partialorder %v456_v18, 0.0  ;;  %v455_v26 = vsel %vm453_vm3, %v452_v14, %v454_v17  ;;  %v45_v27 = vld [vmem:[%s2245_s1 + $0x98] sm:$0xff]  ;;  %v48_v28 = vld [vmem:[%s2245_s1 + $0xb0] sm:$0xff] }
   0x7   :  { %v1285_v22 = vpack.c.bf16 %v42_v20, %v39_v19  ;;  %v38_v23 = vld [vmem:[%s2245_s1 + $0x60] sm:$0xff]  ;;  %v569_v25 = vsel %vm459_vm2, %v1599_v21, -inf  ;;  %v1615_v29 = vsel %vm457_vm4, %v455_v26, -9e+15  ;;  %v1289_v32 = vpack.c.bf16 %v48_v28, %v45_v27  ;;  %v44_v33 = vld [vmem:[%s2245_s1 + $0x90] sm:$0xff]  ;;  %v47_v34 = vld [vmem:[%s2245_s1 + $0xa8] sm:$0xff] }
   0x8   :  { %570 = vmax.xlane.f32.xlu0 %v569_v25  ;;  %v460_v30 = vsel %vm459_vm2, %v1615_v29, -inf  ;;  %v1287_v31 = vpack.c.bf16 %v41_v24, %v38_v23  ;;  %v51_v35 = vld [vmem:[%s2245_s1 + $0xc8] sm:$0xff]  ;;  %v54_v36 = vld [vmem:[%s2245_s1 + $0xe0] sm:$0xff]  ;;  %v1291_v37 = vpack.c.bf16 %v47_v34, %v44_v33  ;;  %v53_v40 = vld [vmem:[%s2245_s1 + $0xd8] sm:$0xff] }
   0x9   :  { %1284 = vmatpush1.bf16.msra.mxu0 %v1283_v16  ;;  %461 = vmax.xlane.f32.xlu1 %v460_v30  ;;  %v1293_v38 = vpack.c.bf16 %v54_v36, %v51_v35  ;;  %v50_v39 = vld [vmem:[%s2245_s1 + $0xc0] sm:$0xff]  ;;  %v57_v41 = vld [vmem:[%s2245_s1 + $0xf8] sm:$0xff]  ;;  %v60_v42 = vld [vmem:[%s2245_s1 + $0x110] sm:$0xff] }
   0xa   :  { %1286 = vmatprep.subr.bf16.mxu0 %v1285_v22  ;;  %v1295_v43 = vpack.c.bf16 %v53_v40, %v50_v39  ;;  %v1297_v44 = vpack.c.bf16 %v60_v42, %v57_v41  ;;  %v56_v45 = vld [vmem:[%s2245_s1 + $0xf0] sm:$0xff]  ;;  %v59_v46 = vld [vmem:[%s2245_s1 + $0x108] sm:$0xff]  ;;  %v66_v48 = vld [vmem:[%s2245_s1 + $0x140] sm:$0xff] }
   0xb   :  { %v63_v47 = vld [vmem:[%s2245_s1 + $0x128] sm:$0xff]  ;;  %v1299_v49 = vpack.c.bf16 %v59_v46, %v56_v45  ;;  %v62_v51 = vld [vmem:[%s2245_s1 + $0x120] sm:$0xff]  ;;  %v65_v52 = vld [vmem:[%s2245_s1 + $0x138] sm:$0xff] }
   0xc   :  { %v1301_v50 = vpack.c.bf16 %v66_v48, %v63_v47  ;;  %v69_v53 = vld [vmem:[%s2245_s1 + $0x158] sm:$0xff]  ;;  %v72_v54 = vld [vmem:[%s2245_s1 + $0x170] sm:$0xff]  ;;  %v24_v55 = vld [vmem:[%s2248_s0 + $0x8] sm:$0xff]  ;;  %v1303_v56 = vpack.c.bf16 %v65_v52, %v62_v51 }
   0xd   :  { %1288 = vmatpush1.bf16.msra.mxu0 %v1287_v31  ;;  %234 = vmatprep.mubr.f32.mxu0 %v24_v55  ;;  %v1009_v57 = vld [vmem:[%s2246_s2 + $0x10] sm:$0xff]  ;;  %v1305_v59 = vpack.c.bf16 %v72_v54, %v69_v53  ;;  %v71_v61 = vld [vmem:[%s2245_s1 + $0x168] sm:$0xff]  ;;  %v78_v0 = vld [vmem:[%s2245_s1 + $0x1a0] sm:$0xff] }
   0xe   :  { %1290 = vmatprep.subr.bf16.mxu0 %v1289_v32  ;;  %v1010_v58 = vld [vmem:[%s2247_s3 + $0x10] sm:$0xff]  ;;  %vm811_vm5 = vcmp.gt.f32.partialorder %v1009_v57, 0.0  ;;  %v812_v62 = vmul.f32 0.01, %v1009_v57  ;;  %376 = vmatprep.mubr.f32.mxu1 %v24_v55  ;;  %v75_v63 = vld [vmem:[%s2245_s1 + $0x188] sm:$0xff]  ;;  %v74_v5 = vld [vmem:[%s2245_s1 + $0x180] sm:$0xff] }
   0xf   :  { %v68_v60 = vld [vmem:[%s2245_s1 + $0x150] sm:$0xff]  ;;  %vm816_vm6 = vcmp.gt.f32.partialorder %v1010_v58, 0.0  ;;  %v1309_v4 = vpack.c.bf16 %v78_v0, %v75_v63  ;;  %v77_v6 = vld [vmem:[%s2245_s1 + $0x198] sm:$0xff]  ;;  %v83_v13 = vld [vmem:[%s2245_s1 + $0x1c8] sm:$0xff] }
  0x10   :  { %v813_v1 = vsel %vm811_vm5, %v1009_v57, %v812_v62  ;;  %v1307_v2 = vpack.c.bf16 %v71_v61, %v68_v60  ;;  %v81_v8 = vld [vmem:[%s2245_s1 + $0x1b8] sm:$0xff]  ;;  %v84_v9 = vld [vmem:[%s2245_s1 + $0x1d0] sm:$0xff]  ;;  %v1311_v10 = vpack.c.bf16 %v77_v6, %v74_v5  ;;  %v87_v14 = vld [vmem:[%s2245_s1 + $0x1e8] sm:$0xff] }
  0x11   :  { %1292 = vmatpush1.bf16.msra.mxu0 %v1291_v37  ;;  %v1688_v3 = vsel %vm816_vm6, %v813_v1, -9e+15  ;;  %v1313_v11 = vpack.c.bf16 %v84_v9, %v81_v8  ;;  %v80_v12 = vld [vmem:[%s2245_s1 + $0x1b0] sm:$0xff]  ;;  %v90_v15 = vld [vmem:[%s2245_s1 + $0x200] sm:$0xff]  ;;  %v89_v19 = vld [vmem:[%s2245_s1 + $0x1f8] sm:$0xff] }
  0x12   :  { %1294 = vmatprep.subr.bf16.mxu0 %v1293_v38  ;;  %v818_v7 = vsel %vm459_vm2, %v1688_v3, -inf  ;;  %v1315_v16 = vpack.c.bf16 %v83_v13, %v80_v12  ;;  %v1317_v17 = vpack.c.bf16 %v90_v15, %v87_v14  ;;  %v86_v18 = vld [vmem:[%s2245_s1 + $0x1e0] sm:$0xff]  ;;  %v93_v20 = vld [vmem:[%s2245_s1 + $0x218] sm:$0xff]  ;;  %v96_v22 = vld [vmem:[%s2245_s1 + $0x230] sm:$0xff] }
  0x13   :  { %819 = vmax.xlane.f32.xlu1 %v818_v7  ;;  %v1319_v23 = vpack.c.bf16 %v89_v19, %v86_v18  ;;  %v1321_v24 = vpack.c.bf16 %v96_v22, %v93_v20  ;;  %v92_v25 = vld [vmem:[%s2245_s1 + $0x210] sm:$0xff]  ;;  %v95_v26 = vld [vmem:[%s2245_s1 + $0x228] sm:$0xff]  ;;  %v102_v28 = vld [vmem:[%s2245_s1 + $0x260] sm:$0xff] }
  0x14   :  { %v99_v27 = vld [vmem:[%s2245_s1 + $0x248] sm:$0xff]  ;;  %v1323_v30 = vpack.c.bf16 %v95_v26, %v92_v25  ;;  %v98_v32 = vld [vmem:[%s2245_s1 + $0x240] sm:$0xff]  ;;  %v101_v33 = vld [vmem:[%s2245_s1 + $0x258] sm:$0xff] }
  0x15   :  { %1296 = vmatpush1.bf16.msra.mxu0 %v1295_v43  ;;  %v1325_v31 = vpack.c.bf16 %v102_v28, %v99_v27  ;;  %v105_v34 = vld [vmem:[%s2245_s1 + $0x278] sm:$0xff]  ;;  %v108_v35 = vld [vmem:[%s2245_s1 + $0x290] sm:$0xff]  ;;  %v107_v37 = vld [vmem:[%s2245_s1 + $0x288] sm:$0xff]  ;;  %v1327_v38 = vpack.c.bf16 %v101_v33, %v98_v32 }
  0x16   :  { %1298 = vmatprep.subr.bf16.mxu0 %v1297_v44  ;;  %v104_v36 = vld [vmem:[%s2245_s1 + $0x270] sm:$0xff]  ;;  %v79_v40 = vld [vmem:[%s2245_s1 + $0x1a8] sm:$0xff]  ;;  %v1329_v42 = vpack.c.bf16 %v108_v35, %v105_v34  ;;  %v82_v45 = vld [vmem:[%s2245_s1 + $0x1c0] sm:$0xff]  ;;  %v1518_v34 = vmov 0.0  }
  0x17   :  { %v76_v39 = vld [vmem:[%s2245_s1 + $0x190] sm:$0xff]  ;;  %v31_v44 = vld [vmem:[%s2245_s1 + $0x28] sm:$0xff]  ;;  %v85_v46 = vld [vmem:[%s2245_s1 + $0x1d8] sm:$0xff]  ;;  %v1331_v51 = vpack.c.bf16 %v107_v37, %v104_v36 }
  0x18   :  { %v28_v41 = vld [vmem:[%s2245_s1 + $0x10] sm:$0xff]  ;;  %v1373_v43 = vpack.c.bf16 %v79_v40, %v76_v39  ;;  %v111_v47 = vld [vmem:[%s2245_s1 + $0x2a8] sm:$0xff]  ;;  %v114_v48 = vld [vmem:[%s2245_s1 + $0x2c0] sm:$0xff] }
  0x19   :  { %1300 = vmatpush1.bf16.msra.mxu0 %v1299_v49  ;;  %v1375_v49 = vpack.c.bf16 %v31_v44, %v28_v41  ;;  %v1333_v52 = vpack.c.bf16 %v114_v48, %v111_v47  ;;  %v110_v53 = vld [vmem:[%s2245_s1 + $0x2a0] sm:$0xff]  ;;  %v113_v54 = vld [vmem:[%s2245_s1 + $0x2b8] sm:$0xff]  ;;  %v119_v60 = vld [vmem:[%s2245_s1 + $0x2e8] sm:$0xff] }
  0x1a   :  { %1302 = vmatprep.subr.bf16.mxu0 %v1301_v50  ;;  %v1377_v50 = vpack.c.bf16 %v85_v46, %v82_v45  ;;  %1374 = vmatprep.subr.bf16.mxu1 %v1373_v43  ;;  %v117_v55 = vld [vmem:[%s2245_s1 + $0x2d8] sm:$0xff]  ;;  %v1335_v57 = vpack.c.bf16 %v113_v54, %v110_v53  ;;  %v123_v61 = vld [vmem:[%s2245_s1 + $0x308] sm:$0xff]  ;;  %v126_v62 = vld [vmem:[%s2245_s1 + $0x320] sm:$0xff] }
  0x1b   :  { %1376 = vmatpush3.bf16.msra.mxu1 %v1375_v49  ;;  %v122_v63 = vld [vmem:[%s2245_s1 + $0x300] sm:$0xff]  ;;  %v125_v0 = vld [vmem:[%s2245_s1 + $0x318] sm:$0xff]  ;;  %v88_v6 = vld [vmem:[%s2245_s1 + $0x1f0] sm:$0xff]  ;;  %v1341_v7 = vpack.c.bf16 %v126_v62, %v123_v61 }
  0x1c   :  { %1378 = vmatprep.subr.bf16.mxu1 %v1377_v50  ;;  %v37_v5 = vld [vmem:[%s2245_s1 + $0x58] sm:$0xff]  ;;  %v91_v9 = vld [vmem:[%s2245_s1 + $0x208] sm:$0xff]  ;;  %v132_v12 = vld [vmem:[%s2245_s1 + $0x350] sm:$0xff]  ;;  %v1343_v18 = vpack.c.bf16 %v125_v0, %v122_v63 }
  0x1d   :  { %1304 = vmatpush1.bf16.msra.mxu0 %v1303_v56  ;;  %v120_v56 = vld [vmem:[%s2245_s1 + $0x2f0] sm:$0xff]  ;;  %v1381_v13 = vpack.c.bf16 %v91_v9, %v88_v6  ;;  %v94_v14 = vld [vmem:[%s2245_s1 + $0x220] sm:$0xff]  ;;  %v97_v15 = vld [vmem:[%s2245_s1 + $0x238] sm:$0xff] }
  0x1e   :  { %1306 = vmatprep.subr.bf16.mxu0 %v1305_v59  ;;  %v1337_v58 = vpack.c.bf16 %v120_v56, %v117_v55  ;;  %v116_v59 = vld [vmem:[%s2245_s1 + $0x2d0] sm:$0xff]  ;;  %v46_v20 = vld [vmem:[%s2245_s1 + $0xa0] sm:$0xff]  ;;  %v49_v22 = vld [vmem:[%s2245_s1 + $0xb8] sm:$0xff]  ;;  %v1385_v25 = vpack.c.bf16 %v97_v15, %v94_v14 }
  0x1f   :  { %v1339_v1 = vpack.c.bf16 %v119_v60, %v116_v59  ;;  %v128_v19 = vld [vmem:[%s2245_s1 + $0x330] sm:$0xff]  ;;  %v103_v27 = vld [vmem:[%s2245_s1 + $0x268] sm:$0xff]  ;;  %v134_v33 = vld [vmem:[%s2245_s1 + $0x360] sm:$0xff] }
  0x20   :  { %v100_v26 = vld [vmem:[%s2245_s1 + $0x250] sm:$0xff]  ;;  %v135_v28 = vld [vmem:[%s2245_s1 + $0x368] sm:$0xff]  ;;  %v137_v39 = vld [vmem:[%s2245_s1 + $0x378] sm:$0xff] }
  0x21   :  { %1308 = vmatpush1.bf16.msra.mxu0 %v1307_v2  ;;  %v129_v2 = vld [vmem:[%s2245_s1 + $0x338] sm:$0xff]  ;;  %v1389_v35 = vpack.c.bf16 %v103_v27, %v100_v26  ;;  %v52_v36 = vld [vmem:[%s2245_s1 + $0xd0] sm:$0xff]  ;;  %v55_v37 = vld [vmem:[%s2245_s1 + $0xe8] sm:$0xff]  ;;  %v1351_v45 = vpack.c.bf16 %v137_v39, %v134_v33 }
  0x22   :  { %1310 = vmatprep.subr.bf16.mxu0 %v1309_v4  ;;  %v34_v4 = vld [vmem:[%s2245_s1 + $0x40] sm:$0xff]  ;;  %v109_v41 = vld [vmem:[%s2245_s1 + $0x298] sm:$0xff]  ;;  %v144_v43 = vld [vmem:[%s2245_s1 + $0x3b0] sm:$0xff]  ;;  %v1391_v44 = vpack.c.bf16 %v55_v37, %v52_v36 }
  0x23   :  { %v1379_v8 = vpack.c.bf16 %v37_v5, %v34_v4  ;;  %v106_v40 = vld [vmem:[%s2245_s1 + $0x280] sm:$0xff]  ;;  %v140_v46 = vld [vmem:[%s2245_s1 + $0x390] sm:$0xff]  ;;  %v61_v49 = vld [vmem:[%s2245_s1 + $0x118] sm:$0xff] }
  0x24   :  { %v1393_v47 = vpack.c.bf16 %v109_v41, %v106_v40  ;;  %v58_v48 = vld [vmem:[%s2245_s1 + $0x100] sm:$0xff]  ;;  %v115_v53 = vld [vmem:[%s2245_s1 + $0x2c8] sm:$0xff]  ;;  %v64_v60 = vld [vmem:[%s2245_s1 + $0x130] sm:$0xff] }
  0x25   :  { %1312 = vmatpush1.bf16.msra.mxu0 %v1311_v10  ;;  %v40_v10 = vld [vmem:[%s2245_s1 + $0x70] sm:$0xff]  ;;  %1380 = vmatpush3.bf16.msra.mxu1 %v1379_v8  ;;  %v147_v54 = vld [vmem:[%s2245_s1 + $0x3c8] sm:$0xff]  ;;  %v150_v55 = vld [vmem:[%s2245_s1 + $0x3e0] sm:$0xff]  ;;  %v1395_v56 = vpack.c.bf16 %v61_v49, %v58_v48 }
  0x26   :  { %1314 = vmatprep.subr.bf16.mxu0 %v1313_v11  ;;  %v43_v11 = vld [vmem:[%s2245_s1 + $0x88] sm:$0xff]  ;;  %1382 = vmatprep.subr.bf16.mxu1 %v1381_v13  ;;  %v1357_v62 = vpack.c.bf16 %v150_v55, %v147_v54  ;;  %v149_v63 = vld [vmem:[%s2245_s1 + $0x3d8] sm:$0xff]  ;;  %v118_v0 = vld [vmem:[%s2245_s1 + $0x2e0] sm:$0xff] }
  0x27   :  { %v67_v61 = vld [vmem:[%s2245_s1 + $0x148] sm:$0xff]  ;;  %v156_v4 = vld [vmem:[%s2245_s1 + $0x410] sm:$0xff]  ;;  %v70_v8 = vld [vmem:[%s2245_s1 + $0x160] sm:$0xff] }
  0x28   :  { %v1399_v5 = vpack.c.bf16 %v67_v61, %v64_v60  ;;  %v73_v9 = vld [vmem:[%s2245_s1 + $0x178] sm:$0xff]  ;;  %v159_v13 = vld [vmem:[%s2245_s1 + $0x428] sm:$0xff]  ;;  %v162_v14 = vld [vmem:[%s2245_s1 + $0x440] sm:$0xff] }
  0x29   :  { %1316 = vmatpush1.bf16.msra.mxu0 %v1315_v16  ;;  %v1845_v16 = vld [vmem:[%s2248_s0] sm:$0xff]  ;;  %v1403_v15 = vpack.c.bf16 %v73_v9, %v70_v8  ;;  %v164_v33 = vld [vmem:[%s2245_s1 + $0x450] sm:$0xff]  ;;  %v139_v39 = vld [vmem:[%s2245_s1 + $0x388] sm:$0xff] }
  0x2a   :  { %1318 = vmatprep.subr.bf16.mxu0 %v1317_v17  ;;  %v1383_v17 = vpack.c.bf16 %v43_v11, %v40_v10  ;;  %v152_v11 = vld [vmem:[%s2245_s1 + $0x3f0] sm:$0xff]  ;;  %v142_v41 = vld [vmem:[%s2245_s1 + $0x3a0] sm:$0xff]  ;;  %v157_v48 = vld [vmem:[%s2245_s1 + $0x418] sm:$0xff] }
  0x2b   :  { %v25_v40 = vld [vmem:[%s2248_s0 + $0x10] sm:$0xff]  ;;  %v169_v54 = vld [vmem:[%s2245_s1 + $0x478] sm:$0xff] }
  0x2c   :  { %1384 = vmatpush3.bf16.msra.mxu1 %v1383_v17 }
  0x2d   :  { %1320 = vmatpush1.bf16.msra.mxu0 %v1319_v23  ;;  %v1345_v23 = vpack.c.bf16 %v132_v12, %v129_v2  ;;  %1386 = vmatprep.subr.bf16.mxu1 %v1385_v25  ;;  %v153_v2 = vld [vmem:[%s2245_s1 + $0x3f8] sm:$0xff]  ;;  %v155_v12 = vld [vmem:[%s2245_s1 + $0x408] sm:$0xff]  ;;  %v168_v25 = vld [vmem:[%s2245_s1 + $0x470] sm:$0xff] }
  0x2e   :  { %1322 = vmatprep.subr.bf16.mxu0 %v1321_v24  ;;  %v131_v24 = vld [vmem:[%s2245_s1 + $0x348] sm:$0xff]  ;;  %v1361_v10 = vpack.c.bf16 %v156_v4, %v153_v2  ;;  %v1363_v17 = vpack.c.bf16 %v155_v12, %v152_v11 }
  0x2f   :  { %v1347_v32 = vpack.c.bf16 %v131_v24, %v128_v19  ;;  %v127_v19 = vld [vmem:[%s2245_s1 + $0x328] sm:$0xff]  ;;  %v165_v24 = vld [vmem:[%s2245_s1 + $0x458] sm:$0xff] }
  0x31   :  { %1324 = vmatpush1.bf16.msra.mxu0 %v1323_v30  ;;  %v138_v30 = vld [vmem:[%s2245_s1 + $0x380] sm:$0xff] }
  0x32   :  { %1326 = vmatprep.subr.bf16.mxu0 %v1325_v31  ;;  %v1387_v31 = vpack.c.bf16 %v49_v22, %v46_v20  ;;  %v1365_v20 = vpack.c.bf16 %v162_v14, %v159_v13  ;;  %v158_v22 = vld [vmem:[%s2245_s1 + $0x420] sm:$0xff]  ;;  %v654_v13 = vld [vmem:[%s2249_s4 + $0x88] sm:$0xff] }
  0x34   :  { %1388 = vmatpush3.bf16.msra.mxu1 %v1387_v31  ;;  %v133_v31 = vld [vmem:[%s2245_s1 + $0x358] sm:$0xff] }
  0x35   :  { %1328 = vmatpush1.bf16.msra.mxu0 %v1327_v38  ;;  %v1349_v38 = vpack.c.bf16 %v138_v30, %v135_v28  ;;  %1390 = vmatprep.subr.bf16.mxu1 %v1389_v35  ;;  %v1519_v28 = vmov 0.0|0.0   ;;  %v130_v30 = vld [vmem:[%s2245_s1 + $0x340] sm:$0xff]  ;;  %v167_v35 = vld [vmem:[%s2245_s1 + $0x468] sm:$0xff] }
  0x36   :  { %1330 = vmatprep.subr.bf16.mxu0 %v1329_v42  ;;  %v141_v42 = vld [vmem:[%s2245_s1 + $0x398] sm:$0xff]  ;;  %v1409_v36 = vpack.c.bf16 %v133_v31, %v130_v30  ;;  %v1371_v37 = vpack.c.bf16 %v167_v35, %v164_v33  ;;  %v658_v30 = vld [vmem:[%s2249_s4 + $0xa8] sm:$0xff]  ;;  %v546_v31 = vld [vmem:[%s2249_s4 + $0x10] sm:$0xff] }
  0x37   :  { %v1353_v50 = vpack.c.bf16 %v144_v43, %v141_v42  ;;  %v145_v42 = vld [vmem:[%s2245_s1 + $0x3b8] sm:$0xff] }
  0x38   :  { %1392 = vmatpush3.bf16.msra.mxu1 %v1391_v44  ;;  %v1415_v43 = vpack.c.bf16 %v145_v42, %v142_v41  ;;  %v148_v44 = vld [vmem:[%s2245_s1 + $0x3d0] sm:$0xff]  ;;  %v661_v41 = vld [vmem:[%s2249_s4 + $0xc0] sm:$0xff]  ;;  %v662_v42 = vld [vmem:[%s2249_s4 + $0xc8] sm:$0xff] }
  0x39   :  { %1332 = vmatpush1.bf16.msra.mxu0 %v1331_v51  ;;  %v143_v51 = vld [vmem:[%s2245_s1 + $0x3a8] sm:$0xff]  ;;  %1394 = vmatprep.subr.bf16.mxu1 %v1393_v47  ;;  %v154_v47 = vld [vmem:[%s2245_s1 + $0x400] sm:$0xff] }
  0x3a   :  { %1334 = vmatprep.subr.bf16.mxu0 %v1333_v52  ;;  %v112_v52 = vld [vmem:[%s2245_s1 + $0x2b0] sm:$0xff]  ;;  %v1421_v49 = vpack.c.bf16 %v157_v48, %v154_v47 }
  0x3b   :  { %v1397_v59 = vpack.c.bf16 %v115_v53, %v112_v52  ;;  %v166_v53 = vld [vmem:[%s2245_s1 + $0x460] sm:$0xff]  ;;  %v663_v48 = vld [vmem:[%s2249_s4 + $0xd0] sm:$0xff] }
  0x3c   :  { %1396 = vmatpush3.bf16.msra.mxu1 %v1395_v56  ;;  %v1427_v55 = vpack.c.bf16 %v169_v54, %v166_v53 }
  0x3d   :  { %1336 = vmatpush1.bf16.msra.mxu0 %v1335_v57  ;;  %v1355_v57 = vpack.c.bf16 %v143_v51, %v140_v46  ;;  %1398 = vmatprep.subr.bf16.mxu1 %v1397_v59  ;;  %v163_v51 = vld [vmem:[%s2245_s1 + $0x448] sm:$0xff] }
  0x3e   :  { %1338 = vmatprep.subr.bf16.mxu0 %v1337_v58  ;;  %v146_v58 = vld [vmem:[%s2245_s1 + $0x3c0] sm:$0xff] }
  0x3f   :  { %v1359_v6 = vpack.c.bf16 %v149_v63, %v146_v58 }
  0x40   :  { %1400 = vmatpush3.bf16.msra.mxu1 %v1399_v5 }
  0x41   :  { %1340 = vmatpush1.bf16.msra.mxu0 %v1339_v1  ;;  %v121_v1 = vld [vmem:[%s2245_s1 + $0x2f8] sm:$0xff] }
  0x42   :  { %1342 = vmatprep.subr.bf16.mxu0 %v1341_v7  ;;  %v1401_v7 = vpack.c.bf16 %v121_v1, %v118_v0 }
  0x44   :  { %235 = vmatmul.mubr.f32.vlgmr.msra.gmra.mrb[0].mxu0 %v1845_v16  ;;  %1402 = vmatprep.subr.bf16.mxu1 %v1401_v7 }
  0x45   :  { %1344 = vmatpush1.bf16.msra.mxu0 %v1343_v18  ;;  %305 = vmatprep.mubr.f32.mxu0 %v1518_v34  ;;  %v124_v18 = vld [vmem:[%s2245_s1 + $0x310] sm:$0xff] }
  0x46   :  { %1346 = vmatprep.subr.bf16.mxu0 %v1345_v23  ;;  %v161_v23 = vld [vmem:[%s2245_s1 + $0x438] sm:$0xff]  ;;  %1404 = vmatpush3.bf16.msra.mxu1 %v1403_v15  ;;  %v1406_v26 = vpack.c.bf16 %v127_v19, %v124_v18 }
  0x47   :  { %v1367_v27 = vpack.c.bf16 %v161_v23, %v158_v22  ;;  %1405 = vmatprep.subr.bf16.mxu1 %v1519_v28  ;;  %v656_v19 = vld [vmem:[%s2249_s4 + $0x98] sm:$0xff]  ;;  %v545_v22 = vld [vmem:[%s2249_s4 + $0x8] sm:$0xff] }
  0x49   :  { %1348 = vmatpush1.bf16.msra.mxu0 %v1347_v32  ;;  %v1369_v32 = vpack.c.bf16 %v168_v25, %v165_v24  ;;  %377 = vmatmul.mubr.f32.vlgmr.msra.gmra.mrb[0].mxu1 %v1845_v16 }
  0x4a   :  { %1350 = vmatprep.subr.bf16.mxu0 %v1349_v38  ;;  %1407 = vmatpush3.bf16.msra.mxu1 %v1406_v26  ;;  %v136_v38 = vld [vmem:[%s2245_s1 + $0x370] sm:$0xff]  ;;  %v657_v26 = vld [vmem:[%s2249_s4 + $0xa0] sm:$0xff] }
  0x4b   :  { %1154 = vmatprep.mubr.msk.f32.mxu1 %vm1520_vm7, %v1518_v34  ;;  %1408 = vmatprep.subr.bf16.mxu1 %v1519_v28  ;;  %v1412_v16 = vpack.c.bf16 %v139_v39, %v136_v38  ;;  %v1436_v33 = vpack.c.bf16 %v658_v30, %v657_v26  ;;  %v548_v38 = vld [vmem:[%s2249_s4 + $0x20] sm:$0xff]  ;;  %v549_v39 = vld [vmem:[%s2249_s4 + $0x28] sm:$0xff]  ;;  %v912_v30 = vld [vmem:[%s2249_s4 + $0x150] sm:$0xff] }
  0x4c   :  { %v911_v26 = vld [vmem:[%s2249_s4 + $0x148] sm:$0xff] }
  0x4d   :  { %1352 = vmatpush1.bf16.msra.mxu0 %v1351_v45  ;;  %v151_v45 = vld [vmem:[%s2245_s1 + $0x3e8] sm:$0xff] }
  0x4e   :  { %1354 = vmatprep.subr.bf16.mxu0 %v1353_v50  ;;  %1410 = vmatpush3.bf16.msra.mxu1 %v1409_v36  ;;  %v1418_v46 = vpack.c.bf16 %v151_v45, %v148_v44  ;;  %v160_v50 = vld [vmem:[%s2245_s1 + $0x430] sm:$0xff]  ;;  %v551_v44 = vld [vmem:[%s2249_s4 + $0x38] sm:$0xff] }
  0x4f   :  { %1411 = vmatprep.subr.bf16.mxu1 %v1519_v28  ;;  %v1424_v52 = vpack.c.bf16 %v163_v51, %v160_v50  ;;  %v659_v36 = vld [vmem:[%s2249_s4 + $0xb0] sm:$0xff]  ;;  %v664_v50 = vld [vmem:[%s2249_s4 + $0xd8] sm:$0xff]  ;;  %v552_v51 = vld [vmem:[%s2249_s4 + $0x40] sm:$0xff] }
  0x50   :  { %v1445_v54 = vpack.c.bf16 %v664_v50, %v663_v48 }
  0x51   :  { %1356 = vmatpush1.bf16.msra.mxu0 %v1355_v57 }
  0x52   :  { %1358 = vmatprep.subr.bf16.mxu0 %v1357_v62  ;;  %1413 = vmatpush3.bf16.msra.mxu1 %v1412_v16 }
  0x53   :  { %1414 = vmatprep.subr.bf16.mxu1 %v1519_v28 }
  0x55   :  { %1360 = vmatpush1.bf16.msra.mxu0 %v1359_v6 }
  0x56   :  { %1362 = vmatprep.subr.bf16.mxu0 %v1361_v10  ;;  %1416 = vmatpush3.bf16.msra.mxu1 %v1415_v43  ;;  %v550_v43 = vld [vmem:[%s2249_s4 + $0x30] sm:$0xff] }
  0x57   :  { %1417 = vmatprep.subr.bf16.mxu1 %v1519_v28  ;;  %v1463_v47 = vpack.c.bf16 %v551_v44, %v550_v43 }
  0x59   :  { %1364 = vmatpush1.bf16.msra.mxu0 %v1363_v17  ;;  %v655_v17 = vld [vmem:[%s2249_s4 + $0x90] sm:$0xff] }
  0x5a   :  { %1366 = vmatprep.subr.bf16.mxu0 %v1365_v20  ;;  %1419 = vmatpush3.bf16.msra.mxu1 %v1418_v46  ;;  %v544_v20 = vld [vmem:[%s2249_s4] sm:$0xff]  ;;  %v1433_v24 = vpack.c.bf16 %v656_v19, %v655_v17  ;;  %v1442_v46 = vpack.c.bf16 %v662_v42, %v661_v41 }
  0x5b   :  { %1420 = vmatprep.subr.bf16.mxu1 %v1519_v28  ;;  %v1454_v25 = vpack.c.bf16 %v545_v22, %v544_v20  ;;  %v907_v20 = vld [vmem:[%s2249_s4 + $0x128] sm:$0xff] }
  0x5d   :  { %1368 = vmatpush1.bf16.msra.mxu0 %v1367_v27 }
  0x5e   :  { %1370 = vmatprep.subr.bf16.mxu0 %v1369_v32  ;;  %1422 = vmatpush3.bf16.msra.mxu1 %v1421_v49  ;;  %v547_v32 = vld [vmem:[%s2249_s4 + $0x18] sm:$0xff] }
  0x5f   :  { %1423 = vmatprep.subr.bf16.mxu1 %v1519_v28  ;;  %v1457_v35 = vpack.c.bf16 %v547_v32, %v546_v31  ;;  %v913_v31 = vld [vmem:[%s2249_s4 + $0x158] sm:$0xff] }
  0x60   :  { %v1493_v32 = vpack.c.bf16 %v913_v31, %v912_v30 }
  0x61   :  { %1372 = vmatpush1.bf16.msra.mxu0 %v1371_v37  ;;  %v660_v37 = vld [vmem:[%s2249_s4 + $0xb8] sm:$0xff] }
  0x62   :  { %1157 = vmatprep.subr.mxu0 %v1518_v34  ;;  %1425 = vmatpush3.bf16.msra.mxu1 %v1424_v52  ;;  %v1439_v16 = vpack.c.bf16 %v660_v37, %v659_v36  ;;  %v553_v52 = vld [vmem:[%s2249_s4 + $0x48] sm:$0xff]  ;;  %v916_v37 = vld [vmem:[%s2249_s4 + $0x170] sm:$0xff] }
  0x63   :  { %1426 = vmatprep.subr.bf16.mxu1 %v1519_v28 }
  0x64   :  { %306 = vmatmul.mubr.f32.vlgmr.msra.gmra.mrb[0].mxu0 %v25_v40 }
  0x65   :  { %1159 = vmatprep.mubr.msk.f32.mxu0 %vm1520_vm7, %v1518_v34 }
  0x66   :  { %1428 = vmatpush3.bf16.msra.mxu1 %v1427_v55  ;;  %v1466_v55 = vpack.c.bf16 %v553_v52, %v552_v51 }
  0x67   :  { %1162 = vmatprep.subr.mxu1 %v1518_v34 }
  0x69   :  { %1155 = vmatmul.mubr.f32.vlgmr.msra.gmra.mrb[2].mxu1 %v25_v40  ;;  %v1460_v40 = vpack.c.bf16 %v549_v39, %v548_v38  ;;  %v917_v38 = vld [vmem:[%s2249_s4 + $0x178] sm:$0xff] }
  0x6a   :  { %1164 = vmatprep.mubr.msk.f32.mxu1 %vm1520_vm7, %v1518_v34  ;;  %v1499_v39 = vpack.c.bf16 %v917_v38, %v916_v37 }
  0x95   :  { %v571_v56 = vpop.xlane.xlu0 %570 }
  0x96   :  { %v572_v57 = vsub.f32 %v1599_v21, %v571_v56  ;;  %v462_v58 = vpop.xlane.xlu1 %461  ;;  %v665_v56 = vld [vmem:[%s2249_s4 + $0xe0] sm:$0xff] }
  0x97   :  { %v463_v60 = vsub.f32 %v1615_v29, %v462_v58  ;;  %v554_v58 = vld [vmem:[%s2249_s4 + $0x50] sm:$0xff] }
  0x98   :  { %v573_v59 = vmul.f32 1.442695, %v572_v57  ;;  %v666_v57 = vld [vmem:[%s2249_s4 + $0xe8] sm:$0xff] }
  0x99   :  { %v464_v61 = vmul.f32 1.442695, %v463_v60  ;;  %v1448_v60 = vpack.c.bf16 %v666_v57, %v665_v56 }
  0x9a   :  { %1506 = vpow2.f32 %v573_v59  ;;  %v555_v59 = vld [vmem:[%s2249_s4 + $0x58] sm:$0xff] }
  0x9b   :  { %1508 = vpow2.f32 %v464_v61  ;;  %v1469_v61 = vpack.c.bf16 %v555_v59, %v554_v58 }
  0xa0   :  { %v820_v2 = vpop.xlane.xlu1 %819 }
  0xa1   :  { %v821_v4 = vsub.f32 %v1688_v3, %v820_v2  ;;  %v653_v3 = vld [vmem:[%s2249_s4 + $0x80] sm:$0xff] }
  0xa2   :  { %v1430_v15 = vpack.c.bf16 %v654_v13, %v653_v3 }
  0xa3   :  { %v822_v5 = vmul.f32 1.442695, %v821_v4 }
  0xa4   :  { %v1507_v62 = vpop.eup %1506 }
  0xa5   :  { %v575_v63 = vsel %vm459_vm2, %v1507_v62, 0.0  ;;  %v1509_v0 = vpop.eup %1508  ;;  %1510 = vpow2.f32 %v822_v5  ;;  %v558_v5 = vld [vmem:[%s2249_s4 + $0x70] sm:$0xff] }
  0xa6   :  { %576 = vadd.xlane.f32.xlu0 %v575_v63  ;;  %v466_v1 = vsel %vm459_vm2, %v1509_v0, 0.0  ;;  %v668_v63 = vld [vmem:[%s2249_s4 + $0xf8] sm:$0xff] }
  0xaa   :  { %467 = vadd.xlane.f32.xlu0 %v466_v1  ;;  %v557_v1 = vld [vmem:[%s2249_s4 + $0x68] sm:$0xff] }
  0xaf   :  { %v2054_v21 = vpop.eup %1510 }
  0xb0   :  { %v824_v29 = vsel %vm459_vm2, %v2054_v21, 0.0 }
  0xb1   :  { %825 = vadd.xlane.f32.xlu1 %v824_v29  ;;  %v559_v29 = vld [vmem:[%s2249_s4 + $0x78] sm:$0xff] }
 0x11c   :  { %v1045_v6 = vpop.f32.mrb[0].mxu1 }
 0x11d   :  { %v1046_v7 = vpop.f32.mrb[1].mxu1 }
 0x11e   :  { %v1047_v8 = vadd.f32 %v1046_v7, %v1045_v6  ;;  %v1475_v6 = vpack.c.bf16 %v559_v29, %v558_v5 }
 0x133   :  { %v577_v9 = vpop.xlane.xlu0 %576 }
 0x134   :  { %1512 = vrcp.f32 %v577_v9  ;;  %v903_v9 = vld [vmem:[%s2249_s4 + $0x108] sm:$0xff] }
 0x137   :  { %v468_v10 = vpop.xlane.xlu0 %467  ;;  %v307_v11 = vpop.f32.mrb[0].mxu0 }
 0x138   :  { %1514 = vrcp.f32 %v468_v10  ;;  %v309_v12 = vpop.f32.mrb[1].mxu0  ;;  %1158 = vmatpush3.msra.mxu0 %v307_v11 }
 0x139   :  { %1163 = vmatpush3.msra.mxu1 %v309_v12  ;;  %1453 = vmatprep.subr.bf16.mxu0 %v1519_v28 }
 0x13a   :  { %1429 = vmatprep.subr.bf16.mxu1 %v1519_v28 }
 0x13c   :  { %v448_v45 = vpop.f32.mrb[2].mxu1 }
 0x13d   :  { %v449_v49 = vadd.f32 %v1047_v8, %v448_v45  ;;  %v1156_v53 = vpop.f32.mrb[3].mxu1  ;;  %v902_v8 = vld [vmem:[%s2249_s4 + $0x100] sm:$0xff] }
 0x13e   :  { %v1513_v14 = vpop.eup %1512  ;;  %v826_v7 = vpop.xlane.xlu1 %825  ;;  %v1478_v3 = vpack.c.bf16 %v903_v9, %v902_v8 }
 0x13f   :  { %v579_v18 = vmul.f32 %v1513_v14, %v1507_v62  ;;  %v667_v62 = vld [vmem:[%s2249_s4 + $0xf0] sm:$0xff]  ;;  %1516 = vrcp.f32 %v826_v7 }
 0x140   :  { %v1451_v2 = vpack.c.bf16 %v668_v63, %v667_v62  ;;  %v904_v14 = vld [vmem:[%s2249_s4 + $0x110] sm:$0xff] }
 0x141   :  { %1165 = vmatmul.mubr.msk.f32.vlgmr.msra.gmra.mrb[4].mxu1 %vm459_vm2, %v579_v18 }
 0x142   :  { %v1515_v23 = vpop.eup %1514  ;;  %1431 = vmatpush3.bf16.msra.mxu1 %v1430_v15  ;;  %1199 = vmatprep.mubr.msk.f32.mxu1 %vm1520_vm7, %v1518_v34  ;;  %v905_v15 = vld [vmem:[%s2249_s4 + $0x118] sm:$0xff] }
 0x143   :  { %v470_v27 = vmul.f32 %v1515_v23, %v1509_v0  ;;  %1432 = vmatprep.subr.bf16.mxu1 %v1519_v28  ;;  %v556_v0 = vld [vmem:[%s2249_s4 + $0x60] sm:$0xff]  ;;  %v1481_v19 = vpack.c.bf16 %v905_v15, %v904_v14  ;;  %v908_v23 = vld [vmem:[%s2249_s4 + $0x130] sm:$0xff] }
 0x144   :  { %v1472_v4 = vpack.c.bf16 %v557_v1, %v556_v0 }
 0x145   :  { %1160 = vmatmul.mubr.msk.f32.vlgmr.msra.gmra.mrb[2].mxu0 %vm459_vm2, %v470_v27 }
 0x146   :  { %1434 = vmatpush3.bf16.msra.mxu1 %v1433_v24  ;;  %1455 = vmatpush3.bf16.msra.mxu0 %v1454_v25  ;;  %v910_v25 = vld [vmem:[%s2249_s4 + $0x140] sm:$0xff] }
 0x147   :  { %1435 = vmatprep.subr.bf16.mxu1 %v1519_v28  ;;  %1456 = vmatprep.subr.bf16.mxu0 %v1519_v28  ;;  %v1490_v27 = vpack.c.bf16 %v911_v26, %v910_v25 }
 0x148   :  { %1234 = vmatprep.mubr.msk.f32.mxu0 %vm1520_vm7, %v1518_v34 }
 0x149   :  { %v1517_v10 = vpop.eup %1516 }
 0x14a   :  { %1437 = vmatpush3.bf16.msra.mxu1 %v1436_v33  ;;  %1458 = vmatpush3.bf16.msra.mxu0 %v1457_v35  ;;  %v828_v13 = vmul.f32 %v1517_v10, %v2054_v21  ;;  %v906_v21 = vld [vmem:[%s2249_s4 + $0x120] sm:$0xff]  ;;  %v915_v35 = vld [vmem:[%s2249_s4 + $0x168] sm:$0xff] }
 0x14b   :  { %1438 = vmatprep.subr.bf16.mxu1 %v1519_v28  ;;  %1459 = vmatprep.subr.bf16.mxu0 %v1519_v28  ;;  %v1484_v22 = vpack.c.bf16 %v907_v20, %v906_v21  ;;  %v914_v33 = vld [vmem:[%s2249_s4 + $0x160] sm:$0xff] }
 0x14c   :  { %v1496_v36 = vpack.c.bf16 %v915_v35, %v914_v33 }
 0x14e   :  { %1440 = vmatpush3.bf16.msra.mxu1 %v1439_v16  ;;  %1461 = vmatpush3.bf16.msra.mxu0 %v1460_v40 }
 0x14f   :  { %1441 = vmatprep.subr.bf16.mxu1 %v1519_v28  ;;  %1462 = vmatprep.subr.bf16.mxu0 %v1519_v28 }
 0x152   :  { %1443 = vmatpush3.bf16.msra.mxu1 %v1442_v46  ;;  %1464 = vmatpush3.bf16.msra.mxu0 %v1463_v47 }
 0x153   :  { %1444 = vmatprep.subr.bf16.mxu1 %v1519_v28  ;;  %1465 = vmatprep.subr.bf16.mxu0 %v1519_v28 }
 0x156   :  { %1446 = vmatpush3.bf16.msra.mxu1 %v1445_v54  ;;  %1467 = vmatpush3.bf16.msra.mxu0 %v1466_v55 }
 0x157   :  { %1447 = vmatprep.subr.bf16.mxu1 %v1519_v28  ;;  %1468 = vmatprep.subr.bf16.mxu0 %v1519_v28 }
 0x15a   :  { %1449 = vmatpush3.bf16.msra.mxu1 %v1448_v60  ;;  %1470 = vmatpush3.bf16.msra.mxu0 %v1469_v61 }
 0x15b   :  { %1450 = vmatprep.subr.bf16.mxu1 %v1519_v28  ;;  %1471 = vmatprep.subr.bf16.mxu0 %v1519_v28 }
 0x15e   :  { %1452 = vmatpush3.bf16.msra.mxu1 %v1451_v2  ;;  %1473 = vmatpush3.bf16.msra.mxu0 %v1472_v4 }
 0x15f   :  { %1237 = vmatprep.subr.mxu1 %v1518_v34  ;;  %1474 = vmatprep.subr.bf16.mxu0 %v1519_v28 }
 0x162   :  { %1476 = vmatpush3.bf16.msra.mxu0 %v1475_v6 }
 0x214   :  { %v649_v11 = vpop.f32.mrb[4].mxu1 }
 0x215   :  { %v1166_v12 = vpop.f32.mrb[5].mxu1  ;;  %1200 = vmatmul.mubr.f32.vlgmr.msra.gmra.mrb[6].mxu1 %v649_v11 }
 0x216   :  { %1238 = vmatpush3.msra.mxu1 %v449_v49  ;;  %1239 = vmatprep.mubr.msk.f32.mxu1 %vm1520_vm7, %v1518_v34 }
 0x217   :  { %1477 = vmatprep.subr.bf16.mxu1 %v1519_v28 }
 0x218   :  { %v540_v17 = vpop.f32.mrb[2].mxu0 }
 0x219   :  { %1235 = vmatmul.mubr.f32.vlgmr.msra.gmra.mrb[4].mxu0 %v540_v17  ;;  %1240 = vmatmul.mubr.msk.f32.vlgmr.msra.gmra.mrb[8].mxu1 %vm459_vm2, %v828_v13  ;;  %v1161_v18 = vpop.f32.mrb[3].mxu0 }
 0x21a   :  { %1479 = vmatpush3.bf16.msra.mxu1 %v1478_v3  ;;  %1274 = vmatprep.mubr.msk.f32.mxu1 %vm1520_vm7, %v1518_v34  ;;  %v909_v34 = vld [vmem:[%s2249_s4 + $0x138] sm:$0xff] }
 0x21b   :  { %1480 = vmatprep.subr.bf16.mxu1 %v1519_v28  ;;  %v1487_v24 = vpack.c.bf16 %v909_v34, %v908_v23 }
 0x21e   :  { %1482 = vmatpush3.bf16.msra.mxu1 %v1481_v19 }
 0x21f   :  { %1483 = vmatprep.subr.bf16.mxu1 %v1519_v28 }
 0x222   :  { %1485 = vmatpush3.bf16.msra.mxu1 %v1484_v22 }
 0x223   :  { %1486 = vmatprep.subr.bf16.mxu1 %v1519_v28 }
 0x226   :  { %1488 = vmatpush3.bf16.msra.mxu1 %v1487_v24 }
 0x227   :  { %1489 = vmatprep.subr.bf16.mxu1 %v1519_v28 }
 0x22a   :  { %1491 = vmatpush3.bf16.msra.mxu1 %v1490_v27 }
 0x22b   :  { %1492 = vmatprep.subr.bf16.mxu1 %v1519_v28 }
 0x22e   :  { %1494 = vmatpush3.bf16.msra.mxu1 %v1493_v32 }
 0x22f   :  { %1495 = vmatprep.subr.bf16.mxu1 %v1519_v28 }
 0x232   :  { %1497 = vmatpush3.bf16.msra.mxu1 %v1496_v36 }
 0x233   :  { %1498 = vmatprep.subr.bf16.mxu1 %v1519_v28  ;;  %v1012_v28 = vld [vmem:[%s2250_s5] ss:$0 sm:$0xff] }
 0x236   :  { %1500 = vmatpush3.bf16.msra.mxu1 %v1499_v39 }
 0x2e8   :  { %v735_v16 = vpop.f32.mrb[6].mxu1 }
 0x2e9   :  { %v1201_v40 = vpop.f32.mrb[7].mxu1 }
 0x2ec   :  { %v805_v41 = vpop.f32.mrb[4].mxu0  ;;  %v898_v42 = vpop.f32.mrb[8].mxu1 }
 0x2ed   :  { %v806_v43 = vadd.f32 %v805_v41, %v735_v16  ;;  %v1241_v44 = vpop.f32.mrb[9].mxu1  ;;  %1275 = vmatmul.mubr.f32.vlgmr.msra.gmra.mrb[10].mxu1 %v898_v42  ;;  %v1236_v45 = vpop.f32.mrb[5].mxu0 }
 0x3c0   :  { %v984_v46 = vpop.f32.mrb[10].mxu1 }
 0x3c1   :  { %v988_v47 = vadd.f32 %v984_v46, %v806_v43  ;;  %v1276_v48 = vpop.f32.mrb[11].mxu1 }
 0x3c3   :  { %v996_v49 = vadd.f32 %v1012_v28, %v988_v47 }
 0x3c5   :  { %vm997_vm8 = vcmp.gt.f32.partialorder %v996_v49, 0.0  ;;  %v998_v50 = vmul.f32 0.01, %v996_v49 }
 0x3c7   :  { %v999_v51 = vsel %vm997_vm8, %v996_v49, %v998_v50 }
 0x3c8   :  { %1000 = vst [vmem:[%s2251_s6] sm:$0xff] %v999_v51 }

// kernel: backbone_forward.11
= control target key start
LH: loop header
LB: loop body
LE: loop exit
PB: predicated region body
PF: predicated region fallthrough
CT: control target
= control target key end

     0   :  { %vm508_vm2 = vcmask 64512   ;;  %vm1591_vm7 = vmmov 0   ;;  %s2458_s1 = inlined_call_operand.vmem [shape: f32[512,384], index: 1, kind: input, shape index: {}]   ;;  %s2459_s2 = inlined_call_operand.vmem [shape: f32[3,8,8], index: 2, kind: input, shape index: {}]   ;;  %s2460_s3 = inlined_call_operand.vmem [shape: f32[3,8,8], index: 3, kind: input, shape index: {}]   ;;  %s2461_s0 = inlined_call_operand.vmem [shape: f32[8,512], index: 0, kind: input, shape index: {}]   ;;  %s2462_s4 = inlined_call_operand.vmem [shape: f32[384,128], index: 4, kind: input, shape index: {}]   ;;  %s2463_s5 = inlined_call_operand.vmem [shape: f32[1,128], index: 5, kind: input, shape index: {}]   ;;  %s2464_s6 = inlined_call_operand.vmem [shape: f32[8,128], index: 6, kind: output, shape index: {}]  }
   0x1   :  { %v28_v0 = vld [vmem:[%s2458_s1 + $0x8] sm:$0xff]  ;;  %v31_v1 = vld [vmem:[%s2458_s1 + $0x20] sm:$0xff]  ;;  %v30_v4 = vld [vmem:[%s2458_s1 + $0x18] sm:$0xff] }
   0x2   :  { %v27_v2 = vld [vmem:[%s2458_s1] sm:$0xff]  ;;  %v1309_v3 = vpack.c.bf16 %v31_v1, %v28_v0  ;;  %v34_v9 = vld [vmem:[%s2458_s1 + $0x38] sm:$0xff]  ;;  %v37_v10 = vld [vmem:[%s2458_s1 + $0x50] sm:$0xff] }
   0x3   :  { %v501_v5 = vld [vmem:[%s2459_s2] sm:$0xff]  ;;  %v1311_v7 = vpack.c.bf16 %v30_v4, %v27_v2  ;;  %v1313_v11 = vpack.c.bf16 %v37_v10, %v34_v9  ;;  %v33_v12 = vld [vmem:[%s2458_s1 + $0x30] sm:$0xff]  ;;  %v36_v13 = vld [vmem:[%s2458_s1 + $0x48] sm:$0xff] }
   0x4   :  { %v505_v6 = vld [vmem:[%s2460_s3] sm:$0xff]  ;;  %vm502_vm0 = vcmp.gt.f32.partialorder %v501_v5, 0.0  ;;  %v503_v8 = vmul.f32 0.01, %v501_v5  ;;  %1310 = vmatprep.subr.bf16.mxu0 %v1309_v3  ;;  %v1055_v14 = vld [vmem:[%s2459_s2 + $0x8] sm:$0xff]  ;;  %v1315_v16 = vpack.c.bf16 %v36_v13, %v33_v12  ;;  %v42_v24 = vld [vmem:[%s2458_s1 + $0x78] sm:$0xff] }
   0x5   :  { %vm506_vm1 = vcmp.gt.f32.partialorder %v505_v6, 0.0  ;;  %1312 = vmatpush1.bf16.msra.mxu0 %v1311_v7  ;;  %vm611_vm3 = vcmp.gt.f32.partialorder %v1055_v14, 0.0  ;;  %v612_v17 = vmul.f32 0.01, %v1055_v14  ;;  %v1056_v18 = vld [vmem:[%s2460_s3 + $0x8] sm:$0xff]  ;;  %v43_v20 = vld [vmem:[%s2458_s1 + $0x80] sm:$0xff] }
   0x6   :  { %v504_v15 = vsel %vm502_vm0, %v501_v5, %v503_v8  ;;  %v40_v19 = vld [vmem:[%s2458_s1 + $0x68] sm:$0xff]  ;;  %1314 = vmatprep.subr.bf16.mxu0 %v1313_v11  ;;  %vm616_vm4 = vcmp.gt.f32.partialorder %v1056_v18, 0.0  ;;  %v39_v23 = vld [vmem:[%s2458_s1 + $0x60] sm:$0xff]  ;;  %v46_v27 = vld [vmem:[%s2458_s1 + $0x98] sm:$0xff] }
   0x7   :  { %v1671_v21 = vsel %vm506_vm1, %v504_v15, -9e+15  ;;  %v1317_v22 = vpack.c.bf16 %v43_v20, %v40_v19  ;;  %v613_v26 = vsel %vm611_vm3, %v1055_v14, %v612_v17  ;;  %v49_v28 = vld [vmem:[%s2458_s1 + $0xb0] sm:$0xff]  ;;  %v1319_v31 = vpack.c.bf16 %v42_v24, %v39_v23  ;;  %v48_v34 = vld [vmem:[%s2458_s1 + $0xa8] sm:$0xff]  ;;  %v55_v36 = vld [vmem:[%s2458_s1 + $0xe0] sm:$0xff] }
   0x8   :  { %v509_v25 = vsel %vm508_vm2, %v1671_v21, -inf  ;;  %v1687_v29 = vsel %vm616_vm4, %v613_v26, -9e+15  ;;  %v1321_v32 = vpack.c.bf16 %v49_v28, %v46_v27  ;;  %v45_v33 = vld [vmem:[%s2458_s1 + $0x90] sm:$0xff]  ;;  %v52_v35 = vld [vmem:[%s2458_s1 + $0xc8] sm:$0xff]  ;;  %v51_v39 = vld [vmem:[%s2458_s1 + $0xc0] sm:$0xff] }
   0x9   :  { %510 = vmax.xlane.f32.xlu0 %v509_v25  ;;  %1316 = vmatpush1.bf16.msra.mxu0 %v1315_v16  ;;  %v618_v30 = vsel %vm508_vm2, %v1687_v29, -inf  ;;  %v1323_v37 = vpack.c.bf16 %v48_v34, %v45_v33  ;;  %v1325_v38 = vpack.c.bf16 %v55_v36, %v52_v35  ;;  %v54_v40 = vld [vmem:[%s2458_s1 + $0xd8] sm:$0xff]  ;;  %v61_v42 = vld [vmem:[%s2458_s1 + $0x110] sm:$0xff]  ;;  %v60_v46 = vld [vmem:[%s2458_s1 + $0x108] sm:$0xff] }
   0xa   :  { %1318 = vmatprep.subr.bf16.mxu0 %v1317_v22  ;;  %v58_v41 = vld [vmem:[%s2458_s1 + $0xf8] sm:$0xff]  ;;  %v1327_v43 = vpack.c.bf16 %v54_v40, %v51_v39  ;;  %v57_v45 = vld [vmem:[%s2458_s1 + $0xf0] sm:$0xff]  ;;  %v64_v47 = vld [vmem:[%s2458_s1 + $0x128] sm:$0xff] }
   0xb   :  { %v1329_v44 = vpack.c.bf16 %v61_v42, %v58_v41  ;;  %v67_v48 = vld [vmem:[%s2458_s1 + $0x140] sm:$0xff]  ;;  %v1331_v49 = vpack.c.bf16 %v60_v46, %v57_v45  ;;  %v66_v52 = vld [vmem:[%s2458_s1 + $0x138] sm:$0xff]  ;;  %v73_v54 = vld [vmem:[%s2458_s1 + $0x170] sm:$0xff] }
   0xc   :  { %v1333_v50 = vpack.c.bf16 %v67_v48, %v64_v47  ;;  %v63_v51 = vld [vmem:[%s2458_s1 + $0x120] sm:$0xff]  ;;  %v70_v53 = vld [vmem:[%s2458_s1 + $0x158] sm:$0xff]  ;;  %v24_v55 = vld [vmem:[%s2461_s0 + $0x8] sm:$0xff] }
   0xd   :  { %619 = vmax.xlane.f32.xlu0 %v618_v30  ;;  %1320 = vmatpush1.bf16.msra.mxu0 %v1319_v31  ;;  %v1335_v56 = vpack.c.bf16 %v66_v52, %v63_v51  ;;  %v1337_v57 = vpack.c.bf16 %v73_v54, %v70_v53  ;;  %v69_v58 = vld [vmem:[%s2458_s1 + $0x150] sm:$0xff]  ;;  %v72_v59 = vld [vmem:[%s2458_s1 + $0x168] sm:$0xff]  ;;  %v79_v61 = vld [vmem:[%s2458_s1 + $0x1a0] sm:$0xff] }
   0xe   :  { %1322 = vmatprep.subr.bf16.mxu0 %v1321_v32  ;;  %283 = vmatprep.mubr.f32.mxu0 %v24_v55  ;;  %v76_v60 = vld [vmem:[%s2458_s1 + $0x188] sm:$0xff]  ;;  %v1339_v62 = vpack.c.bf16 %v72_v59, %v69_v58  ;;  %v75_v0 = vld [vmem:[%s2458_s1 + $0x180] sm:$0xff]  ;;  %v78_v1 = vld [vmem:[%s2458_s1 + $0x198] sm:$0xff] }
   0xf   :  { %425 = vmatprep.mubr.f32.mxu1 %v24_v55  ;;  %v1341_v63 = vpack.c.bf16 %v79_v61, %v76_v60  ;;  %v82_v2 = vld [vmem:[%s2458_s1 + $0x1b8] sm:$0xff]  ;;  %v85_v3 = vld [vmem:[%s2458_s1 + $0x1d0] sm:$0xff]  ;;  %v1343_v4 = vpack.c.bf16 %v78_v1, %v75_v0  ;;  %v84_v7 = vld [vmem:[%s2458_s1 + $0x1c8] sm:$0xff] }
  0x10   :  { %v1345_v5 = vpack.c.bf16 %v85_v3, %v82_v2  ;;  %v81_v6 = vld [vmem:[%s2458_s1 + $0x1b0] sm:$0xff]  ;;  %v88_v8 = vld [vmem:[%s2458_s1 + $0x1e8] sm:$0xff]  ;;  %v91_v9 = vld [vmem:[%s2458_s1 + $0x200] sm:$0xff] }
  0x11   :  { %1324 = vmatpush1.bf16.msra.mxu0 %v1323_v37  ;;  %v1347_v10 = vpack.c.bf16 %v84_v7, %v81_v6  ;;  %v1349_v11 = vpack.c.bf16 %v91_v9, %v88_v8  ;;  %v87_v12 = vld [vmem:[%s2458_s1 + $0x1e0] sm:$0xff]  ;;  %v90_v13 = vld [vmem:[%s2458_s1 + $0x1f8] sm:$0xff]  ;;  %v97_v15 = vld [vmem:[%s2458_s1 + $0x230] sm:$0xff] }
  0x12   :  { %1326 = vmatprep.subr.bf16.mxu0 %v1325_v38  ;;  %v94_v14 = vld [vmem:[%s2458_s1 + $0x218] sm:$0xff]  ;;  %v1351_v16 = vpack.c.bf16 %v90_v13, %v87_v12  ;;  %v93_v18 = vld [vmem:[%s2458_s1 + $0x210] sm:$0xff]  ;;  %v96_v19 = vld [vmem:[%s2458_s1 + $0x228] sm:$0xff] }
  0x13   :  { %v1353_v17 = vpack.c.bf16 %v97_v15, %v94_v14  ;;  %v100_v20 = vld [vmem:[%s2458_s1 + $0x248] sm:$0xff]  ;;  %v103_v22 = vld [vmem:[%s2458_s1 + $0x260] sm:$0xff]  ;;  %v1355_v23 = vpack.c.bf16 %v96_v19, %v93_v18  ;;  %v102_v25 = vld [vmem:[%s2458_s1 + $0x258] sm:$0xff] }
  0x14   :  { %v99_v24 = vld [vmem:[%s2458_s1 + $0x240] sm:$0xff]  ;;  %v1357_v26 = vpack.c.bf16 %v103_v22, %v100_v20  ;;  %v106_v27 = vld [vmem:[%s2458_s1 + $0x278] sm:$0xff]  ;;  %v1058_v28 = vld [vmem:[%s2459_s2 + $0x10] sm:$0xff] }
  0x15   :  { %1328 = vmatpush1.bf16.msra.mxu0 %v1327_v43  ;;  %v1059_v30 = vld [vmem:[%s2460_s3 + $0x10] sm:$0xff]  ;;  %vm860_vm5 = vcmp.gt.f32.partialorder %v1058_v28, 0.0  ;;  %v861_v32 = vmul.f32 0.01, %v1058_v28  ;;  %v108_v35 = vld [vmem:[%s2458_s1 + $0x288] sm:$0xff]  ;;  %v1359_v39 = vpack.c.bf16 %v102_v25, %v99_v24  ;;  %v83_v43 = vld [vmem:[%s2458_s1 + $0x1c0] sm:$0xff] }
  0x16   :  { %1330 = vmatprep.subr.bf16.mxu0 %v1329_v44  ;;  %v109_v31 = vld [vmem:[%s2458_s1 + $0x290] sm:$0xff]  ;;  %vm865_vm6 = vcmp.gt.f32.partialorder %v1059_v30, 0.0  ;;  %v80_v36 = vld [vmem:[%s2458_s1 + $0x1a8] sm:$0xff]  ;;  %v86_v44 = vld [vmem:[%s2458_s1 + $0x1d8] sm:$0xff] }
  0x17   :  { %v77_v33 = vld [vmem:[%s2458_s1 + $0x190] sm:$0xff]  ;;  %v32_v38 = vld [vmem:[%s2458_s1 + $0x28] sm:$0xff]  ;;  %v862_v40 = vsel %vm860_vm5, %v1058_v28, %v861_v32  ;;  %v35_v45 = vld [vmem:[%s2458_s1 + $0x40] sm:$0xff]  ;;  %v1361_v46 = vpack.c.bf16 %v109_v31, %v106_v27  ;;  %v1441_v48 = vpack.c.bf16 %v86_v44, %v83_v43 }
  0x18   :  { %v105_v34 = vld [vmem:[%s2458_s1 + $0x270] sm:$0xff]  ;;  %v1437_v41 = vpack.c.bf16 %v80_v36, %v77_v33  ;;  %v1848_v47 = vsel %vm865_vm6, %v862_v40, -9e+15  ;;  %v92_v51 = vld [vmem:[%s2458_s1 + $0x208] sm:$0xff]  ;;  %v115_v53 = vld [vmem:[%s2458_s1 + $0x2c0] sm:$0xff] }
  0x19   :  { %1332 = vmatpush1.bf16.msra.mxu0 %v1331_v49  ;;  %v29_v37 = vld [vmem:[%s2458_s1 + $0x10] sm:$0xff]  ;;  %v38_v49 = vld [vmem:[%s2458_s1 + $0x58] sm:$0xff]  ;;  %v112_v52 = vld [vmem:[%s2458_s1 + $0x2a8] sm:$0xff]  ;;  %v867_v54 = vsel %vm508_vm2, %v1848_v47, -inf }
  0x1a   :  { %1334 = vmatprep.subr.bf16.mxu0 %v1333_v50  ;;  %v1439_v42 = vpack.c.bf16 %v32_v38, %v29_v37  ;;  %v89_v50 = vld [vmem:[%s2458_s1 + $0x1f0] sm:$0xff]  ;;  %1438 = vmatprep.subr.bf16.mxu1 %v1437_v41  ;;  %v1443_v55 = vpack.c.bf16 %v38_v49, %v35_v45  ;;  %v44_v60 = vld [vmem:[%s2458_s1 + $0x88] sm:$0xff]  ;;  %v1365_v61 = vpack.c.bf16 %v115_v53, %v112_v52  ;;  %v98_v0 = vld [vmem:[%s2458_s1 + $0x238] sm:$0xff] }
  0x1b   :  { %868 = vmax.xlane.f32.xlu0 %v867_v54  ;;  %v1445_v58 = vpack.c.bf16 %v92_v51, %v89_v50  ;;  %v41_v59 = vld [vmem:[%s2458_s1 + $0x70] sm:$0xff]  ;;  %v118_v1 = vld [vmem:[%s2458_s1 + $0x2d8] sm:$0xff]  ;;  %v47_v7 = vld [vmem:[%s2458_s1 + $0xa0] sm:$0xff] }
  0x1c   :  { %1440 = vmatpush3.bf16.msra.mxu1 %v1439_v42  ;;  %v121_v2 = vld [vmem:[%s2458_s1 + $0x2f0] sm:$0xff]  ;;  %v1447_v3 = vpack.c.bf16 %v44_v60, %v41_v59  ;;  %v50_v8 = vld [vmem:[%s2458_s1 + $0xb8] sm:$0xff]  ;;  %v104_v12 = vld [vmem:[%s2458_s1 + $0x268] sm:$0xff] }
  0x1d   :  { %1336 = vmatpush1.bf16.msra.mxu0 %v1335_v56  ;;  %v1363_v56 = vpack.c.bf16 %v108_v35, %v105_v34  ;;  %1442 = vmatprep.subr.bf16.mxu1 %v1441_v48  ;;  %v1369_v9 = vpack.c.bf16 %v121_v2, %v118_v1  ;;  %v124_v13 = vld [vmem:[%s2458_s1 + $0x308] sm:$0xff]  ;;  %v127_v14 = vld [vmem:[%s2458_s1 + $0x320] sm:$0xff]  ;;  %v1451_v15 = vpack.c.bf16 %v50_v8, %v47_v7  ;;  %v53_v18 = vld [vmem:[%s2458_s1 + $0xd0] sm:$0xff] }
  0x1e   :  { %1338 = vmatprep.subr.bf16.mxu0 %v1337_v57  ;;  %v111_v57 = vld [vmem:[%s2458_s1 + $0x2a0] sm:$0xff]  ;;  %v56_v19 = vld [vmem:[%s2458_s1 + $0xe8] sm:$0xff]  ;;  %v1373_v20 = vpack.c.bf16 %v127_v14, %v124_v13  ;;  %v130_v24 = vld [vmem:[%s2458_s1 + $0x338] sm:$0xff] }
  0x1f   :  { %v123_v22 = vld [vmem:[%s2458_s1 + $0x300] sm:$0xff]  ;;  %v133_v25 = vld [vmem:[%s2458_s1 + $0x350] sm:$0xff]  ;;  %v110_v27 = vld [vmem:[%s2458_s1 + $0x298] sm:$0xff]  ;;  %v1455_v31 = vpack.c.bf16 %v56_v19, %v53_v18 }
  0x20   :  { %1444 = vmatpush3.bf16.msra.mxu1 %v1443_v55  ;;  %v1942_v28 = vld [vmem:[%s2461_s0] sm:$0xff]  ;;  %v129_v30 = vld [vmem:[%s2458_s1 + $0x330] sm:$0xff]  ;;  %v132_v33 = vld [vmem:[%s2458_s1 + $0x348] sm:$0xff]  ;;  %v1377_v36 = vpack.c.bf16 %v133_v25, %v130_v24 }
  0x21   :  { %1340 = vmatpush1.bf16.msra.mxu0 %v1339_v62  ;;  %v114_v62 = vld [vmem:[%s2458_s1 + $0x2b8] sm:$0xff]  ;;  %1446 = vmatprep.subr.bf16.mxu1 %v1445_v58  ;;  %v59_v34 = vld [vmem:[%s2458_s1 + $0x100] sm:$0xff]  ;;  %v116_v40 = vld [vmem:[%s2458_s1 + $0x2c8] sm:$0xff]  ;;  %v1379_v44 = vpack.c.bf16 %v132_v33, %v129_v30 }
  0x22   :  { %1342 = vmatprep.subr.bf16.mxu0 %v1341_v63  ;;  %v95_v63 = vld [vmem:[%s2458_s1 + $0x220] sm:$0xff]  ;;  %v62_v35 = vld [vmem:[%s2458_s1 + $0x118] sm:$0xff]  ;;  %v136_v41 = vld [vmem:[%s2458_s1 + $0x368] sm:$0xff] }
  0x23   :  { %v1449_v6 = vpack.c.bf16 %v98_v0, %v95_v63  ;;  %v1959_v37 = vld [vmem:[%s2461_s0 + $0x18] sm:$0xff]  ;;  %v139_v42 = vld [vmem:[%s2458_s1 + $0x380] sm:$0xff]  ;;  %v1459_v43 = vpack.c.bf16 %v62_v35, %v59_v34  ;;  %v65_v48 = vld [vmem:[%s2458_s1 + $0x130] sm:$0xff] }
  0x24   :  { %1448 = vmatpush3.bf16.msra.mxu1 %v1447_v3  ;;  %v135_v45 = vld [vmem:[%s2458_s1 + $0x360] sm:$0xff]  ;;  %v68_v49 = vld [vmem:[%s2458_s1 + $0x148] sm:$0xff]  ;;  %v1381_v50 = vpack.c.bf16 %v139_v42, %v136_v41  ;;  %v138_v51 = vld [vmem:[%s2458_s1 + $0x378] sm:$0xff] }
  0x25   :  { %1344 = vmatpush1.bf16.msra.mxu0 %v1343_v4  ;;  %v1367_v4 = vpack.c.bf16 %v114_v62, %v111_v57  ;;  %1450 = vmatprep.subr.bf16.mxu1 %v1449_v6  ;;  %v119_v52 = vld [vmem:[%s2458_s1 + $0x2e0] sm:$0xff]  ;;  %v122_v53 = vld [vmem:[%s2458_s1 + $0x2f8] sm:$0xff]  ;;  %v145_v55 = vld [vmem:[%s2458_s1 + $0x3b0] sm:$0xff]  ;;  %v1383_v57 = vpack.c.bf16 %v138_v51, %v135_v45 }
  0x26   :  { %1346 = vmatprep.subr.bf16.mxu0 %v1345_v5  ;;  %v117_v5 = vld [vmem:[%s2458_s1 + $0x2d0] sm:$0xff]  ;;  %v142_v54 = vld [vmem:[%s2458_s1 + $0x398] sm:$0xff]  ;;  %v1465_v59 = vpack.c.bf16 %v122_v53, %v119_v52  ;;  %v71_v60 = vld [vmem:[%s2458_s1 + $0x160] sm:$0xff] }
  0x27   :  { %v141_v58 = vld [vmem:[%s2458_s1 + $0x390] sm:$0xff]  ;;  %v1385_v62 = vpack.c.bf16 %v145_v55, %v142_v54  ;;  %v144_v63 = vld [vmem:[%s2458_s1 + $0x3a8] sm:$0xff]  ;;  %v151_v3 = vld [vmem:[%s2458_s1 + $0x3e0] sm:$0xff] }
  0x28   :  { %1452 = vmatpush3.bf16.msra.mxu1 %v1451_v15  ;;  %v173_v0 = vld [vmem:[%s2458_s1 + $0x490] sm:$0xff]  ;;  %v176_v1 = vld [vmem:[%s2458_s1 + $0x4a8] sm:$0xff]  ;;  %v147_v6 = vld [vmem:[%s2458_s1 + $0x3c0] sm:$0xff] }
  0x29   :  { %1348 = vmatpush1.bf16.msra.mxu0 %v1347_v10  ;;  %v120_v10 = vld [vmem:[%s2458_s1 + $0x2e8] sm:$0xff]  ;;  %v1469_v7 = vpack.c.bf16 %v176_v1, %v173_v0  ;;  %v125_v8 = vld [vmem:[%s2458_s1 + $0x310] sm:$0xff]  ;;  %v182_v13 = vld [vmem:[%s2458_s1 + $0x4d8] sm:$0xff] }
  0x2a   :  { %1350 = vmatprep.subr.bf16.mxu0 %v1349_v11  ;;  %v101_v11 = vld [vmem:[%s2458_s1 + $0x250] sm:$0xff]  ;;  %v148_v2 = vld [vmem:[%s2458_s1 + $0x3c8] sm:$0xff]  ;;  %v154_v14 = vld [vmem:[%s2458_s1 + $0x3f8] sm:$0xff] }
  0x2b   :  { %v157_v15 = vld [vmem:[%s2458_s1 + $0x410] sm:$0xff]  ;;  %v156_v24 = vld [vmem:[%s2458_s1 + $0x408] sm:$0xff]  ;;  %v163_v30 = vld [vmem:[%s2458_s1 + $0x440] sm:$0xff] }
  0x2c   :  { %v153_v18 = vld [vmem:[%s2458_s1 + $0x3f0] sm:$0xff]  ;;  %v159_v33 = vld [vmem:[%s2458_s1 + $0x420] sm:$0xff]  ;;  %v200_v52 = vld [vmem:[%s2458_s1 + $0x568] sm:$0xff] }
  0x2d   :  { %1352 = vmatpush1.bf16.msra.mxu0 %v1351_v16  ;;  %v1371_v16 = vpack.c.bf16 %v120_v10, %v117_v5  ;;  %v1387_v5 = vpack.c.bf16 %v144_v63, %v141_v58  ;;  %v1389_v10 = vpack.c.bf16 %v151_v3, %v148_v2  ;;  %v185_v25 = vld [vmem:[%s2458_s1 + $0x4f0] sm:$0xff]  ;;  %v172_v53 = vld [vmem:[%s2458_s1 + $0x488] sm:$0xff]  ;;  %v175_v54 = vld [vmem:[%s2458_s1 + $0x4a0] sm:$0xff] }
  0x2e   :  { %1354 = vmatprep.subr.bf16.mxu0 %v1353_v17  ;;  %v1453_v17 = vpack.c.bf16 %v104_v12, %v101_v11  ;;  %v150_v11 = vld [vmem:[%s2458_s1 + $0x3d8] sm:$0xff]  ;;  %v179_v12 = vld [vmem:[%s2458_s1 + $0x4c0] sm:$0xff]  ;;  %v137_v35 = vld [vmem:[%s2458_s1 + $0x370] sm:$0xff] }
  0x2f   :  { %v1473_v19 = vpack.c.bf16 %v182_v13, %v179_v12  ;;  %v169_v41 = vld [vmem:[%s2458_s1 + $0x470] sm:$0xff]  ;;  %v203_v63 = vld [vmem:[%s2458_s1 + $0x580] sm:$0xff]  ;;  %v206_v0 = vld [vmem:[%s2458_s1 + $0x598] sm:$0xff] }
  0x30   :  { %1454 = vmatprep.subr.bf16.mxu1 %v1453_v17  ;;  %v1391_v17 = vpack.c.bf16 %v150_v11, %v147_v6  ;;  %v197_v51 = vld [vmem:[%s2458_s1 + $0x550] sm:$0xff]  ;;  %v178_v1 = vld [vmem:[%s2458_s1 + $0x4b8] sm:$0xff]  ;;  %v1489_v6 = vpack.c.bf16 %v206_v0, %v203_v63  ;;  %v212_v12 = vld [vmem:[%s2458_s1 + $0x5c8] sm:$0xff] }
  0x31   :  { %1356 = vmatpush1.bf16.msra.mxu0 %v1355_v23  ;;  %v126_v23 = vld [vmem:[%s2458_s1 + $0x318] sm:$0xff]  ;;  %1456 = vmatpush3.bf16.msra.mxu1 %v1455_v31  ;;  %v1485_v58 = vpack.c.bf16 %v200_v52, %v197_v51  ;;  %v181_v2 = vld [vmem:[%s2458_s1 + $0x4d0] sm:$0xff]  ;;  %v184_v13 = vld [vmem:[%s2458_s1 + $0x4e8] sm:$0xff] }
  0x32   :  { %1358 = vmatprep.subr.bf16.mxu0 %v1357_v26  ;;  %v107_v26 = vld [vmem:[%s2458_s1 + $0x280] sm:$0xff]  ;;  %v1375_v32 = vpack.c.bf16 %v126_v23, %v123_v22  ;;  %v134_v22 = vld [vmem:[%s2458_s1 + $0x358] sm:$0xff]  ;;  %v1393_v23 = vpack.c.bf16 %v157_v15, %v154_v14  ;;  %v209_v11 = vld [vmem:[%s2458_s1 + $0x5b0] sm:$0xff] }
  0x33   :  { %v1457_v38 = vpack.c.bf16 %v110_v27, %v107_v26  ;;  %v188_v26 = vld [vmem:[%s2458_s1 + $0x508] sm:$0xff]  ;;  %v187_v14 = vld [vmem:[%s2458_s1 + $0x500] sm:$0xff]  ;;  %v214_v51 = vld [vmem:[%s2458_s1 + $0x5d8] sm:$0xff] }
  0x34   :  { %v160_v27 = vld [vmem:[%s2458_s1 + $0x428] sm:$0xff]  ;;  %v1477_v34 = vpack.c.bf16 %v188_v26, %v185_v25  ;;  %v193_v25 = vld [vmem:[%s2458_s1 + $0x530] sm:$0xff] }
  0x35   :  { %1360 = vmatpush1.bf16.msra.mxu0 %v1359_v39  ;;  %v113_v39 = vld [vmem:[%s2458_s1 + $0x2b0] sm:$0xff]  ;;  %1458 = vmatprep.subr.bf16.mxu1 %v1457_v38  ;;  %v191_v38 = vld [vmem:[%s2458_s1 + $0x520] sm:$0xff] }
  0x36   :  { %1362 = vmatprep.subr.bf16.mxu0 %v1361_v46  ;;  %v1461_v46 = vpack.c.bf16 %v116_v40, %v113_v39  ;;  %1460 = vmatpush3.bf16.msra.mxu1 %v1459_v43  ;;  %v194_v39 = vld [vmem:[%s2458_s1 + $0x538] sm:$0xff]  ;;  %v217_v52 = vld [vmem:[%s2458_s1 + $0x5f0] sm:$0xff] }
  0x37   :  { %v166_v40 = vld [vmem:[%s2458_s1 + $0x458] sm:$0xff]  ;;  %v1481_v45 = vpack.c.bf16 %v194_v39, %v191_v38  ;;  %v205_v39 = vld [vmem:[%s2458_s1 + $0x590] sm:$0xff] }
  0x38   :  { %1462 = vmatprep.subr.bf16.mxu1 %v1461_v46  ;;  %v143_v46 = vld [vmem:[%s2458_s1 + $0x3a0] sm:$0xff]  ;;  %v202_v38 = vld [vmem:[%s2458_s1 + $0x578] sm:$0xff] }
  0x39   :  { %1364 = vmatpush1.bf16.msra.mxu0 %v1363_v56  ;;  %v1463_v56 = vpack.c.bf16 %v68_v49, %v65_v48  ;;  %v146_v48 = vld [vmem:[%s2458_s1 + $0x3b8] sm:$0xff]  ;;  %v1401_v49 = vpack.c.bf16 %v169_v41, %v166_v40  ;;  %v1425_v41 = vpack.c.bf16 %v205_v39, %v202_v38 }
  0x3a   :  { %1366 = vmatprep.subr.bf16.mxu0 %v1365_v61  ;;  %v74_v61 = vld [vmem:[%s2458_s1 + $0x178] sm:$0xff]  ;;  %v1483_v55 = vpack.c.bf16 %v146_v48, %v143_v46 }
  0x3b   :  { %1464 = vmatpush3.bf16.msra.mxu1 %v1463_v56  ;;  %v709_v38 = vld [vmem:[%s2462_s4 + $0xb8] sm:$0xff] }
  0x3c   :  { %1466 = vmatprep.subr.bf16.mxu1 %v1465_v59  ;;  %v149_v59 = vld [vmem:[%s2458_s1 + $0x3d0] sm:$0xff] }
  0x3d   :  { %1368 = vmatpush1.bf16.msra.mxu0 %v1367_v4  ;;  %v1467_v4 = vpack.c.bf16 %v74_v61, %v71_v60  ;;  %v152_v60 = vld [vmem:[%s2458_s1 + $0x3e8] sm:$0xff]  ;;  %v1405_v61 = vpack.c.bf16 %v175_v54, %v172_v53  ;;  %v1433_v54 = vpack.c.bf16 %v217_v52, %v214_v51 }
  0x3e   :  { %1370 = vmatprep.subr.bf16.mxu0 %v1369_v9  ;;  %v128_v9 = vld [vmem:[%s2458_s1 + $0x328] sm:$0xff]  ;;  %v1487_v3 = vpack.c.bf16 %v152_v60, %v149_v59 }
  0x3f   :  { %1468 = vmatpush3.bf16.msra.mxu1 %v1467_v4 }
  0x40   :  { %1470 = vmatprep.subr.bf16.mxu1 %v1469_v7  ;;  %v155_v7 = vld [vmem:[%s2458_s1 + $0x400] sm:$0xff] }
  0x41   :  { %1372 = vmatpush1.bf16.msra.mxu0 %v1371_v16  ;;  %v1471_v16 = vpack.c.bf16 %v128_v9, %v125_v8  ;;  %v158_v8 = vld [vmem:[%s2458_s1 + $0x418] sm:$0xff]  ;;  %v1409_v9 = vpack.c.bf16 %v181_v2, %v178_v1 }
  0x42   :  { %1374 = vmatprep.subr.bf16.mxu0 %v1373_v20  ;;  %v131_v20 = vld [vmem:[%s2458_s1 + $0x340] sm:$0xff]  ;;  %426 = vmatmul.mubr.f32.vlgmr.msra.gmra.mrb[0].mxu1 %v1942_v28  ;;  %v1491_v15 = vpack.c.bf16 %v158_v8, %v155_v7  ;;  %v170_v7 = vld [vmem:[%s2458_s1 + $0x478] sm:$0xff] }
  0x43   :  { %1472 = vmatpush3.bf16.msra.mxu1 %v1471_v16  ;;  %v1475_v31 = vpack.c.bf16 %v134_v22, %v131_v20  ;;  %495 = vmatprep.mubr.f32.mxu1 %v1959_v37  ;;  %v1413_v20 = vpack.c.bf16 %v187_v14, %v184_v13  ;;  %v183_v22 = vld [vmem:[%s2458_s1 + $0x4e0] sm:$0xff]  ;;  %v1590_v14 = vmov 0.0  }
  0x44   :  { %284 = vmatmul.mubr.f32.vlgmr.msra.gmra.mrb[0].mxu0 %v1942_v28  ;;  %1474 = vmatprep.subr.bf16.mxu1 %v1473_v19  ;;  %v140_v28 = vld [vmem:[%s2458_s1 + $0x388] sm:$0xff] }
  0x45   :  { %1376 = vmatpush1.bf16.msra.mxu0 %v1375_v32  ;;  %354 = vmatprep.mubr.f32.mxu0 %v1959_v37  ;;  %v1395_v32 = vpack.c.bf16 %v156_v24, %v153_v18  ;;  %v162_v37 = vld [vmem:[%s2458_s1 + $0x438] sm:$0xff]  ;;  %v1479_v42 = vpack.c.bf16 %v140_v28, %v137_v35  ;;  %v161_v18 = vld [vmem:[%s2458_s1 + $0x430] sm:$0xff]  ;;  %v164_v19 = vld [vmem:[%s2458_s1 + $0x448] sm:$0xff] }
  0x46   :  { %1378 = vmatprep.subr.bf16.mxu0 %v1377_v36  ;;  %v1397_v36 = vpack.c.bf16 %v163_v30, %v160_v27  ;;  %v1399_v43 = vpack.c.bf16 %v162_v37, %v159_v33  ;;  %v190_v24 = vld [vmem:[%s2458_s1 + $0x518] sm:$0xff]  ;;  %v1495_v26 = vpack.c.bf16 %v164_v19, %v161_v18  ;;  %v196_v33 = vld [vmem:[%s2458_s1 + $0x548] sm:$0xff] }
  0x47   :  { %1476 = vmatpush3.bf16.msra.mxu1 %v1475_v31  ;;  %v1417_v30 = vpack.c.bf16 %v193_v25, %v190_v24  ;;  %v189_v31 = vld [vmem:[%s2458_s1 + $0x510] sm:$0xff]  ;;  %v198_v37 = vld [vmem:[%s2458_s1 + $0x558] sm:$0xff]  ;;  %v702_v24 = vld [vmem:[%s2462_s4 + $0x80] sm:$0xff] }
  0x48   :  { %1478 = vmatprep.subr.bf16.mxu1 %v1477_v34  ;;  %v199_v34 = vld [vmem:[%s2458_s1 + $0x560] sm:$0xff]  ;;  %v703_v25 = vld [vmem:[%s2462_s4 + $0x88] sm:$0xff] }
  0x49   :  { %1380 = vmatpush1.bf16.msra.mxu0 %v1379_v44  ;;  %v165_v44 = vld [vmem:[%s2458_s1 + $0x450] sm:$0xff]  ;;  %v1421_v28 = vpack.c.bf16 %v199_v34, %v196_v33  ;;  %v705_v33 = vld [vmem:[%s2462_s4 + $0x98] sm:$0xff] }
  0x4a   :  { %1382 = vmatprep.subr.bf16.mxu0 %v1381_v50  ;;  %v168_v50 = vld [vmem:[%s2458_s1 + $0x468] sm:$0xff] }
  0x4b   :  { %1480 = vmatpush3.bf16.msra.mxu1 %v1479_v42  ;;  %v1403_v56 = vpack.c.bf16 %v168_v50, %v165_v44  ;;  %v201_v42 = vld [vmem:[%s2458_s1 + $0x570] sm:$0xff]  ;;  %v208_v44 = vld [vmem:[%s2458_s1 + $0x5a8] sm:$0xff]  ;;  %v210_v50 = vld [vmem:[%s2458_s1 + $0x5b8] sm:$0xff] }
  0x4c   :  { %1482 = vmatprep.subr.bf16.mxu1 %v1481_v45  ;;  %v211_v45 = vld [vmem:[%s2458_s1 + $0x5c0] sm:$0xff] }
  0x4d   :  { %1384 = vmatpush1.bf16.msra.mxu0 %v1383_v57  ;;  %v171_v57 = vld [vmem:[%s2458_s1 + $0x480] sm:$0xff]  ;;  %v1429_v48 = vpack.c.bf16 %v211_v45, %v208_v44  ;;  %v713_v44 = vld [vmem:[%s2462_s4 + $0xd8] sm:$0xff] }
  0x4e   :  { %1386 = vmatprep.subr.bf16.mxu0 %v1385_v62  ;;  %v174_v62 = vld [vmem:[%s2458_s1 + $0x498] sm:$0xff] }
  0x4f   :  { %1484 = vmatpush3.bf16.msra.mxu1 %v1483_v55  ;;  %v1407_v4 = vpack.c.bf16 %v174_v62, %v171_v57  ;;  %v213_v55 = vld [vmem:[%s2458_s1 + $0x5d0] sm:$0xff] }
  0x50   :  { %1486 = vmatprep.subr.bf16.mxu1 %v1485_v58  ;;  %v25_v58 = vld [vmem:[%s2461_s0 + $0x10] sm:$0xff] }
  0x51   :  { %1388 = vmatpush1.bf16.msra.mxu0 %v1387_v5  ;;  %v177_v5 = vld [vmem:[%s2458_s1 + $0x4b0] sm:$0xff] }
  0x52   :  { %1390 = vmatprep.subr.bf16.mxu0 %v1389_v10  ;;  %v180_v10 = vld [vmem:[%s2458_s1 + $0x4c8] sm:$0xff] }
  0x53   :  { %1488 = vmatpush3.bf16.msra.mxu1 %v1487_v3  ;;  %v1411_v16 = vpack.c.bf16 %v180_v10, %v177_v5  ;;  %v215_v5 = vld [vmem:[%s2458_s1 + $0x5e0] sm:$0xff] }
  0x54   :  { %1490 = vmatprep.subr.bf16.mxu1 %v1489_v6 }
  0x55   :  { %1392 = vmatpush1.bf16.msra.mxu0 %v1391_v17  ;;  %v1493_v17 = vpack.c.bf16 %v212_v12, %v209_v11 }
  0x56   :  { %1394 = vmatprep.subr.bf16.mxu0 %v1393_v23  ;;  %v186_v23 = vld [vmem:[%s2458_s1 + $0x4f8] sm:$0xff] }
  0x57   :  { %1492 = vmatpush3.bf16.msra.mxu1 %v1491_v15  ;;  %v1415_v27 = vpack.c.bf16 %v186_v23, %v183_v22  ;;  %v1592_v15 = vmov 0.0|0.0  }
  0x58   :  { %1494 = vmatprep.subr.bf16.mxu1 %v1493_v17 }
  0x59   :  { %1396 = vmatpush1.bf16.msra.mxu0 %v1395_v32  ;;  %v192_v32 = vld [vmem:[%s2458_s1 + $0x528] sm:$0xff] }
  0x5a   :  { %1398 = vmatprep.subr.bf16.mxu0 %v1397_v36  ;;  %v1419_v35 = vpack.c.bf16 %v192_v32, %v189_v31  ;;  %v195_v36 = vld [vmem:[%s2458_s1 + $0x540] sm:$0xff]  ;;  %v704_v32 = vld [vmem:[%s2462_s4 + $0x90] sm:$0xff] }
  0x5b   :  { %1496 = vmatpush3.bf16.msra.mxu1 %v1495_v26  ;;  %v1423_v40 = vpack.c.bf16 %v198_v37, %v195_v36  ;;  %v1505_v34 = vpack.c.bf16 %v705_v33, %v704_v32  ;;  %v708_v37 = vld [vmem:[%s2462_s4 + $0xb0] sm:$0xff]  ;;  %v956_v32 = vld [vmem:[%s2462_s4 + $0x128] sm:$0xff] }
  0x5c   :  { %v1511_v39 = vpack.c.bf16 %v709_v38, %v708_v37  ;;  %v960_v37 = vld [vmem:[%s2462_s4 + $0x148] sm:$0xff] }
  0x5d   :  { %1400 = vmatpush1.bf16.msra.mxu0 %v1399_v43  ;;  %v204_v43 = vld [vmem:[%s2458_s1 + $0x588] sm:$0xff] }
  0x5e   :  { %1402 = vmatprep.subr.bf16.mxu0 %v1401_v49  ;;  %v1427_v46 = vpack.c.bf16 %v204_v43, %v201_v42  ;;  %v207_v49 = vld [vmem:[%s2458_s1 + $0x5a0] sm:$0xff]  ;;  %v712_v43 = vld [vmem:[%s2462_s4 + $0xd0] sm:$0xff] }
  0x5f   :  { %v1431_v53 = vpack.c.bf16 %v210_v50, %v207_v49  ;;  %v1517_v45 = vpack.c.bf16 %v713_v44, %v712_v43  ;;  %v964_v43 = vld [vmem:[%s2462_s4 + $0x168] sm:$0xff] }
  0x61   :  { %1404 = vmatpush1.bf16.msra.mxu0 %v1403_v56  ;;  %v216_v56 = vld [vmem:[%s2458_s1 + $0x5e8] sm:$0xff] }
  0x62   :  { %1406 = vmatprep.subr.bf16.mxu0 %v1405_v61  ;;  %v1435_v57 = vpack.c.bf16 %v216_v56, %v213_v55  ;;  %v717_v55 = vld [vmem:[%s2462_s4 + $0xf8] sm:$0xff] }
  0x65   :  { %1408 = vmatpush1.bf16.msra.mxu0 %v1407_v4 }
  0x66   :  { %1410 = vmatprep.subr.bf16.mxu0 %v1409_v9 }
  0x69   :  { %1412 = vmatpush1.bf16.msra.mxu0 %v1411_v16 }
  0x6a   :  { %1414 = vmatprep.subr.bf16.mxu0 %v1413_v20 }
  0x6d   :  { %1416 = vmatpush1.bf16.msra.mxu0 %v1415_v27 }
  0x6e   :  { %1418 = vmatprep.subr.bf16.mxu0 %v1417_v30  ;;  %v1502_v30 = vpack.c.bf16 %v703_v25, %v702_v24  ;;  %v951_v25 = vld [vmem:[%s2462_s4 + $0x100] sm:$0xff] }
  0x71   :  { %1420 = vmatpush1.bf16.msra.mxu0 %v1419_v35  ;;  %v706_v35 = vld [vmem:[%s2462_s4 + $0xa0] sm:$0xff] }
  0x72   :  { %1422 = vmatprep.subr.bf16.mxu0 %v1421_v28  ;;  %v707_v28 = vld [vmem:[%s2462_s4 + $0xa8] sm:$0xff] }
  0x73   :  { %v1508_v36 = vpack.c.bf16 %v707_v28, %v706_v35  ;;  %v958_v35 = vld [vmem:[%s2462_s4 + $0x138] sm:$0xff] }
  0x75   :  { %1424 = vmatpush1.bf16.msra.mxu0 %v1423_v40  ;;  %v710_v40 = vld [vmem:[%s2462_s4 + $0xc0] sm:$0xff] }
  0x76   :  { %1426 = vmatprep.subr.bf16.mxu0 %v1425_v41  ;;  %v711_v41 = vld [vmem:[%s2462_s4 + $0xc8] sm:$0xff] }
  0x77   :  { %v1514_v42 = vpack.c.bf16 %v711_v41, %v710_v40  ;;  %v962_v40 = vld [vmem:[%s2462_s4 + $0x158] sm:$0xff] }
  0x79   :  { %1428 = vmatpush1.bf16.msra.mxu0 %v1427_v46  ;;  %v714_v46 = vld [vmem:[%s2462_s4 + $0xe0] sm:$0xff] }
  0x7a   :  { %1430 = vmatprep.subr.bf16.mxu0 %v1429_v48  ;;  %v715_v48 = vld [vmem:[%s2462_s4 + $0xe8] sm:$0xff] }
  0x7b   :  { %v1520_v49 = vpack.c.bf16 %v715_v48, %v714_v46  ;;  %v966_v46 = vld [vmem:[%s2462_s4 + $0x178] sm:$0xff] }
  0x7d   :  { %1432 = vmatpush1.bf16.msra.mxu0 %v1431_v53 }
  0x7e   :  { %1434 = vmatprep.subr.bf16.mxu0 %v1433_v54  ;;  %v716_v54 = vld [vmem:[%s2462_s4 + $0xf0] sm:$0xff] }
  0x7f   :  { %v1523_v56 = vpack.c.bf16 %v717_v55, %v716_v54 }
  0x81   :  { %1436 = vmatpush1.bf16.msra.mxu0 %v1435_v57  ;;  %v593_v57 = vld [vmem:[%s2462_s4] sm:$0xff] }
  0x82   :  { %1549 = vmatprep.subr.bf16.mxu0 %v1592_v15 }
  0x84   :  { %355 = vmatmul.mubr.f32.vlgmr.msra.gmra.mrb[0].mxu0 %v25_v58 }
  0x85   :  { %1306 = vmatprep.mubr.msk.f32.mxu0 %vm1591_vm7, %v1590_v14 }
  0x96   :  { %v511_v59 = vpop.xlane.xlu0 %510 }
  0x97   :  { %v512_v60 = vsub.f32 %v1671_v21, %v511_v59  ;;  %v218_v21 = vld [vmem:[%s2458_s1 + $0x5f8] sm:$0xff] }
  0x98   :  { %v1497_v6 = vpack.c.bf16 %v218_v21, %v215_v5  ;;  %v599_v21 = vld [vmem:[%s2462_s4 + $0x30] sm:$0xff] }
  0x99   :  { %v513_v61 = vmul.f32 1.442695, %v512_v60 }
  0x9a   :  { %v620_v62 = vpop.xlane.xlu0 %619  ;;  %1498 = vmatprep.subr.bf16.mxu1 %v1497_v6  ;;  %v600_v6 = vld [vmem:[%s2462_s4 + $0x38] sm:$0xff] }
  0x9b   :  { %1578 = vpow2.f32 %v513_v61  ;;  %v621_v63 = vsub.f32 %v1687_v29, %v620_v62  ;;  %v167_v29 = vld [vmem:[%s2458_s1 + $0x460] sm:$0xff]  ;;  %v595_v62 = vld [vmem:[%s2462_s4 + $0x10] sm:$0xff] }
  0x9c   :  { %v1499_v8 = vpack.c.bf16 %v170_v7, %v167_v29  ;;  %v1535_v29 = vpack.c.bf16 %v600_v6, %v599_v21  ;;  %v601_v7 = vld [vmem:[%s2462_s4 + $0x40] sm:$0xff] }
  0x9d   :  { %v622_v0 = vmul.f32 1.442695, %v621_v63  ;;  %v596_v63 = vld [vmem:[%s2462_s4 + $0x18] sm:$0xff] }
  0x9e   :  { %1500 = vmatpush3.bf16.msra.mxu1 %v1499_v8  ;;  %v602_v8 = vld [vmem:[%s2462_s4 + $0x48] sm:$0xff] }
  0x9f   :  { %1580 = vpow2.f32 %v622_v0  ;;  %1189 = vmatprep.subr.mxu1 %v1590_v14 }
  0xa1   :  { %496 = vmatmul.mubr.f32.vlgmr.msra.gmra.mrb[2].mxu1 %v25_v58  ;;  %v594_v58 = vld [vmem:[%s2462_s4 + $0x8] sm:$0xff] }
  0xa2   :  { %1191 = vmatprep.mubr.msk.f32.mxu1 %vm1591_vm7, %v1590_v14  ;;  %v1526_v61 = vpack.c.bf16 %v594_v58, %v593_v57 }
  0xa5   :  { %v1579_v1 = vpop.eup %1578 }
  0xa6   :  { %v515_v2 = vsel %vm508_vm2, %v1579_v1, 0.0 }
  0xa7   :  { %516 = vadd.xlane.f32.xlu1 %v515_v2  ;;  %v1529_v2 = vpack.c.bf16 %v596_v63, %v595_v62 }
  0xa8   :  { %v869_v9 = vpop.xlane.xlu0 %868 }
  0xa9   :  { %v1581_v3 = vpop.eup %1580  ;;  %v870_v10 = vsub.f32 %v1848_v47, %v869_v9  ;;  %v1538_v9 = vpack.c.bf16 %v602_v8, %v601_v7 }
  0xaa   :  { %v624_v4 = vsel %vm508_vm2, %v1581_v3, 0.0 }
  0xab   :  { %625 = vadd.xlane.f32.xlu1 %v624_v4  ;;  %v871_v11 = vmul.f32 1.442695, %v870_v10  ;;  %v598_v4 = vld [vmem:[%s2462_s4 + $0x28] sm:$0xff]  ;;  %v603_v10 = vld [vmem:[%s2462_s4 + $0x50] sm:$0xff] }
  0xad   :  { %1582 = vpow2.f32 %v871_v11  ;;  %v604_v11 = vld [vmem:[%s2462_s4 + $0x58] sm:$0xff] }
  0xb7   :  { %v2261_v12 = vpop.eup %1582 }
  0xb8   :  { %v873_v13 = vsel %vm508_vm2, %v2261_v12, 0.0 }
  0xb9   :  { %874 = vadd.xlane.f32.xlu1 %v873_v13  ;;  %v1541_v13 = vpack.c.bf16 %v604_v11, %v603_v10 }
 0x115   :  { %v1094_v47 = vpop.f32.mrb[0].mxu1 }
 0x116   :  { %v1095_v16 = vpop.f32.mrb[1].mxu1 }
 0x117   :  { %v1096_v17 = vadd.f32 %v1095_v16, %v1094_v47  ;;  %v605_v16 = vld [vmem:[%s2462_s4 + $0x60] sm:$0xff] }
 0x134   :  { %v517_v18 = vpop.xlane.xlu1 %516 }
 0x135   :  { %1584 = vrcp.f32 %v517_v18 }
 0x138   :  { %v626_v19 = vpop.xlane.xlu1 %625 }
 0x139   :  { %1586 = vrcp.f32 %v626_v19  ;;  %v607_v19 = vld [vmem:[%s2462_s4 + $0x70] sm:$0xff] }
 0x13f   :  { %v1585_v20 = vpop.eup %1584 }
 0x140   :  { %v519_v22 = vmul.f32 %v1585_v20, %v1579_v1  ;;  %v608_v20 = vld [vmem:[%s2462_s4 + $0x78] sm:$0xff] }
 0x143   :  { %v1587_v26 = vpop.eup %1586 }
 0x144   :  { %v628_v31 = vmul.f32 %v1587_v26, %v1581_v3  ;;  %v597_v3 = vld [vmem:[%s2462_s4 + $0x20] sm:$0xff]  ;;  %v952_v26 = vld [vmem:[%s2462_s4 + $0x108] sm:$0xff] }
 0x145   :  { %v1532_v5 = vpack.c.bf16 %v598_v4, %v597_v3 }
 0x146   :  { %v875_v47 = vpop.xlane.xlu1 %874 }
 0x147   :  { %1588 = vrcp.f32 %v875_v47 }
 0x157   :  { %v356_v23 = vpop.f32.mrb[0].mxu0 }
 0x158   :  { %v358_v27 = vpop.f32.mrb[1].mxu0  ;;  %1190 = vmatpush3.msra.mxu1 %v356_v23  ;;  %v1589_v23 = vpop.eup %1588 }
 0x159   :  { %1192 = vmatmul.mubr.msk.f32.vlgmr.msra.gmra.mrb[4].mxu1 %vm508_vm2, %v519_v22  ;;  %1194 = vmatprep.subr.mxu1 %v1590_v14  ;;  %v1547_v22 = vpack.c.bf16 %v608_v20, %v607_v19  ;;  %v877_v24 = vmul.f32 %v1589_v23, %v2261_v12 }
 0x15a   :  { %1195 = vmatpush3.msra.mxu1 %v358_v27  ;;  %1196 = vmatprep.mubr.msk.f32.mxu1 %vm1591_vm7, %v1590_v14  ;;  %v953_v27 = vld [vmem:[%s2462_s4 + $0x110] sm:$0xff] }
 0x15b   :  { %1501 = vmatprep.subr.bf16.mxu1 %v1592_v15 }
 0x15d   :  { %1197 = vmatmul.mubr.msk.f32.vlgmr.msra.gmra.mrb[6].mxu1 %vm508_vm2, %v628_v31  ;;  %v955_v31 = vld [vmem:[%s2462_s4 + $0x120] sm:$0xff] }
 0x15e   :  { %1503 = vmatpush3.bf16.msra.mxu1 %v1502_v30  ;;  %1231 = vmatprep.mubr.msk.f32.mxu1 %vm1591_vm7, %v1590_v14  ;;  %v1550_v30 = vpack.c.bf16 %v952_v26, %v951_v25  ;;  %v1556_v33 = vpack.c.bf16 %v956_v32, %v955_v31 }
 0x15f   :  { %1504 = vmatprep.subr.bf16.mxu1 %v1592_v15 }
 0x160   :  { %1551 = vmatpush3.bf16.msra.mxu0 %v1550_v30 }
 0x161   :  { %1552 = vmatprep.subr.bf16.mxu0 %v1592_v15 }
 0x162   :  { %1506 = vmatpush3.bf16.msra.mxu1 %v1505_v34  ;;  %v957_v34 = vld [vmem:[%s2462_s4 + $0x130] sm:$0xff] }
 0x163   :  { %1507 = vmatprep.subr.bf16.mxu1 %v1592_v15  ;;  %v1559_v28 = vpack.c.bf16 %v958_v35, %v957_v34 }
 0x166   :  { %1509 = vmatpush3.bf16.msra.mxu1 %v1508_v36  ;;  %v959_v36 = vld [vmem:[%s2462_s4 + $0x140] sm:$0xff] }
 0x167   :  { %1510 = vmatprep.subr.bf16.mxu1 %v1592_v15  ;;  %v1562_v38 = vpack.c.bf16 %v960_v37, %v959_v36 }
 0x16a   :  { %1512 = vmatpush3.bf16.msra.mxu1 %v1511_v39  ;;  %v961_v39 = vld [vmem:[%s2462_s4 + $0x150] sm:$0xff] }
 0x16b   :  { %1513 = vmatprep.subr.bf16.mxu1 %v1592_v15  ;;  %v1565_v41 = vpack.c.bf16 %v962_v40, %v961_v39 }
 0x16e   :  { %1515 = vmatpush3.bf16.msra.mxu1 %v1514_v42  ;;  %v963_v42 = vld [vmem:[%s2462_s4 + $0x160] sm:$0xff] }
 0x16f   :  { %1516 = vmatprep.subr.bf16.mxu1 %v1592_v15  ;;  %v1568_v44 = vpack.c.bf16 %v964_v43, %v963_v42 }
 0x172   :  { %1518 = vmatpush3.bf16.msra.mxu1 %v1517_v45  ;;  %v965_v45 = vld [vmem:[%s2462_s4 + $0x170] sm:$0xff] }
 0x173   :  { %1519 = vmatprep.subr.bf16.mxu1 %v1592_v15  ;;  %v1571_v48 = vpack.c.bf16 %v966_v46, %v965_v45 }
 0x174   :  { %v1129_v50 = vpop.f32.mrb[2].mxu1 }
 0x175   :  { %v1130_v51 = vpop.f32.mrb[3].mxu1 }
 0x176   :  { %1521 = vmatpush3.bf16.msra.mxu1 %v1520_v49  ;;  %v1131_v52 = vadd.f32 %v1130_v51, %v1129_v50 }
 0x177   :  { %1522 = vmatprep.subr.bf16.mxu1 %v1592_v15 }
 0x178   :  { %v498_v53 = vadd.f32 %v1131_v52, %v1096_v17  ;;  %v606_v17 = vld [vmem:[%s2462_s4 + $0x68] sm:$0xff] }
 0x179   :  { %v1544_v18 = vpack.c.bf16 %v606_v17, %v605_v16 }
 0x17a   :  { %1524 = vmatpush3.bf16.msra.mxu1 %v1523_v56 }
 0x17b   :  { %1525 = vmatprep.subr.bf16.mxu1 %v1592_v15 }
 0x22c   :  { %v589_v59 = vpop.f32.mrb[4].mxu1 }
 0x22d   :  { %v1193_v60 = vpop.f32.mrb[5].mxu1 }
 0x230   :  { %v698_v0 = vpop.f32.mrb[6].mxu1 }
 0x231   :  { %v1198_v1 = vpop.f32.mrb[7].mxu1  ;;  %1232 = vmatmul.mubr.f32.vlgmr.msra.gmra.mrb[8].mxu1 %v698_v0 }
 0x232   :  { %1527 = vmatpush3.bf16.msra.mxu1 %v1526_v61  ;;  %1266 = vmatprep.mubr.msk.f32.mxu1 %vm1591_vm7, %v1590_v14 }
 0x233   :  { %1528 = vmatprep.subr.bf16.mxu1 %v1592_v15 }
 0x236   :  { %1530 = vmatpush3.bf16.msra.mxu1 %v1529_v2 }
 0x237   :  { %1531 = vmatprep.subr.bf16.mxu1 %v1592_v15 }
 0x23a   :  { %1533 = vmatpush3.bf16.msra.mxu1 %v1532_v5 }
 0x23b   :  { %1534 = vmatprep.subr.bf16.mxu1 %v1592_v15 }
 0x23e   :  { %1536 = vmatpush3.bf16.msra.mxu1 %v1535_v29 }
 0x23f   :  { %1537 = vmatprep.subr.bf16.mxu1 %v1592_v15 }
 0x242   :  { %1539 = vmatpush3.bf16.msra.mxu1 %v1538_v9 }
 0x243   :  { %1540 = vmatprep.subr.bf16.mxu1 %v1592_v15 }
 0x246   :  { %1542 = vmatpush3.bf16.msra.mxu1 %v1541_v13 }
 0x247   :  { %1543 = vmatprep.subr.bf16.mxu1 %v1592_v15 }
 0x24a   :  { %1545 = vmatpush3.bf16.msra.mxu1 %v1544_v18 }
 0x24b   :  { %1546 = vmatprep.subr.bf16.mxu1 %v1592_v15 }
 0x24e   :  { %1548 = vmatpush3.bf16.msra.mxu1 %v1547_v22 }
 0x24f   :  { %1269 = vmatprep.subr.mxu1 %v1590_v14 }
 0x251   :  { %1267 = vmatmul.mubr.f32.vlgmr.msra.gmra.mrb[10].mxu1 %v589_v59 }
 0x252   :  { %1270 = vmatpush3.msra.mxu1 %v498_v53  ;;  %1271 = vmatprep.mubr.msk.f32.mxu1 %vm1591_vm7, %v1590_v14  ;;  %v954_v14 = vld [vmem:[%s2462_s4 + $0x118] sm:$0xff] }
 0x253   :  { %v1553_v12 = vpack.c.bf16 %v954_v14, %v953_v27 }
 0x255   :  { %1272 = vmatmul.mubr.msk.f32.vlgmr.msra.gmra.mrb[12].mxu1 %vm508_vm2, %v877_v24  ;;  %1554 = vmatpush3.bf16.msra.mxu0 %v1553_v12 }
 0x256   :  { %1555 = vmatprep.subr.bf16.mxu0 %v1592_v15 }
 0x259   :  { %1557 = vmatpush3.bf16.msra.mxu0 %v1556_v33 }
 0x25a   :  { %1558 = vmatprep.subr.bf16.mxu0 %v1592_v15 }
 0x25d   :  { %1560 = vmatpush3.bf16.msra.mxu0 %v1559_v28 }
 0x25e   :  { %1561 = vmatprep.subr.bf16.mxu0 %v1592_v15 }
 0x261   :  { %1563 = vmatpush3.bf16.msra.mxu0 %v1562_v38 }
 0x262   :  { %1564 = vmatprep.subr.bf16.mxu0 %v1592_v15 }
 0x265   :  { %1566 = vmatpush3.bf16.msra.mxu0 %v1565_v41 }
 0x266   :  { %1567 = vmatprep.subr.bf16.mxu0 %v1592_v15 }
 0x269   :  { %1569 = vmatpush3.bf16.msra.mxu0 %v1568_v44 }
 0x26a   :  { %1570 = vmatprep.subr.bf16.mxu0 %v1592_v15  ;;  %v1061_v15 = vld [vmem:[%s2463_s5] ss:$0 sm:$0xff] }
 0x26d   :  { %1572 = vmatpush3.bf16.msra.mxu0 %v1571_v48 }
 0x304   :  { %v784_v49 = vpop.f32.mrb[8].mxu1 }
 0x305   :  { %v1233_v50 = vpop.f32.mrb[9].mxu1 }
 0x324   :  { %v854_v51 = vpop.f32.mrb[10].mxu1 }
 0x325   :  { %v855_v52 = vadd.f32 %v854_v51, %v784_v49  ;;  %v1268_v53 = vpop.f32.mrb[11].mxu1 }
 0x328   :  { %v947_v54 = vpop.f32.mrb[12].mxu1 }
 0x329   :  { %v1273_v55 = vpop.f32.mrb[13].mxu1  ;;  %1307 = vmatmul.mubr.f32.vlgmr.msra.gmra.mrb[2].mxu0 %v947_v54 }
 0x3fc   :  { %v1033_v56 = vpop.f32.mrb[2].mxu0 }
 0x3fd   :  { %v1037_v57 = vadd.f32 %v1033_v56, %v855_v52  ;;  %v1308_v58 = vpop.f32.mrb[3].mxu0 }
 0x3ff   :  { %v1045_v59 = vadd.f32 %v1061_v15, %v1037_v57 }
 0x401   :  { %vm1046_vm8 = vcmp.gt.f32.partialorder %v1045_v59, 0.0  ;;  %v1047_v60 = vmul.f32 0.01, %v1045_v59 }
 0x403   :  { %v1048_v61 = vsel %vm1046_vm8, %v1045_v59, %v1047_v60 }
 0x404   :  { %1049 = vst [vmem:[%s2464_s6] sm:$0xff] %v1048_v61 }

// kernel: backbone_forward.13
= control target key start
LH: loop header
LB: loop body
LE: loop exit
PB: predicated region body
PF: predicated region fallthrough
CT: control target
= control target key end

     0   :  { %s1202_s0 = inlined_call_operand.vmem [shape: f32[8,128], index: 0, kind: input, shape index: {}]   ;;  %s1203_s1 = inlined_call_operand.vmem [shape: f32[128,64], index: 1, kind: input, shape index: {}]   ;;  %s1204_s2 = inlined_call_operand.vmem [shape: f32[1,64], index: 2, kind: input, shape index: {}]   ;;  %s1205_s3 = inlined_call_operand.vmem [shape: f32[64,32], index: 3, kind: input, shape index: {}]   ;;  %s1206_s4 = inlined_call_operand.vmem [shape: f32[1,32], index: 4, kind: input, shape index: {}]   ;;  %s1207_s5 = inlined_call_operand.vmem [shape: f32[32,7], index: 5, kind: input, shape index: {}]   ;;  %s1208_s6 = inlined_call_operand.vmem [shape: f32[1,7], index: 6, kind: input, shape index: {}]   ;;  %s1209_s7 = inlined_call_operand.vmem [shape: f32[32,13], index: 7, kind: input, shape index: {}]   ;;  %s1210_s8 = inlined_call_operand.vmem [shape: f32[1,13], index: 8, kind: input, shape index: {}]   ;;  %s1211_s9 = inlined_call_operand.vmem [shape: f32[32,1], index: 9, kind: input, shape index: {}]   ;;  %s1212_s10 = inlined_call_operand.<no memory space> [shape: f32[1,1], index: 10, kind: input, shape index: {}]   ;;  %s1213_s11 = inlined_call_operand.vmem [shape: f32[32,3], index: 11, kind: input, shape index: {}]   ;;  %s1214_s12 = inlined_call_operand.vmem [shape: f32[1,3], index: 12, kind: input, shape index: {}]   ;;  %s1215_s13 = inlined_call_operand.vmem [shape: f32[8,7], index: 13, kind: output, shape index: {0}]   ;;  %s1216_s14 = inlined_call_operand.hbm [shape: f32[8,13], index: 14, kind: output, shape index: {1}]   ;;  %s1217_s15 = inlined_call_operand.hbm [shape: f32[1,3], index: 15, kind: output, shape index: {2}]  }
   0x1   :  { %v21_v0 = vstv %s1212_s10 }
   0x2   :  { %22 = vst [vmem:[#allocation2] sm:$0x1] %v21_v0 }
   0x3   :  { %23 = vsyncpa [#allocation4], 0  ;;  %v52_v1 = vld [vmem:[%s1203_s1] sm:$0xff]  ;;  %v53_v2 = vld [vmem:[%s1203_s1 + $0x8] sm:$0xff]  ;;  %v909_v4 = vmov 0.0|0.0   ;;  %vm910_vm0 = vmmov 0  }
   0x4   :  { %v54_v3 = vld [vmem:[%s1203_s1 + $0x10] sm:$0xff]  ;;  %790 = vmatprep.subr.bf16.mxu0 %v909_v4  ;;  %v791_v5 = vpack.c.bf16 %v53_v2, %v52_v1  ;;  %v55_v6 = vld [vmem:[%s1203_s1 + $0x18] sm:$0xff]  ;;  %v911_v7 = vmov 0.0   ;;  %814 = vmatprep.subr.bf16.mxu1 %v909_v4  ;;  %v56_v9 = vld [vmem:[%s1203_s1 + $0x20] sm:$0xff] }
   0x5   :  { %724 = vmatprep.mubr.msk.f32.mxu0 %vm910_vm0, %v911_v7  ;;  %743 = vmatprep.mubr.msk.f32.mxu1 %vm910_vm0, %v911_v7  ;;  %v794_v8 = vpack.c.bf16 %v55_v6, %v54_v3  ;;  %v57_v10 = vld [vmem:[%s1203_s1 + $0x28] sm:$0xff]  ;;  %v148_v11 = vld [vmem:[%s1205_s3] sm:$0xff]  ;;  %v150_v13 = vld [vmem:[%s1205_s3 + $0x10] sm:$0xff] }
   0x6   :  { %792 = vmatpush3.bf16.msra.mxu0 %v791_v5  ;;  %v149_v12 = vld [vmem:[%s1205_s3 + $0x8] sm:$0xff]  ;;  %v151_v14 = vld [vmem:[%s1205_s3 + $0x18] sm:$0xff]  ;;  %v797_v15 = vpack.c.bf16 %v57_v10, %v56_v9  ;;  %v58_v17 = vld [vmem:[%s1203_s1 + $0x30] sm:$0xff] }
   0x7   :  { %793 = vmatprep.subr.bf16.mxu0 %v909_v4  ;;  %v815_v16 = vpack.c.bf16 %v149_v12, %v148_v11  ;;  %v59_v18 = vld [vmem:[%s1203_s1 + $0x38] sm:$0xff] }
   0xa   :  { %795 = vmatpush3.bf16.msra.mxu0 %v794_v8 }
   0xb   :  { %796 = vmatprep.subr.bf16.mxu0 %v909_v4 }
   0xc   :  { %24 = vsyncpa [#allocation6], 0  ;;  %816 = vmatpush3.bf16.msra.mxu1 %v815_v16  ;;  %v818_v19 = vpack.c.bf16 %v151_v14, %v150_v13  ;;  %v152_v20 = vld [vmem:[%s1205_s3 + $0x20] sm:$0xff]  ;;  %v153_v21 = vld [vmem:[%s1205_s3 + $0x28] sm:$0xff]  ;;  %v800_v22 = vpack.c.bf16 %v59_v18, %v58_v17  ;;  %vm163_vm2 = vcmask 523264   ;;  %vm251_vm4 = vcmask 261120  }
   0xd   :  { %817 = vmatprep.subr.bf16.mxu1 %v909_v4  ;;  %v60_v23 = vld [vmem:[%s1203_s1 + $0x40] sm:$0xff]  ;;  %v61_v24 = vld [vmem:[%s1203_s1 + $0x48] sm:$0xff]  ;;  %v821_v25 = vpack.c.bf16 %v153_v21, %v152_v20  ;;  %v62_v27 = vld [vmem:[%s1203_s1 + $0x50] sm:$0xff]  ;;  %v912_v8 = vmov 0   ;;  %vm325_vm5 = vcmask 56320   ;;  %vm491_vm6 = vcmask 7168  }
   0xe   :  { %798 = vmatpush3.bf16.msra.mxu0 %v797_v15  ;;  %v803_v26 = vpack.c.bf16 %v61_v24, %v60_v23  ;;  %v63_v28 = vld [vmem:[%s1203_s1 + $0x58] sm:$0xff]  ;;  %v64_v30 = vld [vmem:[%s1203_s1 + $0x60] sm:$0xff]  ;;  %v65_v31 = vld [vmem:[%s1203_s1 + $0x68] sm:$0xff]  ;;  %856 = vset.pattern.permute.xlu0 %v912_v8  ;;  %vm408_vm7 = vcmask 105472   ;;  %s913_s17 = smov [#allocation3]  }
   0xf   :  { %799 = vmatprep.subr.bf16.mxu0 %v909_v4  ;;  %v806_v29 = vpack.c.bf16 %v63_v28, %v62_v27  ;;  %v809_v32 = vpack.c.bf16 %v65_v31, %v64_v30  ;;  %v66_v33 = vld [vmem:[%s1203_s1 + $0x70] sm:$0xff]  ;;  %v67_v34 = vld [vmem:[%s1203_s1 + $0x78] sm:$0xff]  ;;  %v51_v36 = vld [vmem:[%s1202_s0] sm:$0xff]  ;;  %s612_s18 = sshll.u32 %s913_s17, 4  ;;  %s613_s18 = int_to_ptr.vmem [resolvable:$true] %s612_s18 }
  0x10   :  { %819 = vmatpush3.bf16.msra.mxu1 %v818_v19  ;;  %v812_v35 = vpack.c.bf16 %v67_v34, %v66_v33  ;;  %v154_v37 = vld [vmem:[%s1205_s3 + $0x30] sm:$0xff]  ;;  %v155_v38 = vld [vmem:[%s1205_s3 + $0x38] sm:$0xff]  ;;  %v410_v40 = vld [vmem:[%s1211_s9] sm:$0xff]  ;;  %s861_s19 = scalar_lea.vmem %s613_s18, 128  ;;  %p866_p1 = scmp.lt.s32.totalorder %s613_s18, %s613_s18 }
  0x11   :  { %820 = vmatprep.subr.bf16.mxu1 %v909_v4  ;;  %v824_v39 = vpack.c.bf16 %v155_v38, %v154_v37  ;;  %v411_v41 = vld [vmem:[%s1211_s9 + $0x8] sm:$0xff]  ;;  %v636_v43 = vld [vmem:[%s1204_s2] ss:$0 sm:$0xff]  ;;  %v242_v52 = vld [vmem:[%s1207_s5 + $0x10] sm:$0xff]  ;;  %p862_p0 = scmp.ne.s32.totalorder %s613_s18, %s861_s19  ;;  %p867_p2 = scmp.lt.s32.totalorder %s861_s19, %s861_s19 }
  0x12   :  { %801 = vmatpush3.bf16.msra.mxu0 %v800_v22  ;;  %v839_v42 = vpack.c.bf16 %v411_v41, %v410_v40  ;;  %v240_v45 = vld [vmem:[%s1207_s5] sm:$0xff]  ;;  %v241_v46 = vld [vmem:[%s1207_s5 + $0x8] sm:$0xff]  ;;  %v243_v53 = vld [vmem:[%s1207_s5 + $0x18] sm:$0xff] }
  0x13   :  { %802 = vmatprep.subr.bf16.mxu0 %v909_v4  ;;  %v827_v50 = vpack.c.bf16 %v241_v46, %v240_v45  ;;  %v830_v54 = vpack.c.bf16 %v243_v53, %v242_v52  ;;  %v412_v55 = vld [vmem:[%s1211_s9 + $0x10] sm:$0xff]  ;;  %v413_v56 = vld [vmem:[%s1211_s9 + $0x18] sm:$0xff]  ;;  %v637_v58 = vld [vmem:[%s1206_s4] ss:$0 sm:$0xff]  ;;  %p868_p3 = por %p867_p2, %p866_p1 }
  0x14   :  { %822 = vmatpush3.bf16.msra.mxu1 %v821_v25  ;;  %v842_v57 = vpack.c.bf16 %v413_v56, %v412_v55  ;;  %v327_v60 = vld [vmem:[%s1209_s7] sm:$0xff]  ;;  %v328_v61 = vld [vmem:[%s1209_s7 + $0x8] sm:$0xff]  ;;  %v329_v2 = vld [vmem:[%s1209_s7 + $0x10] sm:$0xff] }
  0x15   :  { %823 = vmatprep.subr.bf16.mxu1 %v909_v4  ;;  %v833_v1 = vpack.c.bf16 %v328_v61, %v327_v60  ;;  %v330_v3 = vld [vmem:[%s1209_s7 + $0x18] sm:$0xff]  ;;  %v639_v9 = vld [vmem:[%s1208_s6] ss:$0 sm:$0xff]  ;;  %v525_v40 = vld [vmem:[%s1213_s11 + $0x8] sm:$0xff]  ;;  %p869_p4 = pnand %p868_p3, %p862_p0 }
  0x16   :  { %804 = vmatpush3.bf16.msra.mxu0 %v803_v26  ;;  %v836_v6 = vpack.c.bf16 %v330_v3, %v329_v2  ;;  %v643_v10 = vld [vmem:[#allocation2] ss:$0 sm:$0xff] }
  0x17   :  { %805 = vmatprep.subr.bf16.mxu0 %v909_v4  ;;  %v641_v19 = vld [vmem:[%s1210_s8] ss:$0 sm:$0xff] }
  0x18   :  { %825 = vmatpush3.bf16.msra.mxu1 %v824_v39  ;;  %v524_v39 = vld [vmem:[%s1213_s11] sm:$0xff] }
  0x19   :  { %826 = vmatprep.subr.bf16.mxu1 %v909_v4  ;;  %v845_v41 = vpack.c.bf16 %v525_v40, %v524_v39 }
  0x1a   :  { %807 = vmatpush3.bf16.msra.mxu0 %v806_v29 }
  0x1b   :  { %808 = vmatprep.subr.bf16.mxu0 %v909_v4 }
  0x1e   :  { %810 = vmatpush3.bf16.msra.mxu0 %v809_v32 }
  0x1f   :  { %811 = vmatprep.subr.bf16.mxu0 %v909_v4 }
  0x22   :  { %813 = vmatpush3.bf16.msra.mxu0 %v812_v35 }
  0x23   :  { %838 = vmatprep.subr.bf16.mxu0 %v909_v4 }
  0x25   :  { %725 = vmatmul.mubr.f32.vlgmr.msra.gmra.mrb[0].mxu0 %v51_v36 }
  0x26   :  { %776 = vmatprep.mubr.msk.f32.mxu0 %vm910_vm0, %v911_v7  ;;  %840 = vmatpush3.bf16.msra.mxu0 %v839_v42  ;;  %v526_v42 = vld [vmem:[%s1213_s11 + $0x10] sm:$0xff] }
  0x27   :  { %841 = vmatprep.subr.bf16.mxu0 %v909_v4 }
  0x2a   :  { %843 = vmatpush3.bf16.msra.mxu0 %v842_v57 }
  0xf8   :  { %v141_v44 = vpop.f32.mrb[0].mxu0 }
  0xf9   :  { %v142_v47 = vadd.f32 %v636_v43, %v141_v44  ;;  %v726_v48 = vpop.f32.mrb[1].mxu0  ;;  %v527_v43 = vld [vmem:[%s1213_s11 + $0x18] sm:$0xff] }
  0xfa   :  { %v848_v44 = vpack.c.bf16 %v527_v43, %v526_v42 }
  0xfb   :  { %vm145_vm1 = vcmp.gt.f32.partialorder %v142_v47, 0.0  ;;  %v146_v49 = vmul.f32 0.01, %v142_v47 }
  0xfd   :  { %v147_v51 = vsel %vm145_vm1, %v142_v47, %v146_v49 }
  0xfe   :  { %744 = vmatmul.mubr.msk.f32.vlgmr.msra.gmra.mrb[0].mxu1 %vm163_vm2, %v147_v51 }
  0xff   :  { %828 = vmatpush3.bf16.msra.mxu1 %v827_v50  ;;  %754 = vmatprep.mubr.msk.f32.mxu1 %vm910_vm0, %v911_v7 }
 0x100   :  { %829 = vmatprep.subr.bf16.mxu1 %v909_v4 }
 0x103   :  { %831 = vmatpush3.bf16.msra.mxu1 %v830_v54 }
 0x104   :  { %832 = vmatprep.subr.bf16.mxu1 %v909_v4 }
 0x1d1   :  { %v233_v59 = vpop.f32.mrb[0].mxu1 }
 0x1d2   :  { %v234_v62 = vadd.f32 %v637_v58, %v233_v59  ;;  %v745_v63 = vpop.f32.mrb[1].mxu1 }
 0x1d4   :  { %vm237_vm3 = vcmp.gt.f32.partialorder %v234_v62, 0.0  ;;  %v238_v0 = vmul.f32 0.01, %v234_v62 }
 0x1d6   :  { %v239_v5 = vsel %vm237_vm3, %v234_v62, %v238_v0 }
 0x1d7   :  { %755 = vmatmul.mubr.msk.f32.vlgmr.msra.gmra.mrb[2].mxu1 %vm251_vm4, %v239_v5  ;;  %777 = vmatmul.mubr.msk.f32.vlgmr.msra.gmra.mrb[2].mxu0 %vm251_vm4, %v239_v5 }
 0x1d8   :  { %834 = vmatpush3.bf16.msra.mxu1 %v833_v1  ;;  %765 = vmatprep.mubr.msk.f32.mxu1 %vm910_vm0, %v911_v7 }
 0x1d9   :  { %835 = vmatprep.subr.bf16.mxu1 %v909_v4 }
 0x1dc   :  { %837 = vmatpush3.bf16.msra.mxu1 %v836_v6 }
 0x1dd   :  { %844 = vmatprep.subr.bf16.mxu1 %v909_v4 }
 0x1df   :  { %766 = vmatmul.mubr.msk.f32.vlgmr.msra.gmra.mrb[4].mxu1 %vm251_vm4, %v239_v5 }
 0x1e0   :  { %787 = vmatprep.mubr.msk.f32.mxu1 %vm910_vm0, %v911_v7  ;;  %846 = vmatpush3.bf16.msra.mxu1 %v845_v41 }
 0x1e1   :  { %847 = vmatprep.subr.bf16.mxu1 %v909_v4 }
 0x1e4   :  { %849 = vmatpush3.bf16.msra.mxu1 %v848_v44 }
 0x2aa   :  { %v321_v11 = vpop.f32.mrb[2].mxu1  ;;  %v487_v12 = vpop.f32.mrb[2].mxu0 }
 0x2ab   :  { %v322_v13 = vadd.f32 %v639_v9, %v321_v11  ;;  %v488_v14 = vadd.f32 %v643_v10, %v487_v12  ;;  %v756_v15 = vpop.f32.mrb[3].mxu1  ;;  %v778_v16 = vpop.f32.mrb[3].mxu0 }
 0x2ad   :  { %326 = vst.msk [vmem:[%s1215_s13] sm:$0xff] %vm325_vm5, %v322_v13  ;;  %v492_v7 = vsel %vm491_vm6, %v488_v14, -inf }
 0x2ae   :  { %v493_v17 = vrot.slane %v492_v7, 4 }
 0x2b0   :  { %v494_v18 = vmax.f32 %v492_v7, %v493_v17 }
 0x2b2   :  { %v495_v20 = vrot.slane %v494_v18, 2  ;;  %v404_v21 = vpop.f32.mrb[4].mxu1 }
 0x2b3   :  { %v405_v22 = vadd.f32 %v641_v19, %v404_v21  ;;  %v767_v23 = vpop.f32.mrb[5].mxu1 }
 0x2b4   :  { %v496_v24 = vmax.f32 %v494_v18, %v495_v20 }
 0x2b5   :  { %409 = vst.msk [vmem:[#allocation3] sm:$0xff] %vm408_vm7, %v405_v22 }
 0x2b6   :  { %v497_v25 = vrot.slane %v496_v24, 1 }
 0x2b8   :  { %v498_v26 = vmax.f32 %v496_v24, %v497_v25 }
 0x2ba   :  { %v499_v27 = vsub.f32 %v488_v14, %v498_v26 }
 0x2bc   :  { %v500_v28 = vmul.f32 1.442695, %v499_v27 }
 0x2be   :  { %857 = vpow2.f32 %v500_v28 }
 0x2c8   :  { %v858_v29 = vpop.eup %857 }
 0x2c9   :  { %v502_v30 = vsel %vm491_vm6, %v858_v29, 0.0 }
 0x2ca   :  { %v503_v31 = vrot.slane %v502_v30, 4 }
 0x2cc   :  { %v504_v32 = vadd.f32 %v503_v31, %v502_v30 }
 0x2ce   :  { %v505_v33 = vrot.slane %v504_v32, 2 }
 0x2d0   :  { %v506_v34 = vadd.f32 %v505_v33, %v504_v32 }
 0x2d2   :  { %v507_v35 = vrot.slane %v506_v34, 1 }
 0x2d4   :  { %v508_v36 = vadd.f32 %v507_v35, %v506_v34 }
 0x2d6   :  { %859 = vrcp.f32 %v508_v36 }
 0x2e0   :  { %v860_v37 = vpop.eup %859 }
 0x2e1   :  { %v510_v38 = vmul.f32 %v860_v37, %v858_v29 }
 0x2e3   :  { %513 = vperm.xlu0 %856, %v510_v38  }
 0x362   :  { %v514_v45 = vpop.permute.xlu0 %513 }
 0x363   :  { %v516_v46 = vmul.f32 %v514_v45, %v239_v5 }
 0x365   :  { %v517_v47 = vsel %vm251_vm4, %v516_v46, 0.0 }
 0x366   :  { %v518_v48 = vrot.slane %v517_v47, 4 }
 0x368   :  { %v519_v49 = vadd.f32 %v518_v48, %v517_v47 }
 0x36a   :  { %v520_v50 = vrot.slane %v519_v49, 2 }
 0x36c   :  { %v521_v51 = vadd.f32 %v520_v50, %v519_v49 }
 0x36e   :  { %v522_v52 = vrot.slane %v521_v51, 1 }
 0x370   :  { %v523_v4 = vadd.f32 %v522_v52, %v521_v51 }
 0x372   :  { %788 = vmatmul.mubr.msk.f32.vlgmr.msra.gmra.mrb[6].mxu1 %vm251_vm4, %v523_v4 }
 0x373   :  { %872 = shalt.err (!%p869_p4)
}
 0x374   :  { %s873_s20 = scalar_lea.hbm %s1216_s14, 128 }
 0x375   :  { %p874_p5 = scmp.ne.s32.totalorder %s1216_s14, %s873_s20  ;;  %p877_p6 = scmp.lt.u32.totalorder %s873_s20, %s1216_s14 }
 0x377   :  { %p879_p7 = pnand %p877_p6, %p874_p5 }
 0x379   :  { %882 = shalt.err (!%p879_p7)
}
 0x37a   :  { %615 = dma.vmem_to_hbm [thread:$0]  %s613_s18, 128, %s1216_s14, [#allocation4]   ;;  %v528_v53 = vld [vmem:[%s1214_s12] sm:$0x1]  ;;  %vm602_vm8 = vcmask 16384  }
 0x37b   :  { %s914_s7 = smov [#allocation5]  }
 0x37c   :  { %s622_s25 = sshll.u32 %s914_s7, 4  ;;  %s623_s25 = int_to_ptr.vmem [resolvable:$true] %s622_s25 }
 0x37d   :  { %s883_s3 = scalar_lea.vmem %s623_s25, 16  ;;  %s887_s26 = scalar_lea.vmem %s623_s25, 32 }
 0x37e   :  { %p884_p8 = scmp.ne.s32.totalorder %s623_s25, %s883_s3  ;;  %p888_p9 = scmp.lt.s32.totalorder %s623_s25, %s623_s25 }
 0x37f   :  { %p889_p10 = scmp.lt.s32.totalorder %s887_s26, %s883_s3 }
 0x381   :  { %p890_p11 = por %p889_p10, %p888_p9 }
 0x383   :  { %p891_p12 = pnand %p890_p11, %p884_p8 }
 0x445   :  { %v598_v54 = vpop.f32.mrb[6].mxu1 }
 0x446   :  { %v599_v55 = vadd.f32 %v598_v54, %v528_v53  ;;  %v789_v56 = vpop.f32.mrb[7].mxu1 }
 0x448   :  { %603 = vst.msk [vmem:[#allocation5] sm:$0x1] %vm602_vm8, %v599_v55 }
 0x449   :  { %894 = shalt.err (!%p891_p12)
}
 0x44a   :  { %s895_s12 = scalar_lea.hbm %s1217_s15, 16 }
 0x44b   :  { %p896_p13 = scmp.ne.s32.totalorder %s1217_s15, %s895_s12  ;;  %p899_p0 = scmp.lt.u32.totalorder %s895_s12, %s1217_s15 }
 0x44d   :  { %p901_p1 = pnand %p899_p0, %p896_p13 }
 0x44f   :  { %904 = shalt.err (!%p901_p1)
}
 0x450   :  { %625 = dma.vmem_to_hbm [thread:$0]  %s623_s25, 16, %s1217_s15, [#allocation6]  }
 0x451   :  { %905 = dma.done.wait [#allocation4], 128  }
 0x452   :  { %906 = vsyncadd [#allocation4], 4294967168 }
 0x453   :  { %907 = dma.done.wait [#allocation6], 16  }
 0x454   :  { %908 = vsyncadd [#allocation6], 4294967280 }
 0x455   :  { %634 = vsyncpa [#allocation4], 1 }
 0x456   :  { %635 = vsyncpa [#allocation6], 1 }

</bundles_post_ra>
